<compile_context>
chip_gen: v7x
topology: tpu7x:2x2x1
jax: 0.10.0
libtpu: 0.0.40
codegen_flags: <defaults>
</compile_context>

<pallas_src>
import functools

import jax
import jax.numpy as jnp
from jax.experimental import pallas as pl
from jax.experimental.pallas import tpu as pltpu

DROPOUT_P = 0.2


def _ffn_kernel_eval(x_ref, w1_ref, b1_ref, w2_ref, b2_ref, o_ref):
    # x_ref: (tm, C), w1_ref: (C, H), b1_ref: (1, H), w2_ref: (H, C), b2_ref: (1, C)
    x = x_ref[...]
    h = jnp.dot(x, w1_ref[...], preferred_element_type=jnp.float32)
    h = jnp.maximum(h + b1_ref[...].astype(jnp.float32), 0.0)          # ReLU
    y = jnp.dot(h.astype(x.dtype), w2_ref[...],
                preferred_element_type=jnp.float32)
    y = y + b2_ref[...].astype(jnp.float32)
    o_ref[...] = y.astype(o_ref.dtype)


def _ffn_kernel_train(x_ref, w1_ref, b1_ref, w2_ref, b2_ref, keep_ref, o_ref,
                      *, inv_keep):
    # Same as eval plus fused inverted dropout.  keep_ref: (tm, C) int8 {0,1}.
    x = x_ref[...]
    h = jnp.dot(x, w1_ref[...], preferred_element_type=jnp.float32)
    h = jnp.maximum(h + b1_ref[...].astype(jnp.float32), 0.0)
    y = jnp.dot(h.astype(x.dtype), w2_ref[...],
                preferred_element_type=jnp.float32)
    y = y + b2_ref[...].astype(jnp.float32)
    y = jnp.where(keep_ref[...] != 0, y * inv_keep, 0.0)               # dropout
    o_ref[...] = y.astype(o_ref.dtype)


def _pick_row_tile(M, *, max_tile=256, min_steps=4):
    """Largest multiple-of-8 divisor of M, capped so the grid has >= min_steps
    steps when M allows it (pipelining + v7x megacore sharding)."""
    assert M % 8 == 0, "B*T must be a multiple of 8"  # TODO(synk): pad rows otherwise
    cap = min(max_tile, M)
    if M >= 8 * min_steps:
        cap = min(cap, M // min_steps)
    tm = 8
    for cand in range(8, cap + 1, 8):
        if M % cand == 0:
            tm = cand
    return tm


def _vmem_limit_bytes(tm, C, H, act_itemsize, train):
    resident = (2 * C * H + H + C) * act_itemsize      # Buffered(1) weights + biases
    streamed = 2 * 2 * tm * C * act_itemsize           # x + out, double-buffered
    if train:
        streamed += 2 * tm * C                         # int8 keep mask, double-buffered
    hidden = tm * H * 4                                 # f32 hidden intermediate
    need = resident + streamed + hidden
    # 2x margin for compiler-internal scratch; never below the v5e default (16 MiB),
    # never above 40 MiB (leaves headroom on v7x's 64 MiB per-TC VMEM).
    return int(min(max(2 * need, 16 << 20), 40 << 20))


def feed_forward(x, w1, b1, w2, b2, *, key=None, train=False, p=DROPOUT_P,
                 max_row_tile=256):
    """x: (B, T, C).  w1: (C, 4C), b1: (4C,), w2: (4C, C), b2: (C,).

    For best MXU throughput on v5e/v6e pass bf16 operands (f32 accumulation is
    done inside the kernel via preferred_element_type)."""
    B, T, C = x.shape
    H = w1.shape[1]
    M = B * T
    assert C % 128 == 0 and H % 128 == 0, "feature dims must be lane-aligned"

    tm = _pick_row_tile(M, max_tile=max_row_tile)
    grid = (M // tm,)

    x2 = x.reshape(M, C)
    b1_2 = b1.reshape(1, H)
    b2_2 = b2.reshape(1, C)

    # Constant index_map -> these blocks are fetched once; 1 buffer is enough.
    resident = dict(pipeline_mode=pl.Buffered(1))
    in_specs = [
        pl.BlockSpec((tm, C), lambda i: (i, 0)),                 # x rows (streamed)
        pl.BlockSpec((C, H), lambda i: (0, 0), **resident),      # W1 (resident)
        pl.BlockSpec((1, H), lambda i: (0, 0), **resident),      # b1
        pl.BlockSpec((H, C), lambda i: (0, 0), **resident),      # W2 (resident)
        pl.BlockSpec((1, C), lambda i: (0, 0), **resident),      # b2
    ]
    args = [x2, w1, b1_2, w2, b2_2]

    if train:
        assert key is not None, "training mode needs a PRNG key for dropout"
        keep = jax.random.bernoulli(key, 1.0 - p, (M, C)).astype(jnp.int8)
        args.append(keep)
        in_specs.append(pl.BlockSpec((tm, C), lambda i: (i, 0)))  # int8 keep mask
        kernel = functools.partial(_ffn_kernel_train,
                                   inv_keep=float(1.0 / (1.0 - p)))
    else:
        kernel = _ffn_kernel_eval

    out2 = pl.pallas_call(
        kernel,
        out_shape=jax.ShapeDtypeStruct((M, C), x.dtype),
        grid=grid,
        in_specs=in_specs,
        out_specs=pl.BlockSpec((tm, C), lambda i: (i, 0)),
        compiler_params=pltpu.CompilerParams(
            dimension_semantics=("parallel",),    # rows are independent
            vmem_limit_bytes=_vmem_limit_bytes(tm, C, H, x.dtype.itemsize, train),
        ),
    )(*args)

    return out2.reshape(B, T, C)


def feed_forward_ref(x, w1, b1, w2, b2):
    # Pure-JAX eval-mode reference (dropout = identity), f32 math.
    xf = x.astype(jnp.float32)
    h = jnp.maximum(
        jnp.einsum("btc,ch->bth", xf, w1.astype(jnp.float32))
        + b1.astype(jnp.float32), 0.0)
    return (jnp.einsum("bth,hc->btc", h, w2.astype(jnp.float32))
            + b2.astype(jnp.float32))


if __name__ == "__main__":
    # Module-consistent sizes: n_embed=384 (hidden = 4*384 = 1536), B=2, T=128.
    # M = 256 rows -> row tile 64, grid of 4 steps (pipelined, megacore-shardable).
    B, T, C = 2, 128, 384
    H = 4 * C

    key = jax.random.PRNGKey(0)
    kx, k1, k2, kb1, kb2, kdrop = jax.random.split(key, 6)

    x = jax.random.normal(kx, (B, T, C), dtype=jnp.float32)
    # nn.Linear-style init (uniform in +/- 1/sqrt(fan_in)); stored as (in, out).
    w1 = jax.random.uniform(k1, (C, H), jnp.float32, -1.0, 1.0) / jnp.sqrt(C)
    b1 = jax.random.uniform(kb1, (H,), jnp.float32, -1.0, 1.0) / jnp.sqrt(C)
    w2 = jax.random.uniform(k2, (H, C), jnp.float32, -1.0, 1.0) / jnp.sqrt(H)
    b2 = jax.random.uniform(kb2, (C,), jnp.float32, -1.0, 1.0) / jnp.sqrt(H)

    # --- Eval mode (dropout disabled): check against the pure-JAX reference. ---
    y = jax.block_until_ready(feed_forward(x, w1, b1, w2, b2, train=False))
    y_ref = feed_forward_ref(x, w1, b1, w2, b2)
    assert jnp.allclose(y, y_ref, atol=1e-3, rtol=1e-3), "eval mismatch vs reference"

    # --- Training mode: keep mask is deterministic given the key, so the fused
    #     kernel is checked against (reference output * same inverted mask). ---
    keep = jax.random.bernoulli(kdrop, 1.0 - DROPOUT_P, (B * T, C))
    scale_ref = jnp.where(keep, 1.0 / (1.0 - DROPOUT_P), 0.0).reshape(B, T, C)
    y_train = jax.block_until_ready(
        feed_forward(x, w1, b1, w2, b2, key=kdrop, train=True))
    assert jnp.allclose(y_train, y_ref * scale_ref, atol=1e-3, rtol=1e-3), \
        "train mismatch vs reference"

    # --- Native-bf16 MXU path (f32 accumulation inside), tolerance-checked. ---
    xb, w1b, b1b, w2b, b2b = (a.astype(jnp.bfloat16) for a in (x, w1, b1, w2, b2))
    y_bf16 = jax.block_until_ready(feed_forward(xb, w1b, b1b, w2b, b2b, train=False))
    y_bf16_ref = feed_forward_ref(xb, w1b, b1b, w2b, b2b)   # f32 math on bf16 inputs
    max_err = jnp.max(jnp.abs(y_bf16.astype(jnp.float32) - y_bf16_ref))
    assert float(max_err) < 1e-1, f"bf16 mismatch vs reference (max err {max_err})"

    print("KERNEL_OK")
</pallas_src>

<mosaic_0001>
module attributes {stable_mosaic.version = 11 : i64} {
  func.func @_ffn_kernel_eval(%arg0: i32, %arg1: memref<64x384xf32, #tpu.memory_space<vmem>>, %arg2: memref<384x1536xf32, #tpu.memory_space<vmem>>, %arg3: memref<1x1536xf32, #tpu.memory_space<vmem>>, %arg4: memref<1536x384xf32, #tpu.memory_space<vmem>>, %arg5: memref<1x384xf32, #tpu.memory_space<vmem>>, %arg6: memref<64x384xf32, #tpu.memory_space<vmem>>) attributes {dimension_semantics = [#tpu.dimension_semantics<parallel>], iteration_bounds = array<i64: 4>, scalar_prefetch = 0 : i64, scratch_operands = 0 : i64, tpu.core_type = #tpu.core_type<tc>, window_params = [{transform_indices = @transform_0, window_bounds = array<i64: 64, 384>}, {pipeline_mode = #tpu.pipeline_mode<synchronous>, transform_indices = @transform_1, window_bounds = array<i64: 384, 1536>}, {pipeline_mode = #tpu.pipeline_mode<synchronous>, transform_indices = @transform_2, window_bounds = array<i64: 1, 1536>}, {pipeline_mode = #tpu.pipeline_mode<synchronous>, transform_indices = @transform_3, window_bounds = array<i64: 1536, 384>}, {pipeline_mode = #tpu.pipeline_mode<synchronous>, transform_indices = @transform_4, window_bounds = array<i64: 1, 384>}, {transform_indices = @transform_5, window_bounds = array<i64: 64, 384>}]} {
    %c0 = arith.constant 0 : index
    %c0_0 = arith.constant 0 : index
    %0 = vector.load %arg1[%c0, %c0_0] : memref<64x384xf32, #tpu.memory_space<vmem>>, vector<64x384xf32>
    %c0_1 = arith.constant 0 : index
    %c0_2 = arith.constant 0 : index
    %1 = vector.load %arg2[%c0_1, %c0_2] : memref<384x1536xf32, #tpu.memory_space<vmem>>, vector<384x1536xf32>
    %cst = arith.constant dense<0.000000e+00> : vector<64x1536xf32>
    %2 = tpu.matmul %0, %1, %cst {dimension_numbers = #tpu.dot_dimension_numbers<[1], [0], [0], [1], [0, 0, 1, 1], [], []>} : vector<64x384xf32>, vector<384x1536xf32>, vector<64x1536xf32> -> vector<64x1536xf32>
    %c0_3 = arith.constant 0 : index
    %c0_4 = arith.constant 0 : index
    %3 = vector.load %arg3[%c0_3, %c0_4] : memref<1x1536xf32, #tpu.memory_space<vmem>>, vector<1x1536xf32>
    %4 = vector.broadcast %3 : vector<1x1536xf32> to vector<64x1536xf32>
    %5 = arith.addf %2, %4 : vector<64x1536xf32>
    %cst_5 = arith.constant 0.000000e+00 : f32
    %6 = vector.broadcast %cst_5 : f32 to vector<64x1536xf32>
    %7 = arith.maximumf %5, %6 : vector<64x1536xf32>
    %c0_6 = arith.constant 0 : index
    %c0_7 = arith.constant 0 : index
    %8 = vector.load %arg4[%c0_6, %c0_7] : memref<1536x384xf32, #tpu.memory_space<vmem>>, vector<1536x384xf32>
    %cst_8 = arith.constant dense<0.000000e+00> : vector<64x384xf32>
    %9 = tpu.matmul %7, %8, %cst_8 {dimension_numbers = #tpu.dot_dimension_numbers<[1], [0], [0], [1], [0, 0, 1, 1], [], []>} : vector<64x1536xf32>, vector<1536x384xf32>, vector<64x384xf32> -> vector<64x384xf32>
    %c0_9 = arith.constant 0 : index
    %c0_10 = arith.constant 0 : index
    %10 = vector.load %arg5[%c0_9, %c0_10] : memref<1x384xf32, #tpu.memory_space<vmem>>, vector<1x384xf32>
    %11 = vector.broadcast %10 : vector<1x384xf32> to vector<64x384xf32>
    %12 = arith.addf %9, %11 : vector<64x384xf32>
    %c0_11 = arith.constant 0 : index
    %c0_12 = arith.constant 0 : index
    %13 = vector.load %arg6[%c0_11, %c0_12] : memref<64x384xf32, #tpu.memory_space<vmem>>, vector<64x384xf32>
    tpu.vector_store %arg6[%c0_11, %c0_12], %12 {strides = array<i32>} : memref<64x384xf32, #tpu.memory_space<vmem>>, vector<64x384xf32>,
    return
  }
  func.func @transform_0(%arg0: i32) -> (i32, i32) {
    %c0_i32 = arith.constant 0 : i32
    %c0_i32_0 = arith.constant 0 : i32
    return %arg0, %c0_i32 : i32, i32
  }
  func.func @transform_1(%arg0: i32) -> (i32, i32) {
    %c0_i32 = arith.constant 0 : i32
    %c0_i32_0 = arith.constant 0 : i32
    %c0_i32_1 = arith.constant 0 : i32
    return %c0_i32, %c0_i32_0 : i32, i32
  }
  func.func @transform_2(%arg0: i32) -> (i32, i32) {
    %c0_i32 = arith.constant 0 : i32
    %c0_i32_0 = arith.constant 0 : i32
    %c0_i32_1 = arith.constant 0 : i32
    return %c0_i32, %c0_i32_0 : i32, i32
  }
  func.func @transform_3(%arg0: i32) -> (i32, i32) {
    %c0_i32 = arith.constant 0 : i32
    %c0_i32_0 = arith.constant 0 : i32
    %c0_i32_1 = arith.constant 0 : i32
    return %c0_i32, %c0_i32_0 : i32, i32
  }
  func.func @transform_4(%arg0: i32) -> (i32, i32) {
    %c0_i32 = arith.constant 0 : i32
    %c0_i32_0 = arith.constant 0 : i32
    %c0_i32_1 = arith.constant 0 : i32
    return %c0_i32, %c0_i32_0 : i32, i32
  }
  func.func @transform_5(%arg0: i32) -> (i32, i32) {
    %c0_i32 = arith.constant 0 : i32
    %c0_i32_0 = arith.constant 0 : i32
    return %arg0, %c0_i32 : i32, i32
  }
}

</mosaic_0001>

<bundles_post_ra>
// kernel: tpu_custom_call.1
= control target key start
LH: loop header
LB: loop body
LE: loop exit
PB: predicated region body
PF: predicated region fallthrough
CT: control target
= control target key end

     0   :  { %10 = vsyncpa [#allocation3], 0  ;;  %s8237_s0 = inlined_call_operand.hbm [shape: f32[256,384], index: 0, kind: input, shape index: {}]   ;;  %s8238_s1 = inlined_call_operand.hbm [shape: f32[384,1536], index: 1, kind: input, shape index: {}]   ;;  %s8239_s2 = inlined_call_operand.hbm [shape: f32[1,1536], index: 2, kind: input, shape index: {}]   ;;  %s8240_s3 = inlined_call_operand.hbm [shape: f32[1536,384], index: 3, kind: input, shape index: {}]   ;;  %s8241_s4 = inlined_call_operand.hbm [shape: f32[1,384], index: 4, kind: input, shape index: {}]   ;;  %s8242_s5 = inlined_call_operand.hbm [shape: f32[256,384], index: 5, kind: output, shape index: {}]  }
   0x1   :  { %12 = vsyncpa [#allocation3 + $0x1], 0 }
   0x2   :  { %13 = vsyncpa [#allocation6], 0 }
   0x3   :  { %14 = vsyncpa [#allocation9], 0 }
   0x4   :  { %15 = vsyncpa [#allocation4], 0 }
   0x5   :  { %17 = vsyncpa [#allocation4 + $0x1], 0  ;;  %s6671_s18 = smov 0   ;;  %s6673_s19 = smov 0  }
   0x6   :  { %s6675_s20 = smov 0   ;;  %s6677_s21 = smov 0  }
   0x7 LB: > { %s6692_s22 = sadd.s32 4294967295, %s6626_s21   ;;  %s4467_s23 = sadd.s32 4294967294, %s6626_s21   ;;  %s6626_s21 = sphi %s6677_s21, %s8364_s21   ;;  %s6622_s20 = sphi %s6675_s20, %s8363_s20   ;;  %s6618_s19 = sphi %s6673_s19, %s8362_s19   ;;  %s6614_s18 = sphi %s6671_s18, %s8361_s18  }
   0x8   : > { %p43_p0 = scmp.ne.s32.totalorder %s6618_s19, %s6614_s18  ;;  %p8243_p1 = scmp.eq.s32.totalorder %s6692_s22, 0 }
   0x9   : > { %p157_p3 = scmp.eq.s32.totalorder %s4467_s23, 3  ;;  %p4468_p5 = scmp.ge.s32.totalorder %s6626_s21, 1 }
   0xa   : > { %p6701_p4 = por %p8243_p1, %p43_p0  ;;  %p164_p7 = scmp.lt.s32.totalorder %s6626_s21, 5 }
   0xb   : > { %p6706_p6 = por %p157_p3, %p43_p0  ;;  %s6628_s27 = smov [#allocation5]  }
   0xc   : > { %s8285_s24 = scalar_select %p6701_p4, 1, 0 }
   0xd   : > { %s8286_s25 = scalar_select %p6706_p6, 1, 0 }
   0xe   : > { %p6711_p8 = pnand %p4468_p5, %p164_p7  ;;  %s176_s28 = sshll.u32 %s6628_s27, 4  ;;  %s177_s28 = int_to_ptr.vmem [resolvable:$true] %s176_s28 }
   0xf   : > { %s6629_s30 = smov [#allocation8]   ;;  %s6410_s9 = scalar_lea.hbm %s8238_s1, 73728 }
  0x10   : > { %s8287_s26 = scalar_select %p6711_p8, 1, 0 }
  0x11   : > { %p6287_p9 = pneg %p6711_p8  ;;  %s200_s6 = sshll.u32 %s6629_s30, 4  ;;  %s6723_s6 = int_to_ptr.vmem [resolvable:$true] %s200_s6 }
  0x12   : > { %p6411_p11 = scmp.ne.s32.totalorder %s8238_s1, %s6410_s9  ;;  %p6417_p3 = scmp.lt.u32.totalorder %s6410_s9, %s8238_s1 }
  0x13   : > { %p6719_p10 = pnand %p6287_p9, %p8243_p1 }
  0x15   : > { %p6733_p12 = pneg %p6719_p10 }
  0x17   : > { %p6413_p13 = pnand %p6733_p12, %p6411_p11 }
  0x19   : > { %p6414_p0 = pneg %p6413_p13 }
  0x1b   : > { %p6419_p5 = pnand %p6417_p3, %p6414_p0 }
  0x1d   : > { %6422 = shalt.err (!%p6419_p5)
}
  0x1e   : > { %s6423_s15 = scalar_lea.vmem %s177_s28, 73728  ;;  %p6431_p2 = scmp.lt.s32.totalorder %s177_s28, %s177_s28 }
  0x1f   : > { %p6424_p7 = scmp.ne.s32.totalorder %s177_s28, %s6423_s15  ;;  %p6432_p6 = scmp.lt.s32.totalorder %s6423_s15, %s6423_s15 }
  0x21   : > { %p6426_p9 = pnand %p6424_p7, %p6733_p12  ;;  %p6433_p4 = por %p6432_p6, %p6431_p2 }
  0x23   : > { %p6427_p1 = pneg %p6426_p9 }
  0x25   : > { %p6434_p8 = pnand %p6433_p4, %p6427_p1 }
  0x27   : > { %6437 = shalt.err (!%p6434_p8)
}
  0x28   : > { %s6630_s16 = smov 1536   ;;  %s6631_s17 = smov 96  }
  0x29   : > { %6290 = dma.hbm_to_vmem [thread:$0]  (!%p6719_p10), %s8238_s1, 73728, %s177_s28, [#allocation6], %s6630_s16, %s6630_s16, %s6631_s17  }
  0x2a   : > { %s6438_s8 = scalar_lea.hbm %s8240_s3, 73728 }
  0x2b   : > { %p6439_p11 = scmp.ne.s32.totalorder %s8240_s3, %s6438_s8  ;;  %p6445_p4 = scmp.lt.u32.totalorder %s6438_s8, %s8240_s3 }
  0x2d   : > { %p6441_p1 = pnand %p6439_p11, %p6733_p12 }
  0x2f   : > { %p6442_p2 = pneg %p6441_p1 }
  0x31   : > { %p6447_p6 = pnand %p6445_p4, %p6442_p2 }
  0x33   : > { %6450 = shalt.err (!%p6447_p6)
}
  0x34   : > { %s6451_s28 = scalar_lea.vmem %s6723_s6, 73728  ;;  %p6459_p3 = scmp.lt.s32.totalorder %s6723_s6, %s6723_s6 }
  0x35   : > { %p6452_p8 = scmp.ne.s32.totalorder %s6723_s6, %s6451_s28  ;;  %p6460_p5 = scmp.lt.s32.totalorder %s6451_s28, %s6451_s28 }
  0x37   : > { %p6454_p13 = pnand %p6452_p8, %p6733_p12  ;;  %p6461_p7 = por %p6460_p5, %p6459_p3 }
  0x39   : > { %p6455_p0 = pneg %p6454_p13 }
  0x3b   : > { %p6462_p9 = pnand %p6461_p7, %p6455_p0 }
  0x3d   : > { %6465 = shalt.err (!%p6462_p9)
}
  0x3e   : > { %s8246_s14 = smov 384   ;;  %s6633_s15 = smov 24  }
  0x3f   : > { %6296 = dma.hbm_to_vmem [thread:$0]  (!%p6719_p10), %s8240_s3, 73728, %s6723_s6, [#allocation9], %s8246_s14, %s8246_s14, %s6633_s15  }
  0x40   : > { %s6634_s23 = smov [#allocation7]   ;;  %s6635_s30 = smov [#allocation10]  }
  0x41   : > { %s190_s27 = sshll.u32 %s6634_s23, 4  ;;  %s214_s7 = sshll.u32 %s6635_s30, 4  ;;  %s191_s27 = int_to_ptr.vmem [resolvable:$true] %s190_s27  ;;  %s6775_s7 = int_to_ptr.vmem [resolvable:$true] %s214_s7 }
  0x42   : > { %s6466_s10 = scalar_lea.hbm %s8239_s2, 192 }
  0x43   : > { %p6467_p11 = scmp.ne.s32.totalorder %s8239_s2, %s6466_s10  ;;  %p6473_p4 = scmp.lt.u32.totalorder %s6466_s10, %s8239_s2 }
  0x45   : > { %p6469_p1 = pnand %p6467_p11, %p6733_p12 }
  0x47   : > { %p6470_p2 = pneg %p6469_p1 }
  0x49   : > { %p6475_p6 = pnand %p6473_p4, %p6470_p2 }
  0x4b   : > { %6478 = shalt.err (!%p6475_p6)
}
  0x4c   : > { %s6479_s16 = scalar_lea.vmem %s191_s27, 192  ;;  %p6487_p3 = scmp.lt.s32.totalorder %s191_s27, %s191_s27 }
  0x4d   : > { %p6480_p8 = scmp.ne.s32.totalorder %s191_s27, %s6479_s16  ;;  %p6488_p5 = scmp.lt.s32.totalorder %s6479_s16, %s6479_s16 }
  0x4f   : > { %p6482_p13 = pnand %p6480_p8, %p6733_p12  ;;  %p6489_p7 = por %p6488_p5, %p6487_p3 }
  0x51   : > { %p6483_p0 = pneg %p6482_p13 }
  0x53   : > { %p6490_p9 = pnand %p6489_p7, %p6483_p0 }
  0x55   : > { %6493 = shalt.err (!%p6490_p9)
}
  0x56   : > { %6293 = dma.hbm_to_vmem [thread:$0]  (!%p6719_p10), %s8239_s2, 192, %s191_s27, [#allocation6]  }
  0x57   : > { %s6494_s9 = scalar_lea.hbm %s8241_s4, 48 }
  0x58   : > { %p6495_p11 = scmp.ne.s32.totalorder %s8241_s4, %s6494_s9  ;;  %p6501_p4 = scmp.lt.u32.totalorder %s6494_s9, %s8241_s4 }
  0x5a   : > { %p6497_p1 = pnand %p6495_p11, %p6733_p12 }
  0x5c   : > { %p6498_p2 = pneg %p6497_p1 }
  0x5e   : > { %p6503_p6 = pnand %p6501_p4, %p6498_p2 }
  0x60   : > { %6506 = shalt.err (!%p6503_p6)
}
  0x61   : > { %s6507_s27 = scalar_lea.vmem %s6775_s7, 48  ;;  %s6514_s6 = scalar_lea.vmem %s6775_s7, 64 }
  0x62   : > { %p6508_p8 = scmp.ne.s32.totalorder %s6775_s7, %s6507_s27  ;;  %p6515_p3 = scmp.lt.s32.totalorder %s6775_s7, %s6775_s7 }
  0x63   : > { %p6516_p5 = scmp.lt.s32.totalorder %s6514_s6, %s6507_s27 }
  0x64   : > { %p6510_p13 = pnand %p6508_p8, %p6733_p12 }
  0x65   : > { %p6517_p7 = por %p6516_p5, %p6515_p3 }
  0x66   : > { %p6511_p0 = pneg %p6510_p13 }
  0x68   : > { %p6518_p9 = pnand %p6517_p7, %p6511_p0 }
  0x6a   : > { %6521 = shalt.err (!%p6518_p9)
}
  0x6b   : > { %6299 = dma.hbm_to_vmem [thread:$0]  (!%p6719_p10), %s8241_s4, 48, %s6775_s7, [#allocation9]  }
  0x6c   : > { %s6820_s12 = sadd.s32 1, %s6626_s21   ;;  %s30_s23 = sadd.s32 1, %s6622_s20 }
  0x6d   : > { %s27_s29 = ssub.s32 %s6626_s21, %s6820_s12  ;;  %p37_p11 = scmp.ne.s32.totalorder %s6622_s20, %s6618_s19 }
  0x6e   : > { %p28_p12 = scmp.eq.s32.totalorder %s27_s29, 0  ;;  %p38_p1 = scmp.eq.s32.totalorder %s6626_s21, 0 }
  0x6f   : > { %p8290_p4 = scmp.eq.s32.totalorder %s6692_s22, 3  ;;  %p6312_p8 = scmp.lt.s32.totalorder %s6626_s21, 4 }
  0x70   : > { %s6829_s30 = scalar_select %p28_p12, %s6622_s20, %s30_s23  }
  0x71   : > { %p39_p2 = por %p38_p1, %p37_p11  ;;  %p6833_p6 = por %p8290_p4, %p37_p11 }
  0x72   : > { %s225_s9 = sand.u32 1, %s6622_s20   ;;  %s6264_s7 = smul.u32 3072, %s6626_s21 }
  0x73   : > { %s6263_s10 = smul.u32 192, %s225_s9  ;;  %p6840_p10 = pnand %p6312_p8, %p39_p2 }
  0x74   : > { %s6847_s27 = scalar_lea.hbm %s8237_s0, %s6264_s7  ;;  %s6851_s17 = scalar_lea.sflag [#allocation3], %s225_s9 }
  0x75   : > { %s229_s6 = scalar_lea.vmem [#allocation2], %s6263_s10  ;;  %s6522_s29 = scalar_lea.hbm %s6847_s27, 3072 }
  0x76   : > { %s237_s16 = sshll.u32 %s229_s6, 4  ;;  %p6523_p13 = scmp.ne.s32.totalorder %s6847_s27, %s6522_s29  ;;  %s6849_s16 = int_to_ptr.vmem [resolvable:$true] %s237_s16 }
  0x77   : > { %p6524_p0 = pneg %p6840_p10  ;;  %s6527_s13 = scalar_lea.hbm %s8237_s0, 12288 }
  0x78   : > { %p6528_p7 = scmp.lt.u32.totalorder %s6847_s27, %s8237_s0  ;;  %p6529_p9 = scmp.lt.u32.totalorder %s6527_s13, %s6522_s29 }
  0x79   : > { %p6525_p3 = pnand %p6524_p0, %p6523_p13  ;;  %p6531_p11 = scmp.lt.u32.totalorder %s6522_s29, %s6847_s27 }
  0x7a   : > { %p6530_p12 = por %p6529_p9, %p6528_p7 }
  0x7b   : > { %p6526_p5 = pneg %p6525_p3 }
  0x7c   : > { %p6532_p1 = por %p6531_p11, %p6530_p12 }
  0x7e   : > { %p6533_p2 = pnand %p6532_p1, %p6526_p5 }
  0x80   : > { %6536 = shalt.err (!%p6533_p2)
}
  0x81   : > { %s6537_s9 = scalar_lea.vmem %s6849_s16, 3072  ;;  %s6636_s10 = smov [#allocation2]  }
  0x82   : > { %p6538_p4 = scmp.ne.s32.totalorder %s6849_s16, %s6537_s9  ;;  %s6542_s6 = sshll.u32 %s6636_s10, 4  ;;  %s6543_s6 = int_to_ptr.vmem [resolvable:$false] %s6542_s6 }
  0x83   : > { %s6544_s14 = scalar_lea.vmem %s6543_s6, 6144  ;;  %p6545_p3 = scmp.lt.s32.totalorder %s6849_s16, %s6543_s6 }
  0x84   : > { %p6540_p8 = pnand %p6538_p4, %p6524_p0  ;;  %p6546_p7 = scmp.lt.s32.totalorder %s6544_s14, %s6537_s9 }
  0x86   : > { %p6541_p13 = pneg %p6540_p8  ;;  %p6547_p9 = por %p6546_p7, %p6545_p3 }
  0x88   : > { %p6548_p12 = pnand %p6547_p9, %p6541_p13 }
  0x8a   : > { %6551 = shalt.err (!%p6548_p12)
}
  0x8b   : > { %s8293_s29 = smov 384   ;;  %p8294_p0 = scmp.ne.s32.totalorder %s8287_s26, 0 }
  0x8c   : > { %6303 = dma.hbm_to_vmem [thread:$0]  (!%p6840_p10), %s6847_s27, 3072, %s6849_s16, %s6851_s17, %s8293_s29, %s8293_s29, %s6633_s15  }
  0x8d   : > { %249 = sbr.rel (%p8294_p0) target bundleno = 1089 (0x441), region = 40 }
  0x94   : > { %s6885_s23 = sand.u32 1, %s6618_s19   ;;  %p8295_p5 = scmp.ne.s32.totalorder %s8285_s24, 0 }
  0x95   : > { %s6265_s7 = smul.u32 192, %s6885_s23  ;;  %s252_s13 = scalar_lea.sflag [#allocation3], %s6885_s23 }
  0x97   : > { %s6891_s11 = scalar_lea.vmem [#allocation2], %s6265_s7 }
  0x98   : > { %6597 = dma.done.wait (%p8295_p5), %s252_s13, 3072  }
  0x99   : > { %6599 = vsyncadd (%p8295_p5), %s252_s13, 4294964224  ;;  %p8296_p10 = scmp.eq.s32.totalorder %s6692_s22, 0 }
  0x9b   : > { %6601 = dma.done.wait (%p8296_p10), [#allocation6], 73920   ;;  %p8297_p11 = pmov %p8296_p10 }
  0x9c   : > { %p8298_p1 = pmov %p8296_p10 }
  0x9d   : > { %6603 = vsyncadd (%p8297_p11), [#allocation6], 4294893376 }
  0x9e   : > { %6605 = dma.done.wait (%p8298_p1), [#allocation9], 73776   ;;  %p8299_p2 = pmov %p8298_p1 }
  0x9f   : > { %v325_v0 = vld [vmem:[#allocation5 + $0x8] sm:$0xff]  ;;  %v324_v2 = vld [vmem:[#allocation5] sm:$0xff]  ;;  %s8157_s24 = scalar_lea.vmem [#allocation11], %s6265_s7  ;;  %s6266_s26 = smul.u32 3072, %s6692_s22 }
  0xa0   : > { %6607 = vsyncadd (%p8299_p2), [#allocation9], 4294893520  ;;  %v337_v1 = vld [vmem:[#allocation5 + $0x68] sm:$0xff]  ;;  %v336_v4 = vld [vmem:[#allocation5 + $0x60] sm:$0xff]  ;;  %s4356_s15 = sshll.u32 %s8157_s24, 4  ;;  %s4342_s22 = scalar_lea.sflag [#allocation4], %s6885_s23  ;;  %s8192_s15 = int_to_ptr.vmem [resolvable:$true] %s4356_s15 }
  0xa1   : > { %v4823_v3 = vpack.c.bf16 %v337_v1, %v325_v0  ;;  %v349_v5 = vld [vmem:[#allocation5 + $0xc8] sm:$0xff]  ;;  %v4825_v7 = vpack.c.bf16 %v336_v4, %v324_v2  ;;  %v348_v9 = vld [vmem:[#allocation5 + $0xc0] sm:$0xff]  ;;  %s8190_s17 = scalar_lea.hbm %s8242_s5, %s6266_s26  ;;  %s6552_s28 = scalar_lea.vmem %s8192_s15, 3072 }
  0xa2   : > { %v361_v6 = vld [vmem:[#allocation5 + $0x128] sm:$0xff]  ;;  %v360_v10 = vld [vmem:[#allocation5 + $0x120] sm:$0xff]  ;;  %p6553_p4 = scmp.ne.s32.totalorder %s8192_s15, %s6552_s28  ;;  %s6638_s9 = smov [#allocation11]  }
  0xa3   : > { %v4827_v8 = vpack.c.bf16 %v361_v6, %v349_v5  ;;  %v373_v11 = vld [vmem:[#allocation5 + $0x188] sm:$0xff]  ;;  %4824 = vmatprep.subr.bf16.mxu1 %v4823_v3  ;;  %v4829_v13 = vpack.c.bf16 %v360_v10, %v348_v9  ;;  %v372_v15 = vld [vmem:[#allocation5 + $0x180] sm:$0xff]  ;;  %s6556_s10 = sshll.u32 %s6638_s9, 4  ;;  %s6557_s10 = int_to_ptr.vmem [resolvable:$false] %s6556_s10 }
  0xa4   : > { %v385_v12 = vld [vmem:[#allocation5 + $0x1e8] sm:$0xff]  ;;  %4826 = vmatpush1.bf16.msra.mxu1 %v4825_v7  ;;  %v384_v16 = vld [vmem:[#allocation5 + $0x1e0] sm:$0xff]  ;;  %p6554_p8 = pnand %p6553_p4, %p6833_p6  ;;  %s6558_s6 = scalar_lea.vmem %s6557_s10, 6144 }
  0xa5   : > { %4828 = vmatprep.subr.bf16.mxu1 %v4827_v8  ;;  %v4831_v14 = vpack.c.bf16 %v385_v12, %v373_v11  ;;  %v397_v17 = vld [vmem:[#allocation5 + $0x248] sm:$0xff]  ;;  %v4833_v19 = vpack.c.bf16 %v384_v16, %v372_v15  ;;  %v396_v21 = vld [vmem:[#allocation5 + $0x240] sm:$0xff]  ;;  %p6559_p3 = scmp.lt.s32.totalorder %s8192_s15, %s6557_s10  ;;  %p6560_p7 = scmp.lt.s32.totalorder %s6558_s6, %s6552_s28 }
  0xa6   : > { %v409_v18 = vld [vmem:[#allocation5 + $0x2a8] sm:$0xff]  ;;  %v408_v22 = vld [vmem:[#allocation5 + $0x2a0] sm:$0xff]  ;;  %p6555_p13 = pneg %p6554_p8 }
  0xa7   : > { %v4835_v20 = vpack.c.bf16 %v409_v18, %v397_v17  ;;  %v421_v23 = vld [vmem:[#allocation5 + $0x308] sm:$0xff]  ;;  %v4837_v25 = vpack.c.bf16 %v408_v22, %v396_v21  ;;  %v420_v27 = vld [vmem:[#allocation5 + $0x300] sm:$0xff]  ;;  %p6561_p9 = por %p6560_p7, %p6559_p3 }
  0xa8   : > { %4830 = vmatpush1.bf16.msra.mxu1 %v4829_v13  ;;  %v433_v24 = vld [vmem:[#allocation5 + $0x368] sm:$0xff]  ;;  %v432_v28 = vld [vmem:[#allocation5 + $0x360] sm:$0xff] }
  0xa9   : > { %4832 = vmatprep.subr.bf16.mxu1 %v4831_v14  ;;  %v4839_v26 = vpack.c.bf16 %v433_v24, %v421_v23  ;;  %v445_v29 = vld [vmem:[#allocation5 + $0x3c8] sm:$0xff]  ;;  %v4841_v31 = vpack.c.bf16 %v432_v28, %v420_v27  ;;  %v444_v33 = vld [vmem:[#allocation5 + $0x3c0] sm:$0xff]  ;;  %p6562_p12 = pnand %p6561_p9, %p6555_p13 }
  0xaa   : > { %v457_v30 = vld [vmem:[#allocation5 + $0x428] sm:$0xff]  ;;  %v456_v34 = vld [vmem:[#allocation5 + $0x420] sm:$0xff] }
  0xab   : > { %v4843_v32 = vpack.c.bf16 %v457_v30, %v445_v29  ;;  %v469_v35 = vld [vmem:[#allocation5 + $0x488] sm:$0xff]  ;;  %v4845_v37 = vpack.c.bf16 %v456_v34, %v444_v33  ;;  %v328_v40 = vld [vmem:[#allocation5 + $0x20] sm:$0xff] }
  0xac   : > { %4834 = vmatpush1.bf16.msra.mxu1 %v4833_v19  ;;  %v481_v36 = vld [vmem:[#allocation5 + $0x4e8] sm:$0xff]  ;;  %v468_v42 = vld [vmem:[#allocation5 + $0x480] sm:$0xff] }
  0xad   : > { %4836 = vmatprep.subr.bf16.mxu1 %v4835_v20  ;;  %v329_v38 = vld [vmem:[#allocation5 + $0x28] sm:$0xff]  ;;  %v4847_v41 = vpack.c.bf16 %v481_v36, %v469_v35  ;;  %v480_v43 = vld [vmem:[#allocation5 + $0x4e0] sm:$0xff] }
  0xae   : > { %v341_v39 = vld [vmem:[#allocation5 + $0x88] sm:$0xff]  ;;  %v340_v45 = vld [vmem:[#allocation5 + $0x80] sm:$0xff]  ;;  %v4849_v53 = vpack.c.bf16 %v480_v43, %v468_v42 }
  0xaf   : > { %v5015_v44 = vpack.c.bf16 %v341_v39, %v329_v38  ;;  %v493_v46 = vld [vmem:[#allocation5 + $0x548] sm:$0xff]  ;;  %v5017_v48 = vpack.c.bf16 %v340_v45, %v328_v40  ;;  %v352_v52 = vld [vmem:[#allocation5 + $0xe0] sm:$0xff] }
  0xb0   : > { %4838 = vmatpush1.bf16.msra.mxu1 %v4837_v25  ;;  %v505_v47 = vld [vmem:[#allocation5 + $0x5a8] sm:$0xff]  ;;  %v364_v55 = vld [vmem:[#allocation5 + $0x140] sm:$0xff] }
  0xb1   : > { %4840 = vmatprep.subr.bf16.mxu1 %v4839_v26  ;;  %v353_v49 = vld [vmem:[#allocation5 + $0xe8] sm:$0xff]  ;;  %5016 = vmatprep.subr.bf16.mxu0 %v5015_v44  ;;  %v4851_v56 = vpack.c.bf16 %v505_v47, %v493_v46  ;;  %v492_v57 = vld [vmem:[#allocation5 + $0x540] sm:$0xff]  ;;  %v5021_v60 = vpack.c.bf16 %v364_v55, %v352_v52 }
  0xb2   : > { %v365_v50 = vld [vmem:[#allocation5 + $0x148] sm:$0xff]  ;;  %5018 = vmatpush1.bf16.msra.mxu0 %v5017_v48  ;;  %v504_v58 = vld [vmem:[#allocation5 + $0x5a0] sm:$0xff] }
  0xb3   : > { %v6906_v51 = vld [vmem:[%s6891_s11 + $0x8] sm:$0xff]  ;;  %v5019_v54 = vpack.c.bf16 %v365_v50, %v353_v49  ;;  %v376_v1 = vld [vmem:[#allocation5 + $0x1a0] sm:$0xff]  ;;  %v4853_v3 = vpack.c.bf16 %v504_v58, %v492_v57 }
  0xb4   : > { %4842 = vmatpush1.bf16.msra.mxu1 %v4841_v31  ;;  %v517_v59 = vld [vmem:[#allocation5 + $0x608] sm:$0xff]  ;;  %1028 = vmatprep.mubr.f32.mxu1 %v6906_v51  ;;  %v388_v2 = vld [vmem:[#allocation5 + $0x200] sm:$0xff] }
  0xb5   : > { %4844 = vmatprep.subr.bf16.mxu1 %v4843_v32  ;;  %v529_v61 = vld [vmem:[#allocation5 + $0x668] sm:$0xff]  ;;  %5020 = vmatprep.subr.bf16.mxu0 %v5019_v54  ;;  %v516_v4 = vld [vmem:[#allocation5 + $0x600] sm:$0xff]  ;;  %v5025_v6 = vpack.c.bf16 %v388_v2, %v376_v1 }
  0xb6   : > { %v377_v62 = vld [vmem:[#allocation5 + $0x1a8] sm:$0xff]  ;;  %1480 = vmatprep.mubr.f32.mxu0 %v6906_v51  ;;  %v528_v5 = vld [vmem:[#allocation5 + $0x660] sm:$0xff]  ;;  %5022 = vmatpush1.bf16.msra.mxu0 %v5021_v60  ;;  %v4855_v7 = vpack.c.bf16 %v529_v61, %v517_v59 }
  0xb7   : > { %v389_v63 = vld [vmem:[#allocation5 + $0x208] sm:$0xff]  ;;  %v400_v13 = vld [vmem:[#allocation5 + $0x260] sm:$0xff]  ;;  %v4857_v15 = vpack.c.bf16 %v528_v5, %v516_v4 }
  0xb8   : > { %4846 = vmatpush1.bf16.msra.mxu1 %v4845_v37  ;;  %v5023_v0 = vpack.c.bf16 %v389_v63, %v377_v62  ;;  %v541_v8 = vld [vmem:[#allocation5 + $0x6c8] sm:$0xff]  ;;  %v412_v14 = vld [vmem:[#allocation5 + $0x2c0] sm:$0xff] }
  0xb9   : > { %4848 = vmatprep.subr.bf16.mxu1 %v4847_v41  ;;  %v401_v9 = vld [vmem:[#allocation5 + $0x268] sm:$0xff]  ;;  %v540_v16 = vld [vmem:[#allocation5 + $0x6c0] sm:$0xff]  ;;  %v5029_v17 = vpack.c.bf16 %v412_v14, %v400_v13 }
  0xba   : > { %5024 = vmatprep.subr.bf16.mxu0 %v5023_v0  ;;  %v413_v10 = vld [vmem:[#allocation5 + $0x2c8] sm:$0xff]  ;;  %v552_v20 = vld [vmem:[#allocation5 + $0x720] sm:$0xff] }
  0xbb   : > { %v553_v11 = vld [vmem:[#allocation5 + $0x728] sm:$0xff]  ;;  %v5027_v12 = vpack.c.bf16 %v413_v10, %v401_v9  ;;  %5026 = vmatpush1.bf16.msra.mxu0 %v5025_v6  ;;  %v424_v22 = vld [vmem:[#allocation5 + $0x320] sm:$0xff]  ;;  %v4861_v27 = vpack.c.bf16 %v552_v20, %v540_v16 }
  0xbc   : > { %4850 = vmatpush1.bf16.msra.mxu1 %v4849_v53  ;;  %v425_v18 = vld [vmem:[#allocation5 + $0x328] sm:$0xff]  ;;  %v4859_v19 = vpack.c.bf16 %v553_v11, %v541_v8  ;;  %v436_v26 = vld [vmem:[#allocation5 + $0x380] sm:$0xff] }
  0xbd   : > { %4852 = vmatprep.subr.bf16.mxu1 %v4851_v56  ;;  %5028 = vmatprep.subr.bf16.mxu0 %v5027_v12  ;;  %v437_v21 = vld [vmem:[#allocation5 + $0x388] sm:$0xff]  ;;  %v564_v28 = vld [vmem:[#allocation5 + $0x780] sm:$0xff]  ;;  %v5033_v29 = vpack.c.bf16 %v436_v26, %v424_v22 }
  0xbe   : > { %v565_v23 = vld [vmem:[#allocation5 + $0x788] sm:$0xff]  ;;  %v5031_v25 = vpack.c.bf16 %v437_v21, %v425_v18  ;;  %v576_v33 = vld [vmem:[#allocation5 + $0x7e0] sm:$0xff] }
  0xbf   : > { %v577_v24 = vld [vmem:[#allocation5 + $0x7e8] sm:$0xff]  ;;  %5030 = vmatpush1.bf16.msra.mxu0 %v5029_v17  ;;  %v448_v35 = vld [vmem:[#allocation5 + $0x3e0] sm:$0xff]  ;;  %v4865_v41 = vpack.c.bf16 %v576_v33, %v564_v28 }
  0xc0   : > { %4854 = vmatpush1.bf16.msra.mxu1 %v4853_v3  ;;  %v449_v30 = vld [vmem:[#allocation5 + $0x3e8] sm:$0xff]  ;;  %v4863_v32 = vpack.c.bf16 %v577_v24, %v565_v23  ;;  %5032 = vmatprep.subr.bf16.mxu0 %v5031_v25  ;;  %v460_v36 = vld [vmem:[#allocation5 + $0x440] sm:$0xff] }
  0xc1   : > { %4856 = vmatprep.subr.bf16.mxu1 %v4855_v7  ;;  %v461_v31 = vld [vmem:[#allocation5 + $0x448] sm:$0xff]  ;;  %v588_v42 = vld [vmem:[#allocation5 + $0x840] sm:$0xff]  ;;  %v5037_v43 = vpack.c.bf16 %v460_v36, %v448_v35 }
  0xc2   : > { %v5035_v34 = vpack.c.bf16 %v461_v31, %v449_v30  ;;  %v589_v37 = vld [vmem:[#allocation5 + $0x848] sm:$0xff]  ;;  %v600_v45 = vld [vmem:[#allocation5 + $0x8a0] sm:$0xff] }
  0xc3   : > { %v601_v38 = vld [vmem:[#allocation5 + $0x8a8] sm:$0xff]  ;;  %5034 = vmatpush1.bf16.msra.mxu0 %v5033_v29  ;;  %v472_v47 = vld [vmem:[#allocation5 + $0x4a0] sm:$0xff]  ;;  %v4869_v54 = vpack.c.bf16 %v600_v45, %v588_v42 }
  0xc4   : > { %4858 = vmatpush1.bf16.msra.mxu1 %v4857_v15  ;;  %v473_v39 = vld [vmem:[#allocation5 + $0x4a8] sm:$0xff]  ;;  %v4867_v44 = vpack.c.bf16 %v601_v38, %v589_v37  ;;  %5036 = vmatprep.subr.bf16.mxu0 %v5035_v34  ;;  %v484_v48 = vld [vmem:[#allocation5 + $0x500] sm:$0xff] }
  0xc5   : > { %4860 = vmatprep.subr.bf16.mxu1 %v4859_v19  ;;  %v485_v40 = vld [vmem:[#allocation5 + $0x508] sm:$0xff]  ;;  %v612_v55 = vld [vmem:[#allocation5 + $0x900] sm:$0xff]  ;;  %v5041_v57 = vpack.c.bf16 %v484_v48, %v472_v47 }
  0xc6   : > { %v5039_v46 = vpack.c.bf16 %v485_v40, %v473_v39  ;;  %v613_v49 = vld [vmem:[#allocation5 + $0x908] sm:$0xff]  ;;  %v624_v56 = vld [vmem:[#allocation5 + $0x960] sm:$0xff] }
  0xc7   : > { %v625_v50 = vld [vmem:[#allocation5 + $0x968] sm:$0xff]  ;;  %5038 = vmatpush1.bf16.msra.mxu0 %v5037_v43  ;;  %v496_v61 = vld [vmem:[#allocation5 + $0x560] sm:$0xff]  ;;  %v4873_v2 = vpack.c.bf16 %v624_v56, %v612_v55 }
  0xc8   : > { %4862 = vmatpush1.bf16.msra.mxu1 %v4861_v27  ;;  %v497_v52 = vld [vmem:[#allocation5 + $0x568] sm:$0xff]  ;;  %v4871_v58 = vpack.c.bf16 %v625_v50, %v613_v49  ;;  %5040 = vmatprep.subr.bf16.mxu0 %v5039_v46  ;;  %v508_v62 = vld [vmem:[#allocation5 + $0x5c0] sm:$0xff] }
  0xc9   : > { %4864 = vmatprep.subr.bf16.mxu1 %v4863_v32  ;;  %v509_v53 = vld [vmem:[#allocation5 + $0x5c8] sm:$0xff]  ;;  %v636_v3 = vld [vmem:[#allocation5 + $0x9c0] sm:$0xff]  ;;  %v5045_v5 = vpack.c.bf16 %v508_v62, %v496_v61 }
  0xca   : > { %v637_v59 = vld [vmem:[#allocation5 + $0x9c8] sm:$0xff]  ;;  %v5043_v60 = vpack.c.bf16 %v509_v53, %v497_v52  ;;  %v648_v4 = vld [vmem:[#allocation5 + $0xa20] sm:$0xff] }
  0xcb   : > { %v649_v63 = vld [vmem:[#allocation5 + $0xa28] sm:$0xff]  ;;  %5042 = vmatpush1.bf16.msra.mxu0 %v5041_v57  ;;  %v520_v9 = vld [vmem:[#allocation5 + $0x620] sm:$0xff]  ;;  %v4877_v14 = vpack.c.bf16 %v648_v4, %v636_v3  ;;  %v6922_v3 = vld [vmem:[%s6891_s11 + $0x38] sm:$0xff] }
  0xcc   : > { %4866 = vmatpush1.bf16.msra.mxu1 %v4865_v41  ;;  %v521_v0 = vld [vmem:[#allocation5 + $0x628] sm:$0xff]  ;;  %v4875_v6 = vpack.c.bf16 %v649_v63, %v637_v59  ;;  %5044 = vmatprep.subr.bf16.mxu0 %v5043_v60  ;;  %v532_v10 = vld [vmem:[#allocation5 + $0x680] sm:$0xff] }
  0xcd   : > { %4868 = vmatprep.subr.bf16.mxu1 %v4867_v44  ;;  %v533_v1 = vld [vmem:[#allocation5 + $0x688] sm:$0xff]  ;;  %v660_v15 = vld [vmem:[#allocation5 + $0xa80] sm:$0xff]  ;;  %v5049_v17 = vpack.c.bf16 %v532_v10, %v520_v9 }
  0xce   : > { %v661_v7 = vld [vmem:[#allocation5 + $0xa88] sm:$0xff]  ;;  %v5047_v8 = vpack.c.bf16 %v533_v1, %v521_v0  ;;  %v672_v16 = vld [vmem:[#allocation5 + $0xae0] sm:$0xff]  ;;  %v6919_v1 = vld [vmem:[%s6891_s11 + $0x18] sm:$0xff] }
  0xcf   : > { %v673_v11 = vld [vmem:[#allocation5 + $0xae8] sm:$0xff]  ;;  %5046 = vmatpush1.bf16.msra.mxu0 %v5045_v5  ;;  %v544_v21 = vld [vmem:[#allocation5 + $0x6e0] sm:$0xff]  ;;  %v4881_v26 = vpack.c.bf16 %v672_v16, %v660_v15  ;;  %v6927_v15 = vld [vmem:[%s6891_s11 + $0x30] sm:$0xff] }
  0xd0   : > { %4870 = vmatpush1.bf16.msra.mxu1 %v4869_v54  ;;  %v545_v12 = vld [vmem:[#allocation5 + $0x6e8] sm:$0xff]  ;;  %v4879_v18 = vpack.c.bf16 %v673_v11, %v661_v7  ;;  %5048 = vmatprep.subr.bf16.mxu0 %v5047_v8  ;;  %v556_v22 = vld [vmem:[#allocation5 + $0x740] sm:$0xff] }
  0xd1   : > { %4872 = vmatprep.subr.bf16.mxu1 %v4871_v58  ;;  %v557_v13 = vld [vmem:[#allocation5 + $0x748] sm:$0xff]  ;;  %v684_v27 = vld [vmem:[#allocation5 + $0xb40] sm:$0xff]  ;;  %v5053_v29 = vpack.c.bf16 %v556_v22, %v544_v21 }
  0xd2   : > { %v685_v19 = vld [vmem:[#allocation5 + $0xb48] sm:$0xff]  ;;  %v5051_v20 = vpack.c.bf16 %v557_v13, %v545_v12  ;;  %v696_v28 = vld [vmem:[#allocation5 + $0xba0] sm:$0xff] }
  0xd3   : > { %v697_v23 = vld [vmem:[#allocation5 + $0xba8] sm:$0xff]  ;;  %5050 = vmatpush1.bf16.msra.mxu0 %v5049_v17  ;;  %v568_v33 = vld [vmem:[#allocation5 + $0x7a0] sm:$0xff]  ;;  %v4885_v38 = vpack.c.bf16 %v696_v28, %v684_v27  ;;  %v6930_v17 = vld [vmem:[%s6891_s11 + $0x50] sm:$0xff] }
  0xd4   : > { %4874 = vmatpush1.bf16.msra.mxu1 %v4873_v2  ;;  %v569_v24 = vld [vmem:[#allocation5 + $0x7a8] sm:$0xff]  ;;  %v4883_v30 = vpack.c.bf16 %v697_v23, %v685_v19  ;;  %5052 = vmatprep.subr.bf16.mxu0 %v5051_v20  ;;  %v580_v34 = vld [vmem:[#allocation5 + $0x800] sm:$0xff] }
  0xd5   : > { %4876 = vmatprep.subr.bf16.mxu1 %v4875_v6  ;;  %v581_v25 = vld [vmem:[#allocation5 + $0x808] sm:$0xff]  ;;  %v5057_v39 = vpack.c.bf16 %v580_v34, %v568_v33  ;;  %v708_v41 = vld [vmem:[#allocation5 + $0xc00] sm:$0xff] }
  0xd6   : > { %v709_v31 = vld [vmem:[#allocation5 + $0xc08] sm:$0xff]  ;;  %v5055_v32 = vpack.c.bf16 %v581_v25, %v569_v24  ;;  %v720_v42 = vld [vmem:[#allocation5 + $0xc60] sm:$0xff] }
  0xd7   : > { %v721_v35 = vld [vmem:[#allocation5 + $0xc68] sm:$0xff]  ;;  %5054 = vmatpush1.bf16.msra.mxu0 %v5053_v29  ;;  %v592_v46 = vld [vmem:[#allocation5 + $0x860] sm:$0xff]  ;;  %v4889_v52 = vpack.c.bf16 %v720_v42, %v708_v41 }
  0xd8   : > { %4878 = vmatpush1.bf16.msra.mxu1 %v4877_v14  ;;  %v593_v36 = vld [vmem:[#allocation5 + $0x868] sm:$0xff]  ;;  %v4887_v40 = vpack.c.bf16 %v721_v35, %v709_v31  ;;  %5056 = vmatprep.subr.bf16.mxu0 %v5055_v32  ;;  %v604_v47 = vld [vmem:[#allocation5 + $0x8c0] sm:$0xff] }
  0xd9   : > { %4880 = vmatprep.subr.bf16.mxu1 %v4879_v18  ;;  %v605_v37 = vld [vmem:[#allocation5 + $0x8c8] sm:$0xff]  ;;  %v6911_v50 = vld [vmem:[%s6891_s11] sm:$0xff]  ;;  %v5061_v58 = vpack.c.bf16 %v604_v47, %v592_v46 }
  0xda   : > { %v733_v43 = vld [vmem:[#allocation5 + $0xcc8] sm:$0xff]  ;;  %v5059_v44 = vpack.c.bf16 %v605_v37, %v593_v36  ;;  %v6914_v53 = vld [vmem:[%s6891_s11 + $0x20] sm:$0xff] }
  0xdb   : > { %v745_v45 = vld [vmem:[#allocation5 + $0xd28] sm:$0xff]  ;;  %5058 = vmatpush1.bf16.msra.mxu0 %v5057_v39  ;;  %v732_v55 = vld [vmem:[#allocation5 + $0xcc0] sm:$0xff] }
  0xdc   : > { %4882 = vmatpush1.bf16.msra.mxu1 %v4881_v26  ;;  %v617_v48 = vld [vmem:[#allocation5 + $0x928] sm:$0xff]  ;;  %v4891_v54 = vpack.c.bf16 %v745_v45, %v733_v43  ;;  %v744_v56 = vld [vmem:[#allocation5 + $0xd20] sm:$0xff]  ;;  %5060 = vmatprep.subr.bf16.mxu0 %v5059_v44 }
  0xdd   : > { %4884 = vmatprep.subr.bf16.mxu1 %v4883_v30  ;;  %v629_v49 = vld [vmem:[#allocation5 + $0x988] sm:$0xff]  ;;  %v616_v61 = vld [vmem:[#allocation5 + $0x920] sm:$0xff]  ;;  %v4893_v2 = vpack.c.bf16 %v744_v56, %v732_v55 }
  0xde   : > { %v757_v57 = vld [vmem:[#allocation5 + $0xd88] sm:$0xff]  ;;  %v5063_v60 = vpack.c.bf16 %v629_v49, %v617_v48  ;;  %v628_v62 = vld [vmem:[#allocation5 + $0x980] sm:$0xff] }
  0xdf   : > { %v769_v59 = vld [vmem:[#allocation5 + $0xde8] sm:$0xff]  ;;  %v756_v5 = vld [vmem:[#allocation5 + $0xd80] sm:$0xff]  ;;  %5062 = vmatpush1.bf16.msra.mxu0 %v5061_v58  ;;  %v5065_v8 = vpack.c.bf16 %v628_v62, %v616_v61  ;;  %v6951_v58 = vld [vmem:[%s6891_s11 + $0x78] sm:$0xff] }
  0xe0   : > { %4886 = vmatpush1.bf16.msra.mxu1 %v4885_v38  ;;  %v641_v63 = vld [vmem:[#allocation5 + $0x9e8] sm:$0xff]  ;;  %v4895_v4 = vpack.c.bf16 %v769_v59, %v757_v57  ;;  %v768_v6 = vld [vmem:[#allocation5 + $0xde0] sm:$0xff]  ;;  %5064 = vmatprep.subr.bf16.mxu0 %v5063_v60  ;;  %v6954_v62 = vld [vmem:[%s6891_s11 + $0x98] sm:$0xff] }
  0xe1   : > { %4888 = vmatprep.subr.bf16.mxu1 %v4887_v40  ;;  %v653_v0 = vld [vmem:[#allocation5 + $0xa48] sm:$0xff]  ;;  %v640_v11 = vld [vmem:[#allocation5 + $0x9e0] sm:$0xff]  ;;  %v4897_v16 = vpack.c.bf16 %v768_v6, %v756_v5 }
  0xe2   : > { %v781_v7 = vld [vmem:[#allocation5 + $0xe48] sm:$0xff]  ;;  %v5067_v10 = vpack.c.bf16 %v653_v0, %v641_v63  ;;  %v652_v12 = vld [vmem:[#allocation5 + $0xa40] sm:$0xff] }
  0xe3   : > { %1029 = vmatmul.mubr.f32.vlgmr.msra.gmra.mrb[0].mxu1 %v6911_v50  ;;  %v793_v9 = vld [vmem:[#allocation5 + $0xea8] sm:$0xff]  ;;  %v780_v19 = vld [vmem:[#allocation5 + $0xe40] sm:$0xff]  ;;  %5066 = vmatpush1.bf16.msra.mxu0 %v5065_v8  ;;  %v5069_v22 = vpack.c.bf16 %v652_v12, %v640_v11 }
  0xe4   : > { %4890 = vmatpush1.bf16.msra.mxu1 %v4889_v52  ;;  %1034 = vmatprep.mubr.f32.mxu1 %v6914_v53  ;;  %v665_v13 = vld [vmem:[#allocation5 + $0xaa8] sm:$0xff]  ;;  %v4899_v18 = vpack.c.bf16 %v793_v9, %v781_v7  ;;  %v792_v20 = vld [vmem:[#allocation5 + $0xea0] sm:$0xff] }
  0xe5   : > { %4892 = vmatprep.subr.bf16.mxu1 %v4891_v54  ;;  %v677_v14 = vld [vmem:[#allocation5 + $0xb08] sm:$0xff]  ;;  %5068 = vmatprep.subr.bf16.mxu0 %v5067_v10  ;;  %v664_v25 = vld [vmem:[#allocation5 + $0xaa0] sm:$0xff]  ;;  %v4901_v30 = vpack.c.bf16 %v792_v20, %v780_v19  ;;  %v6959_v10 = vld [vmem:[%s6891_s11 + $0x90] sm:$0xff] }
  0xe6   : > { %v805_v21 = vld [vmem:[#allocation5 + $0xf08] sm:$0xff]  ;;  %v5071_v24 = vpack.c.bf16 %v677_v14, %v665_v13  ;;  %v676_v26 = vld [vmem:[#allocation5 + $0xb00] sm:$0xff]  ;;  %v6962_v14 = vld [vmem:[%s6891_s11 + $0xb0] sm:$0xff] }
  0xe7   : > { %1035 = vmatmul.mubr.f32.gmra.mrb[2].mxu1 %v6919_v1  ;;  %v817_v23 = vld [vmem:[#allocation5 + $0xf68] sm:$0xff]  ;;  %v804_v33 = vld [vmem:[#allocation5 + $0xf00] sm:$0xff]  ;;  %5070 = vmatpush1.bf16.msra.mxu0 %v5069_v22  ;;  %v5073_v36 = vpack.c.bf16 %v676_v26, %v664_v25  ;;  %v327_v20 = vld [vmem:[#allocation5 + $0x18] sm:$0xff] }
  0xe8   : > { %4894 = vmatpush1.bf16.msra.mxu1 %v4893_v2  ;;  %1040 = vmatprep.mubr.f32.mxu1 %v6922_v3  ;;  %v689_v27 = vld [vmem:[#allocation5 + $0xb68] sm:$0xff]  ;;  %v4903_v32 = vpack.c.bf16 %v817_v23, %v805_v21  ;;  %v816_v34 = vld [vmem:[#allocation5 + $0xf60] sm:$0xff]  ;;  %v339_v21 = vld [vmem:[#allocation5 + $0x78] sm:$0xff] }
  0xe9   : > { %4896 = vmatprep.subr.bf16.mxu1 %v4895_v4  ;;  %v701_v28 = vld [vmem:[#allocation5 + $0xbc8] sm:$0xff]  ;;  %5072 = vmatprep.subr.bf16.mxu0 %v5071_v24  ;;  %v688_v39 = vld [vmem:[#allocation5 + $0xb60] sm:$0xff]  ;;  %v4905_v44 = vpack.c.bf16 %v816_v34, %v804_v33  ;;  %v326_v33 = vld [vmem:[#allocation5 + $0x10] sm:$0xff] }
  0xea   : > { %v6935_v29 = vld [vmem:[%s6891_s11 + $0x48] sm:$0xff]  ;;  %v5075_v38 = vpack.c.bf16 %v701_v28, %v689_v27  ;;  %v700_v40 = vld [vmem:[#allocation5 + $0xbc0] sm:$0xff]  ;;  %v338_v34 = vld [vmem:[#allocation5 + $0x70] sm:$0xff] }
  0xeb   : > { %1041 = vmatmul.mubr.f32.gmra.mrb[4].mxu1 %v6927_v15  ;;  %v6938_v31 = vld [vmem:[%s6891_s11 + $0x68] sm:$0xff]  ;;  %v6943_v43 = vld [vmem:[%s6891_s11 + $0x60] sm:$0xff]  ;;  %5074 = vmatpush1.bf16.msra.mxu0 %v5073_v36  ;;  %v5077_v49 = vpack.c.bf16 %v700_v40, %v688_v39  ;;  %v363_v36 = vld [vmem:[#allocation5 + $0x138] sm:$0xff] }
  0xec   : > { %4898 = vmatpush1.bf16.msra.mxu1 %v4897_v16  ;;  %1046 = vmatprep.mubr.f32.mxu1 %v6930_v17  ;;  %v829_v35 = vld [vmem:[#allocation5 + $0xfc8] sm:$0xff]  ;;  %v6946_v45 = vld [vmem:[%s6891_s11 + $0x80] sm:$0xff] }
  0xed   : > { %4900 = vmatprep.subr.bf16.mxu1 %v4899_v18  ;;  %v841_v37 = vld [vmem:[#allocation5 + $0x1028] sm:$0xff]  ;;  %v828_v47 = vld [vmem:[#allocation5 + $0xfc0] sm:$0xff]  ;;  %5076 = vmatprep.subr.bf16.mxu0 %v5075_v38 }
  0xee   : > { %v713_v41 = vld [vmem:[#allocation5 + $0xc28] sm:$0xff]  ;;  %v4907_v46 = vpack.c.bf16 %v841_v37, %v829_v35  ;;  %v840_v48 = vld [vmem:[#allocation5 + $0x1020] sm:$0xff]  ;;  %v351_v35 = vld [vmem:[#allocation5 + $0xd8] sm:$0xff] }
  0xef   : > { %1047 = vmatmul.mubr.f32.gmra.mrb[6].mxu1 %v6935_v29  ;;  %v725_v42 = vld [vmem:[#allocation5 + $0xc88] sm:$0xff]  ;;  %v712_v56 = vld [vmem:[#allocation5 + $0xc20] sm:$0xff]  ;;  %v4909_v59 = vpack.c.bf16 %v840_v48, %v828_v47  ;;  %5078 = vmatpush1.bf16.msra.mxu0 %v5077_v49  ;;  %v4923_v48 = vpack.c.bf16 %v363_v36, %v351_v35  ;;  %v350_v49 = vld [vmem:[#allocation5 + $0xd0] sm:$0xff] }
  0xf0   : > { %4902 = vmatpush1.bf16.msra.mxu1 %v4901_v30  ;;  %1052 = vmatprep.mubr.f32.mxu1 %v6938_v31  ;;  %v853_v52 = vld [vmem:[#allocation5 + $0x1088] sm:$0xff]  ;;  %v5079_v55 = vpack.c.bf16 %v725_v42, %v713_v41  ;;  %v724_v57 = vld [vmem:[#allocation5 + $0xc80] sm:$0xff]  ;;  %v6637_v41 = vmov 0.0   ;;  %v6976_v42 = vld [vmem:[%s6891_s11 + $0x10] sm:$0xff] }
  0xf1   : > { %4904 = vmatprep.subr.bf16.mxu1 %v4903_v32  ;;  %v865_v54 = vld [vmem:[#allocation5 + $0x10e8] sm:$0xff]  ;;  %v852_v0 = vld [vmem:[#allocation5 + $0x1080] sm:$0xff]  ;;  %v5081_v6 = vpack.c.bf16 %v724_v57, %v712_v56  ;;  %v4919_v32 = vpack.c.bf16 %v339_v21, %v327_v20 }
  0xf2   : > { %v737_v60 = vld [vmem:[#allocation5 + $0xce8] sm:$0xff]  ;;  %v4911_v63 = vpack.c.bf16 %v865_v54, %v853_v52  ;;  %v864_v2 = vld [vmem:[#allocation5 + $0x10e0] sm:$0xff]  ;;  %5080 = vmatprep.subr.bf16.mxu0 %v5079_v55  ;;  %1481 = vmatmul.mubr.f32.vlgmr.msra.gmra.mrb[0].mxu0 %v6911_v50  ;;  %v362_v52 = vld [vmem:[#allocation5 + $0x130] sm:$0xff] }
  0xf3   : > { %1053 = vmatmul.mubr.f32.gmra.mrb[8].mxu1 %v6943_v43  ;;  %v749_v61 = vld [vmem:[#allocation5 + $0xd48] sm:$0xff]  ;;  %v736_v8 = vld [vmem:[#allocation5 + $0xce0] sm:$0xff]  ;;  %v4913_v11 = vpack.c.bf16 %v864_v2, %v852_v0  ;;  %5082 = vmatpush1.bf16.msra.mxu0 %v5081_v6  ;;  %v375_v54 = vld [vmem:[#allocation5 + $0x198] sm:$0xff] }
  0xf4   : > { %4906 = vmatpush1.bf16.msra.mxu1 %v4905_v44  ;;  %1058 = vmatprep.mubr.f32.mxu1 %v6946_v45  ;;  %v877_v4 = vld [vmem:[#allocation5 + $0x1148] sm:$0xff]  ;;  %v5083_v7 = vpack.c.bf16 %v749_v61, %v737_v60  ;;  %v748_v9 = vld [vmem:[#allocation5 + $0xd40] sm:$0xff]  ;;  %v4921_v44 = vpack.c.bf16 %v338_v34, %v326_v33  ;;  %v387_v55 = vld [vmem:[#allocation5 + $0x1f8] sm:$0xff] }
  0xf5   : > { %4908 = vmatprep.subr.bf16.mxu1 %v4907_v46  ;;  %v889_v5 = vld [vmem:[#allocation5 + $0x11a8] sm:$0xff]  ;;  %v876_v18 = vld [vmem:[#allocation5 + $0x1140] sm:$0xff]  ;;  %1486 = vmatprep.mubr.f32.mxu0 %v6914_v53  ;;  %v5085_v22 = vpack.c.bf16 %v748_v9, %v736_v8  ;;  %v386_v6 = vld [vmem:[#allocation5 + $0x1f0] sm:$0xff] }
  0xf6   : > { %v761_v12 = vld [vmem:[#allocation5 + $0xda8] sm:$0xff]  ;;  %v4915_v16 = vpack.c.bf16 %v889_v5, %v877_v4  ;;  %v888_v19 = vld [vmem:[#allocation5 + $0x11a0] sm:$0xff]  ;;  %5084 = vmatprep.subr.bf16.mxu0 %v5083_v7  ;;  %1487 = vmatmul.mubr.f32.gmra.mrb[2].mxu0 %v6919_v1  ;;  %v4927_v4 = vpack.c.bf16 %v387_v55, %v375_v54  ;;  %v374_v5 = vld [vmem:[#allocation5 + $0x190] sm:$0xff] }
  0xf7   : > { %1059 = vmatmul.mubr.f32.gmra.mrb[10].mxu1 %v6951_v58  ;;  %v773_v13 = vld [vmem:[#allocation5 + $0xe08] sm:$0xff]  ;;  %v760_v24 = vld [vmem:[#allocation5 + $0xda0] sm:$0xff]  ;;  %v4917_v27 = vpack.c.bf16 %v888_v19, %v876_v18  ;;  %5086 = vmatpush1.bf16.msra.mxu0 %v5085_v22  ;;  %v399_v7 = vld [vmem:[#allocation5 + $0x258] sm:$0xff]  ;;  %v4929_v18 = vpack.c.bf16 %v386_v6, %v374_v5 }
  0xf8   : > { %4910 = vmatpush1.bf16.msra.mxu1 %v4909_v59  ;;  %1064 = vmatprep.mubr.f32.mxu1 %v6954_v62  ;;  %v5087_v23 = vpack.c.bf16 %v773_v13, %v761_v12  ;;  %v772_v25 = vld [vmem:[#allocation5 + $0xe00] sm:$0xff]  ;;  %v6969_v26 = vld [vmem:[%s6891_s11 + $0xa8] sm:$0xff]  ;;  %v411_v8 = vld [vmem:[#allocation5 + $0x2b8] sm:$0xff] }
  0xf9   : > { %4912 = vmatprep.subr.bf16.mxu1 %v4911_v63  ;;  %v785_v28 = vld [vmem:[#allocation5 + $0xe68] sm:$0xff]  ;;  %1492 = vmatprep.mubr.f32.mxu0 %v6922_v3  ;;  %v5089_v37 = vpack.c.bf16 %v772_v25, %v760_v24  ;;  %v784_v39 = vld [vmem:[#allocation5 + $0xe60] sm:$0xff]  ;;  %v4925_v63 = vpack.c.bf16 %v362_v52, %v350_v49  ;;  %v4931_v21 = vpack.c.bf16 %v411_v8, %v399_v7  ;;  %v398_v22 = vld [vmem:[#allocation5 + $0x250] sm:$0xff] }
  0xfa   : > { %v797_v30 = vld [vmem:[#allocation5 + $0xec8] sm:$0xff]  ;;  %5088 = vmatprep.subr.bf16.mxu0 %v5087_v23  ;;  %v796_v40 = vld [vmem:[#allocation5 + $0xec0] sm:$0xff]  ;;  %1493 = vmatmul.mubr.f32.gmra.mrb[4].mxu0 %v6927_v15  ;;  %v410_v23 = vld [vmem:[#allocation5 + $0x2b0] sm:$0xff] }
  0xfb   : > { %1065 = vmatmul.mubr.f32.gmra.mrb[12].mxu1 %v6959_v10  ;;  %v5091_v38 = vpack.c.bf16 %v797_v30, %v785_v28  ;;  %v809_v46 = vld [vmem:[#allocation5 + $0xf28] sm:$0xff]  ;;  %5090 = vmatpush1.bf16.msra.mxu0 %v5089_v37  ;;  %v5093_v56 = vpack.c.bf16 %v796_v40, %v784_v39  ;;  %v808_v59 = vld [vmem:[#allocation5 + $0xf20] sm:$0xff]  ;;  %v423_v24 = vld [vmem:[#allocation5 + $0x318] sm:$0xff]  ;;  %v4933_v34 = vpack.c.bf16 %v410_v23, %v398_v22 }
  0xfc   : > { %4914 = vmatpush1.bf16.msra.mxu1 %v4913_v11  ;;  %1070 = vmatprep.mubr.f32.mxu1 %v6962_v14  ;;  %v821_v47 = vld [vmem:[#allocation5 + $0xf88] sm:$0xff]  ;;  %v820_v60 = vld [vmem:[#allocation5 + $0xf80] sm:$0xff]  ;;  %v435_v25 = vld [vmem:[#allocation5 + $0x378] sm:$0xff] }
  0xfd   : > { %4916 = vmatprep.subr.bf16.mxu1 %v4915_v16  ;;  %1498 = vmatprep.mubr.f32.mxu0 %v6930_v17  ;;  %v5095_v57 = vpack.c.bf16 %v821_v47, %v809_v46  ;;  %v6983_v61 = vld [vmem:[%s6891_s11 + $0x28] sm:$0xff]  ;;  %v5097_v9 = vpack.c.bf16 %v820_v60, %v808_v59  ;;  %v832_v12 = vld [vmem:[#allocation5 + $0xfe0] sm:$0xff]  ;;  %v6997_v33 = vld [vmem:[%s6891_s11 + $0x58] sm:$0xff]  ;;  %v4935_v37 = vpack.c.bf16 %v435_v25, %v423_v24 }
  0xfe   : > { %5092 = vmatprep.subr.bf16.mxu0 %v5091_v38  ;;  %v833_v0 = vld [vmem:[#allocation5 + $0xfe8] sm:$0xff]  ;;  %1499 = vmatmul.mubr.f32.gmra.mrb[6].mxu0 %v6935_v29  ;;  %v844_v13 = vld [vmem:[#allocation5 + $0x1040] sm:$0xff]  ;;  %v422_v38 = vld [vmem:[#allocation5 + $0x310] sm:$0xff] }
  0xff   : > { %1071 = vmatmul.mubr.f32.gmra.mrb[14].mxu1 %v6969_v26  ;;  %v845_v2 = vld [vmem:[#allocation5 + $0x1048] sm:$0xff]  ;;  %5094 = vmatpush1.bf16.msra.mxu0 %v5093_v56  ;;  %v6990_v16 = vld [vmem:[%s6891_s11 + $0x40] sm:$0xff]  ;;  %v434_v39 = vld [vmem:[#allocation5 + $0x370] sm:$0xff] }
 0x100   : > { %4918 = vmatpush1.bf16.msra.mxu1 %v4917_v27  ;;  %1141 = vmatprep.mubr.f32.mxu1 %v6637_v41  ;;  %v5099_v11 = vpack.c.bf16 %v845_v2, %v833_v0  ;;  %v857_v19 = vld [vmem:[#allocation5 + $0x10a8] sm:$0xff]  ;;  %v5101_v27 = vpack.c.bf16 %v844_v13, %v832_v12  ;;  %v856_v30 = vld [vmem:[#allocation5 + $0x10a0] sm:$0xff]  ;;  %v447_v40 = vld [vmem:[#allocation5 + $0x3d8] sm:$0xff]  ;;  %v4937_v54 = vpack.c.bf16 %v434_v39, %v422_v38 }
 0x101   : > { %4920 = vmatprep.subr.bf16.mxu1 %v4919_v32  ;;  %1504 = vmatprep.mubr.f32.mxu0 %v6938_v31  ;;  %v869_v20 = vld [vmem:[#allocation5 + $0x1108] sm:$0xff]  ;;  %v868_v32 = vld [vmem:[#allocation5 + $0x1100] sm:$0xff]  ;;  %v7004_v52 = vld [vmem:[%s6891_s11 + $0x70] sm:$0xff] }
 0x102   : > { %5096 = vmatprep.subr.bf16.mxu0 %v5095_v57  ;;  %1505 = vmatmul.mubr.f32.gmra.mrb[8].mxu0 %v6943_v43  ;;  %v5103_v28 = vpack.c.bf16 %v869_v20, %v857_v19  ;;  %v881_v35 = vld [vmem:[#allocation5 + $0x1168] sm:$0xff]  ;;  %v5105_v46 = vpack.c.bf16 %v868_v32, %v856_v30  ;;  %v892_v49 = vld [vmem:[#allocation5 + $0x11c0] sm:$0xff]  ;;  %v446_v59 = vld [vmem:[#allocation5 + $0x3d0] sm:$0xff] }
 0x103   : > { %1142 = vmatmul.mubr.f32.vlgmr.msra.gmra.mrb[0].mxu1 %v6976_v42  ;;  %5098 = vmatpush1.bf16.msra.mxu0 %v5097_v9  ;;  %v893_v36 = vld [vmem:[#allocation5 + $0x11c8] sm:$0xff]  ;;  %v458_v60 = vld [vmem:[#allocation5 + $0x430] sm:$0xff]  ;;  %v483_v0 = vld [vmem:[#allocation5 + $0x4f8] sm:$0xff] }
 0x104   : > { %4922 = vmatpush1.bf16.msra.mxu1 %v4921_v44  ;;  %1147 = vmatprep.mubr.f32.mxu1 %v6637_v41  ;;  %v459_v44 = vld [vmem:[#allocation5 + $0x438] sm:$0xff]  ;;  %v5107_v47 = vpack.c.bf16 %v893_v36, %v881_v35  ;;  %v333_v55 = vld [vmem:[#allocation5 + $0x48] sm:$0xff]  ;;  %v332_v5 = vld [vmem:[#allocation5 + $0x40] sm:$0xff]  ;;  %v4941_v8 = vpack.c.bf16 %v458_v60, %v446_v59 }
 0x105   : > { %4924 = vmatprep.subr.bf16.mxu1 %v4923_v48  ;;  %1510 = vmatprep.mubr.f32.mxu0 %v6946_v45  ;;  %v880_v48 = vld [vmem:[#allocation5 + $0x1160] sm:$0xff]  ;;  %v345_v56 = vld [vmem:[#allocation5 + $0xa8] sm:$0xff]  ;;  %v4939_v57 = vpack.c.bf16 %v459_v44, %v447_v40  ;;  %v470_v13 = vld [vmem:[#allocation5 + $0x490] sm:$0xff] }
 0x106   : > { %5100 = vmatprep.subr.bf16.mxu0 %v5099_v11  ;;  %1511 = vmatmul.mubr.f32.gmra.mrb[10].mxu0 %v6951_v58  ;;  %v5109_v2 = vpack.c.bf16 %v892_v49, %v880_v48  ;;  %v344_v6 = vld [vmem:[#allocation5 + $0xa0] sm:$0xff]  ;;  %v7011_v7 = vld [vmem:[%s6891_s11 + $0x88] sm:$0xff]  ;;  %v495_v19 = vld [vmem:[#allocation5 + $0x558] sm:$0xff] }
 0x107   : > { %1148 = vmatmul.mubr.f32.gmra.mrb[2].mxu1 %v6983_v61  ;;  %5102 = vmatpush1.bf16.msra.mxu0 %v5101_v27  ;;  %v357_v9 = vld [vmem:[#allocation5 + $0x108] sm:$0xff]  ;;  %v507_v20 = vld [vmem:[#allocation5 + $0x5b8] sm:$0xff]  ;;  %v356_v23 = vld [vmem:[#allocation5 + $0x100] sm:$0xff] }
 0x108   : > { %4926 = vmatpush1.bf16.msra.mxu1 %v4925_v63  ;;  %1153 = vmatprep.mubr.f32.mxu1 %v6637_v41  ;;  %v471_v63 = vld [vmem:[#allocation5 + $0x498] sm:$0xff]  ;;  %v369_v11 = vld [vmem:[#allocation5 + $0x168] sm:$0xff]  ;;  %v368_v24 = vld [vmem:[#allocation5 + $0x160] sm:$0xff]  ;;  %v4947_v32 = vpack.c.bf16 %v507_v20, %v495_v19 }
 0x109   : > { %4928 = vmatprep.subr.bf16.mxu1 %v4927_v4  ;;  %1516 = vmatprep.mubr.f32.mxu0 %v6954_v62  ;;  %v5207_v4 = vpack.c.bf16 %v345_v56, %v333_v55  ;;  %v4943_v12 = vpack.c.bf16 %v483_v0, %v471_v63  ;;  %v5211_v22 = vpack.c.bf16 %v369_v11, %v357_v9  ;;  %v7018_v25 = vld [vmem:[%s6891_s11 + $0xa0] sm:$0xff]  ;;  %v393_v30 = vld [vmem:[#allocation5 + $0x228] sm:$0xff]  ;;  %v506_v35 = vld [vmem:[#allocation5 + $0x5b0] sm:$0xff] }
 0x10a   : > { %5104 = vmatprep.subr.bf16.mxu0 %v5103_v28  ;;  %1517 = vmatmul.mubr.f32.gmra.mrb[12].mxu0 %v6959_v10  ;;  %v381_v28 = vld [vmem:[#allocation5 + $0x1c8] sm:$0xff]  ;;  %v519_v36 = vld [vmem:[#allocation5 + $0x618] sm:$0xff]  ;;  %v5213_v38 = vpack.c.bf16 %v368_v24, %v356_v23  ;;  %v380_v40 = vld [vmem:[#allocation5 + $0x1c0] sm:$0xff] }
 0x10b   : > { %1154 = vmatmul.mubr.f32.gmra.mrb[4].mxu1 %v6990_v16  ;;  %5106 = vmatpush1.bf16.msra.mxu0 %v5105_v46  ;;  %v5215_v39 = vpack.c.bf16 %v393_v30, %v381_v28  ;;  %v392_v44 = vld [vmem:[#allocation5 + $0x220] sm:$0xff]  ;;  %v7025_v46 = vld [vmem:[%s6891_s11 + $0xb8] sm:$0xff]  ;;  %v405_v48 = vld [vmem:[#allocation5 + $0x288] sm:$0xff] }
 0x10c   : > { %4930 = vmatpush1.bf16.msra.mxu1 %v4929_v18  ;;  %1159 = vmatprep.mubr.f32.mxu1 %v6637_v41  ;;  %v482_v18 = vld [vmem:[#allocation5 + $0x4f0] sm:$0xff]  ;;  %v417_v49 = vld [vmem:[#allocation5 + $0x2e8] sm:$0xff]  ;;  %v555_v59 = vld [vmem:[#allocation5 + $0x738] sm:$0xff]  ;;  %v5217_v60 = vpack.c.bf16 %v392_v44, %v380_v40 }
 0x10d   : > { %4932 = vmatprep.subr.bf16.mxu1 %v4931_v21  ;;  %1522 = vmatprep.mubr.f32.mxu0 %v6962_v14  ;;  %v5209_v21 = vpack.c.bf16 %v344_v6, %v332_v5  ;;  %v4945_v27 = vpack.c.bf16 %v482_v18, %v470_v13  ;;  %v518_v55 = vld [vmem:[#allocation5 + $0x610] sm:$0xff]  ;;  %v5219_v63 = vpack.c.bf16 %v417_v49, %v405_v48  ;;  %v404_v0 = vld [vmem:[#allocation5 + $0x280] sm:$0xff]  ;;  %v429_v5 = vld [vmem:[#allocation5 + $0x348] sm:$0xff] }
 0x10e   : > { %5108 = vmatprep.subr.bf16.mxu0 %v5107_v47  ;;  %1523 = vmatmul.mubr.f32.gmra.mrb[14].mxu0 %v6969_v26  ;;  %v530_v56 = vld [vmem:[#allocation5 + $0x670] sm:$0xff]  ;;  %v441_v6 = vld [vmem:[#allocation5 + $0x3a8] sm:$0xff]  ;;  %v579_v13 = vld [vmem:[#allocation5 + $0x7f8] sm:$0xff] }
 0x10f   : > { %1160 = vmatmul.mubr.f32.gmra.mrb[6].mxu1 %v6997_v33  ;;  %5110 = vmatpush1.bf16.msra.mxu0 %v5109_v2  ;;  %v416_v2 = vld [vmem:[#allocation5 + $0x2e0] sm:$0xff]  ;;  %v542_v9 = vld [vmem:[#allocation5 + $0x6d0] sm:$0xff]  ;;  %v5223_v19 = vpack.c.bf16 %v441_v6, %v429_v5  ;;  %v465_v23 = vld [vmem:[#allocation5 + $0x468] sm:$0xff] }
 0x110   : > { %4934 = vmatpush1.bf16.msra.mxu1 %v4933_v34  ;;  %1165 = vmatprep.mubr.f32.mxu1 %v6637_v41  ;;  %v494_v34 = vld [vmem:[#allocation5 + $0x550] sm:$0xff]  ;;  %v5221_v18 = vpack.c.bf16 %v416_v2, %v404_v0  ;;  %v428_v20 = vld [vmem:[#allocation5 + $0x340] sm:$0xff]  ;;  %v591_v30 = vld [vmem:[#allocation5 + $0x858] sm:$0xff] }
 0x111   : > { %4936 = vmatprep.subr.bf16.mxu1 %v4935_v37  ;;  %1593 = vmatprep.mubr.f32.mxu0 %v6637_v41  ;;  %v531_v37 = vld [vmem:[#allocation5 + $0x678] sm:$0xff]  ;;  %v4949_v47 = vpack.c.bf16 %v506_v35, %v494_v34  ;;  %v554_v11 = vld [vmem:[#allocation5 + $0x730] sm:$0xff]  ;;  %v489_v40 = vld [vmem:[#allocation5 + $0x528] sm:$0xff] }
 0x112   : > { %5208 = vmatprep.subr.bf16.mxu0 %v5207_v4  ;;  %1594 = vmatmul.mubr.f32.vlgmr.msra.gmra.mrb[0].mxu0 %v6976_v42  ;;  %v4953_v4 = vpack.c.bf16 %v530_v56, %v518_v55  ;;  %v578_v28 = vld [vmem:[#allocation5 + $0x7f0] sm:$0xff]  ;;  %v615_v49 = vld [vmem:[#allocation5 + $0x918] sm:$0xff]  ;;  %v513_v0 = vld [vmem:[#allocation5 + $0x5e8] sm:$0xff] }
 0x113   : > { %1166 = vmatmul.mubr.f32.gmra.mrb[8].mxu1 %v7004_v52  ;;  %5210 = vmatpush1.bf16.msra.mxu0 %v5209_v21  ;;  %v440_v21 = vld [vmem:[#allocation5 + $0x3a0] sm:$0xff]  ;;  %v602_v48 = vld [vmem:[#allocation5 + $0x8b0] sm:$0xff]  ;;  %v639_v6 = vld [vmem:[#allocation5 + $0x9d8] sm:$0xff] }
 0x114   : > { %4938 = vmatpush1.bf16.msra.mxu1 %v4937_v54  ;;  %1171 = vmatprep.mubr.f32.mxu1 %v6637_v41  ;;  %v4951_v54 = vpack.c.bf16 %v531_v37, %v519_v36  ;;  %v5225_v34 = vpack.c.bf16 %v440_v21, %v428_v20  ;;  %v452_v36 = vld [vmem:[#allocation5 + $0x400] sm:$0xff]  ;;  %v626_v5 = vld [vmem:[#allocation5 + $0x970] sm:$0xff]  ;;  %v537_v20 = vld [vmem:[#allocation5 + $0x6a8] sm:$0xff] }
 0x115   : > { %4940 = vmatprep.subr.bf16.mxu1 %v4939_v57  ;;  %1599 = vmatprep.mubr.f32.mxu0 %v6637_v41  ;;  %v543_v57 = vld [vmem:[#allocation5 + $0x6d8] sm:$0xff]  ;;  %v464_v37 = vld [vmem:[#allocation5 + $0x460] sm:$0xff] }
 0x116   : > { %5212 = vmatprep.subr.bf16.mxu0 %v5211_v22  ;;  %1600 = vmatmul.mubr.f32.gmra.mrb[2].mxu0 %v6983_v61  ;;  %v453_v22 = vld [vmem:[#allocation5 + $0x408] sm:$0xff]  ;;  %v5229_v55 = vpack.c.bf16 %v464_v37, %v452_v36 }
 0x117   : > { %1172 = vmatmul.mubr.f32.gmra.mrb[10].mxu1 %v7011_v7  ;;  %5214 = vmatpush1.bf16.msra.mxu0 %v5213_v38  ;;  %v5227_v35 = vpack.c.bf16 %v465_v23, %v453_v22  ;;  %v650_v22 = vld [vmem:[#allocation5 + $0xa30] sm:$0xff]  ;;  %v663_v23 = vld [vmem:[#allocation5 + $0xa98] sm:$0xff]  ;;  %v561_v36 = vld [vmem:[#allocation5 + $0x768] sm:$0xff] }
 0x118   : > { %4942 = vmatpush1.bf16.msra.mxu1 %v4941_v8  ;;  %1177 = vmatprep.mubr.f32.mxu1 %v6637_v41  ;;  %v4955_v8 = vpack.c.bf16 %v555_v59, %v543_v57  ;;  %v476_v57 = vld [vmem:[#allocation5 + $0x4c0] sm:$0xff] }
 0x119   : > { %4944 = vmatprep.subr.bf16.mxu1 %v4943_v12  ;;  %1605 = vmatprep.mubr.f32.mxu0 %v6637_v41  ;;  %v567_v12 = vld [vmem:[#allocation5 + $0x798] sm:$0xff]  ;;  %v488_v59 = vld [vmem:[#allocation5 + $0x520] sm:$0xff] }
 0x11a   : > { %5216 = vmatprep.subr.bf16.mxu0 %v5215_v39  ;;  %1606 = vmatmul.mubr.f32.gmra.mrb[4].mxu0 %v6990_v16  ;;  %v4959_v24 = vpack.c.bf16 %v579_v13, %v567_v12  ;;  %v477_v39 = vld [vmem:[#allocation5 + $0x4c8] sm:$0xff]  ;;  %v500_v12 = vld [vmem:[#allocation5 + $0x580] sm:$0xff] }
 0x11b   : > { %1178 = vmatmul.mubr.f32.gmra.mrb[12].mxu1 %v7018_v25  ;;  %5218 = vmatpush1.bf16.msra.mxu0 %v5217_v60  ;;  %v5231_v56 = vpack.c.bf16 %v489_v40, %v477_v39  ;;  %v512_v13 = vld [vmem:[#allocation5 + $0x5e0] sm:$0xff]  ;;  %v674_v39 = vld [vmem:[#allocation5 + $0xaf0] sm:$0xff]  ;;  %v687_v40 = vld [vmem:[#allocation5 + $0xb58] sm:$0xff] }
 0x11c   : > { %4946 = vmatpush1.bf16.msra.mxu1 %v4945_v27  ;;  %1183 = vmatprep.mubr.f32.mxu1 %v6637_v41  ;;  %v566_v27 = vld [vmem:[#allocation5 + $0x790] sm:$0xff] }
 0x11d   : > { %4948 = vmatprep.subr.bf16.mxu1 %v4947_v32  ;;  %1611 = vmatprep.mubr.f32.mxu0 %v6637_v41  ;;  %v603_v32 = vld [vmem:[#allocation5 + $0x8b8] sm:$0xff]  ;;  %v4961_v38 = vpack.c.bf16 %v578_v28, %v566_v27  ;;  %v5237_v27 = vpack.c.bf16 %v512_v13, %v500_v12  ;;  %v597_v12 = vld [vmem:[#allocation5 + $0x888] sm:$0xff] }
 0x11e   : > { %5220 = vmatprep.subr.bf16.mxu0 %v5219_v63  ;;  %1612 = vmatmul.mubr.f32.gmra.mrb[6].mxu0 %v6997_v33  ;;  %v4963_v44 = vpack.c.bf16 %v603_v32, %v591_v30  ;;  %v501_v63 = vld [vmem:[#allocation5 + $0x588] sm:$0xff]  ;;  %v524_v30 = vld [vmem:[#allocation5 + $0x640] sm:$0xff] }
 0x11f   : > { %1184 = vmatmul.mubr.f32.gmra.mrb[14].mxu1 %v7025_v46  ;;  %5222 = vmatpush1.bf16.msra.mxu0 %v5221_v18  ;;  %v536_v32 = vld [vmem:[#allocation5 + $0x6a0] sm:$0xff]  ;;  %v609_v13 = vld [vmem:[#allocation5 + $0x8e8] sm:$0xff] }
 0x120   : > { %4950 = vmatpush1.bf16.msra.mxu1 %v4949_v47  ;;  %1254 = vmatprep.mubr.f32.mxu1 %v6906_v51  ;;  %v4957_v51 = vpack.c.bf16 %v554_v11, %v542_v9  ;;  %v590_v47 = vld [vmem:[#allocation5 + $0x850] sm:$0xff]  ;;  %v5233_v9 = vpack.c.bf16 %v488_v59, %v476_v57  ;;  %v5235_v11 = vpack.c.bf16 %v513_v0, %v501_v63  ;;  %v573_v57 = vld [vmem:[#allocation5 + $0x7c8] sm:$0xff] }
 0x121   : > { %4952 = vmatprep.subr.bf16.mxu1 %v4951_v54  ;;  %1617 = vmatprep.mubr.f32.mxu0 %v6637_v41  ;;  %v627_v54 = vld [vmem:[#allocation5 + $0x978] sm:$0xff]  ;;  %v4965_v60 = vpack.c.bf16 %v602_v48, %v590_v47  ;;  %v5241_v47 = vpack.c.bf16 %v536_v32, %v524_v30  ;;  %v7043_v48 = vld [vmem:[%s6891_s11 + $0x8] sm:$0xff]  ;;  %v686_v63 = vld [vmem:[#allocation5 + $0xb50] sm:$0xff] }
 0x122   : > { %5224 = vmatprep.subr.bf16.mxu0 %v5223_v19  ;;  %1618 = vmatmul.mubr.f32.gmra.mrb[8].mxu0 %v7004_v52  ;;  %v4967_v2 = vpack.c.bf16 %v627_v54, %v615_v49  ;;  %v525_v19 = vld [vmem:[#allocation5 + $0x648] sm:$0xff]  ;;  %v548_v54 = vld [vmem:[#allocation5 + $0x700] sm:$0xff]  ;;  %v698_v0 = vld [vmem:[#allocation5 + $0xbb0] sm:$0xff] }
 0x123   : > { %5226 = vmatpush1.bf16.msra.mxu0 %v5225_v34  ;;  %1623 = vmatprep.mubr.f32.mxu0 %v6637_v41  ;;  %v5239_v28 = vpack.c.bf16 %v537_v20, %v525_v19  ;;  %v585_v59 = vld [vmem:[#allocation5 + $0x828] sm:$0xff]  ;;  %v710_v19 = vld [vmem:[#allocation5 + $0xc10] sm:$0xff] }
 0x124   : > { %4954 = vmatpush1.bf16.msra.mxu1 %v4953_v4  ;;  %5228 = vmatprep.subr.bf16.mxu0 %v5227_v35  ;;  %v614_v4 = vld [vmem:[#allocation5 + $0x910] sm:$0xff]  ;;  %v549_v35 = vld [vmem:[#allocation5 + $0x708] sm:$0xff] }
 0x125   : > { %4956 = vmatprep.subr.bf16.mxu1 %v4955_v8  ;;  %v651_v8 = vld [vmem:[#allocation5 + $0xa38] sm:$0xff]  ;;  %v4969_v18 = vpack.c.bf16 %v626_v5, %v614_v4  ;;  %v5243_v49 = vpack.c.bf16 %v561_v36, %v549_v35  ;;  %v722_v20 = vld [vmem:[#allocation5 + $0xc70] sm:$0xff]  ;;  %v621_v30 = vld [vmem:[#allocation5 + $0x948] sm:$0xff] }
 0x126   : > { %1624 = vmatmul.mubr.f32.gmra.mrb[10].mxu0 %v7011_v7  ;;  %v4971_v21 = vpack.c.bf16 %v651_v8, %v639_v6  ;;  %v723_v4 = vld [vmem:[#allocation5 + $0xc78] sm:$0xff]  ;;  %v5247_v6 = vpack.c.bf16 %v585_v59, %v573_v57  ;;  %v572_v8 = vld [vmem:[#allocation5 + $0x7c0] sm:$0xff]  ;;  %v633_v32 = vld [vmem:[#allocation5 + $0x9a8] sm:$0xff] }
 0x127   : > { %5230 = vmatpush1.bf16.msra.mxu0 %v5229_v55  ;;  %1629 = vmatprep.mubr.f32.mxu0 %v6637_v41  ;;  %v560_v55 = vld [vmem:[#allocation5 + $0x760] sm:$0xff]  ;;  %v734_v35 = vld [vmem:[#allocation5 + $0xcd0] sm:$0xff] }
 0x128   : > { %4958 = vmatpush1.bf16.msra.mxu1 %v4957_v51  ;;  %5232 = vmatprep.subr.bf16.mxu0 %v5231_v56  ;;  %v638_v51 = vld [vmem:[#allocation5 + $0x9d0] sm:$0xff]  ;;  %v5245_v5 = vpack.c.bf16 %v560_v55, %v548_v54  ;;  %v645_v54 = vld [vmem:[#allocation5 + $0xa08] sm:$0xff] }
 0x129   : > { %4960 = vmatprep.subr.bf16.mxu1 %v4959_v24  ;;  %v675_v24 = vld [vmem:[#allocation5 + $0xaf8] sm:$0xff]  ;;  %v4973_v34 = vpack.c.bf16 %v650_v22, %v638_v51  ;;  %v746_v36 = vld [vmem:[#allocation5 + $0xd30] sm:$0xff]  ;;  %v657_v55 = vld [vmem:[#allocation5 + $0xa68] sm:$0xff] }
 0x12a   : > { %1630 = vmatmul.mubr.f32.gmra.mrb[12].mxu0 %v7018_v25  ;;  %v4975_v37 = vpack.c.bf16 %v675_v24, %v663_v23  ;;  %v747_v51 = vld [vmem:[#allocation5 + $0xd38] sm:$0xff]  ;;  %v5251_v23 = vpack.c.bf16 %v609_v13, %v597_v12  ;;  %v596_v24 = vld [vmem:[#allocation5 + $0x880] sm:$0xff]  ;;  %v758_v57 = vld [vmem:[#allocation5 + $0xd90] sm:$0xff] }
 0x12b   : > { %5234 = vmatpush1.bf16.msra.mxu0 %v5233_v9  ;;  %1635 = vmatprep.mubr.f32.mxu0 %v6637_v41  ;;  %v584_v9 = vld [vmem:[#allocation5 + $0x820] sm:$0xff]  ;;  %v770_v59 = vld [vmem:[#allocation5 + $0xdf0] sm:$0xff]  ;;  %v807_v12 = vld [vmem:[#allocation5 + $0xf18] sm:$0xff] }
 0x12c   : > { %4962 = vmatpush1.bf16.msra.mxu1 %v4961_v38  ;;  %5236 = vmatprep.subr.bf16.mxu0 %v5235_v11  ;;  %v662_v38 = vld [vmem:[#allocation5 + $0xa90] sm:$0xff]  ;;  %v4981_v11 = vpack.c.bf16 %v698_v0, %v686_v63  ;;  %v5249_v22 = vpack.c.bf16 %v584_v9, %v572_v8  ;;  %v795_v63 = vld [vmem:[#allocation5 + $0xeb8] sm:$0xff] }
 0x12d   : > { %4964 = vmatprep.subr.bf16.mxu1 %v4963_v44  ;;  %v699_v44 = vld [vmem:[#allocation5 + $0xbb8] sm:$0xff]  ;;  %v4977_v56 = vpack.c.bf16 %v674_v39, %v662_v38  ;;  %v782_v9 = vld [vmem:[#allocation5 + $0xe50] sm:$0xff] }
 0x12e   : > { %1636 = vmatmul.mubr.f32.gmra.mrb[14].mxu0 %v7025_v46  ;;  %v771_v38 = vld [vmem:[#allocation5 + $0xdf8] sm:$0xff] }
 0x12f   : > { %5238 = vmatpush1.bf16.msra.mxu0 %v5237_v27  ;;  %1932 = vmatprep.mubr.f32.mxu0 %v7043_v48  ;;  %v608_v27 = vld [vmem:[#allocation5 + $0x8e0] sm:$0xff]  ;;  %v819_v13 = vld [vmem:[#allocation5 + $0xf78] sm:$0xff] }
 0x130   : > { %4966 = vmatpush1.bf16.msra.mxu1 %v4965_v60  ;;  %5240 = vmatprep.subr.bf16.mxu0 %v5239_v28  ;;  %v4979_v60 = vpack.c.bf16 %v699_v44, %v687_v40  ;;  %v4985_v28 = vpack.c.bf16 %v722_v20, %v710_v19  ;;  %v5253_v39 = vpack.c.bf16 %v608_v27, %v596_v24  ;;  %v620_v44 = vld [vmem:[#allocation5 + $0x940] sm:$0xff]  ;;  %v818_v24 = vld [vmem:[#allocation5 + $0xf70] sm:$0xff]  ;;  %v831_v27 = vld [vmem:[#allocation5 + $0xfd8] sm:$0xff] }
 0x131   : > { %4968 = vmatprep.subr.bf16.mxu1 %v4967_v2  ;;  %v711_v2 = vld [vmem:[#allocation5 + $0xc18] sm:$0xff]  ;;  %v5255_v40 = vpack.c.bf16 %v633_v32, %v621_v30  ;;  %v668_v19 = vld [vmem:[#allocation5 + $0xac0] sm:$0xff] }
 0x132   : > { %v680_v20 = vld [vmem:[#allocation5 + $0xb20] sm:$0xff] }
 0x133   : > { %5242 = vmatpush1.bf16.msra.mxu0 %v5241_v47  ;;  %v632_v47 = vld [vmem:[#allocation5 + $0x9a0] sm:$0xff]  ;;  %v5265_v30 = vpack.c.bf16 %v680_v20, %v668_v19 }
 0x134   : > { %4970 = vmatpush1.bf16.msra.mxu1 %v4969_v18  ;;  %5244 = vmatprep.subr.bf16.mxu0 %v5243_v49  ;;  %v4983_v18 = vpack.c.bf16 %v723_v4, %v711_v2  ;;  %v4989_v49 = vpack.c.bf16 %v746_v36, %v734_v35  ;;  %v5257_v0 = vpack.c.bf16 %v632_v47, %v620_v44  ;;  %v644_v2 = vld [vmem:[#allocation5 + $0xa00] sm:$0xff]  ;;  %v717_v35 = vld [vmem:[#allocation5 + $0xc48] sm:$0xff]  ;;  %v867_v44 = vld [vmem:[#allocation5 + $0x10f8] sm:$0xff] }
 0x135   : > { %4972 = vmatprep.subr.bf16.mxu1 %v4971_v21  ;;  %v735_v21 = vld [vmem:[#allocation5 + $0xcd8] sm:$0xff]  ;;  %v656_v4 = vld [vmem:[#allocation5 + $0xa60] sm:$0xff]  ;;  %v729_v36 = vld [vmem:[#allocation5 + $0xca8] sm:$0xff] }
 0x136   : > { %v692_v32 = vld [vmem:[#allocation5 + $0xb80] sm:$0xff] }
 0x137   : > { %5246 = vmatpush1.bf16.msra.mxu0 %v5245_v5  ;;  %v669_v5 = vld [vmem:[#allocation5 + $0xac8] sm:$0xff]  ;;  %v776_v19 = vld [vmem:[#allocation5 + $0xe20] sm:$0xff] }
 0x138   : > { %4974 = vmatpush1.bf16.msra.mxu1 %v4973_v34  ;;  %5248 = vmatprep.subr.bf16.mxu0 %v5247_v6  ;;  %v4987_v34 = vpack.c.bf16 %v747_v51, %v735_v21  ;;  %v681_v6 = vld [vmem:[#allocation5 + $0xb28] sm:$0xff] }
 0x139   : > { %4976 = vmatprep.subr.bf16.mxu1 %v4975_v37  ;;  %v759_v37 = vld [vmem:[#allocation5 + $0xd98] sm:$0xff]  ;;  %v693_v21 = vld [vmem:[#allocation5 + $0xb88] sm:$0xff] }
 0x13a   : > { %v705_v51 = vld [vmem:[#allocation5 + $0xbe8] sm:$0xff] }
 0x13b   : > { %5250 = vmatpush1.bf16.msra.mxu0 %v5249_v22  ;;  %v4999_v22 = vpack.c.bf16 %v819_v13, %v807_v12  ;;  %v343_v12 = vld [vmem:[#allocation5 + $0x98] sm:$0xff]  ;;  %v7063_v13 = vld [vmem:[%s6891_s11 + $0x20] sm:$0xff] }
 0x13c   : > { %4978 = vmatpush1.bf16.msra.mxu1 %v4977_v56  ;;  %5252 = vmatprep.subr.bf16.mxu0 %v5251_v23  ;;  %v4991_v56 = vpack.c.bf16 %v771_v38, %v759_v37  ;;  %v806_v23 = vld [vmem:[#allocation5 + $0xf10] sm:$0xff] }
 0x13d   : > { %4980 = vmatprep.subr.bf16.mxu1 %v4979_v60  ;;  %v783_v60 = vld [vmem:[#allocation5 + $0xe58] sm:$0xff]  ;;  %v830_v38 = vld [vmem:[#allocation5 + $0xfd0] sm:$0xff] }
 0x13e   : > { %v4995_v8 = vpack.c.bf16 %v795_v63, %v783_v60  ;;  %v866_v60 = vld [vmem:[#allocation5 + $0x10f0] sm:$0xff]  ;;  %v879_v63 = vld [vmem:[#allocation5 + $0x1158] sm:$0xff] }
 0x13f   : > { %5254 = vmatpush1.bf16.msra.mxu0 %v5253_v39  ;;  %v842_v39 = vld [vmem:[#allocation5 + $0x1030] sm:$0xff] }
 0x140   : > { %4982 = vmatpush1.bf16.msra.mxu1 %v4981_v11  ;;  %5256 = vmatprep.subr.bf16.mxu0 %v5255_v40  ;;  %v794_v11 = vld [vmem:[#allocation5 + $0xeb0] sm:$0xff]  ;;  %v855_v40 = vld [vmem:[#allocation5 + $0x1098] sm:$0xff] }
 0x141   : > { %4984 = vmatprep.subr.bf16.mxu1 %v4983_v18  ;;  %v5261_v18 = vpack.c.bf16 %v656_v4, %v644_v2  ;;  %v740_v2 = vld [vmem:[#allocation5 + $0xd00] sm:$0xff] }
 0x142   : > { %v752_v4 = vld [vmem:[#allocation5 + $0xd60] sm:$0xff] }
 0x143   : > { %1255 = vmatmul.mubr.f32.vlgmr.msra.gmra.mrb[16].mxu1 %v6911_v50  ;;  %v5259_v50 = vpack.c.bf16 %v657_v55, %v645_v54  ;;  %5258 = vmatpush1.bf16.msra.mxu0 %v5257_v0  ;;  %v728_v54 = vld [vmem:[#allocation5 + $0xca0] sm:$0xff]  ;;  %v741_v55 = vld [vmem:[#allocation5 + $0xd08] sm:$0xff]  ;;  %v891_v0 = vld [vmem:[#allocation5 + $0x11b8] sm:$0xff] }
 0x144   : > { %4986 = vmatpush1.bf16.msra.mxu1 %v4985_v28  ;;  %1260 = vmatprep.mubr.f32.mxu1 %v6914_v53  ;;  %v4993_v53 = vpack.c.bf16 %v770_v59, %v758_v57  ;;  %v843_v28 = vld [vmem:[#allocation5 + $0x1038] sm:$0xff]  ;;  %v5007_v57 = vpack.c.bf16 %v867_v44, %v855_v40  ;;  %v854_v59 = vld [vmem:[#allocation5 + $0x1090] sm:$0xff] }
 0x145   : > { %4988 = vmatprep.subr.bf16.mxu1 %v4987_v34  ;;  %5260 = vmatprep.subr.bf16.mxu0 %v5259_v50  ;;  %v704_v34 = vld [vmem:[#allocation5 + $0xbe0] sm:$0xff]  ;;  %v5003_v37 = vpack.c.bf16 %v843_v28, %v831_v27  ;;  %v367_v27 = vld [vmem:[#allocation5 + $0x158] sm:$0xff]  ;;  %v7083_v44 = vld [vmem:[%s6891_s11 + $0x50] sm:$0xff] }
 0x146   : > { %v5269_v47 = vpack.c.bf16 %v704_v34, %v692_v32  ;;  %v7073_v28 = vld [vmem:[%s6891_s11 + $0x38] sm:$0xff]  ;;  %v800_v32 = vld [vmem:[#allocation5 + $0xee0] sm:$0xff] }
 0x147   : > { %1261 = vmatmul.mubr.f32.gmra.mrb[18].mxu1 %v6919_v1  ;;  %v5263_v1 = vpack.c.bf16 %v681_v6, %v669_v5  ;;  %5262 = vmatpush1.bf16.msra.mxu0 %v5261_v18  ;;  %v777_v5 = vld [vmem:[#allocation5 + $0xe28] sm:$0xff]  ;;  %v5011_v6 = vpack.c.bf16 %v891_v0, %v879_v63  ;;  %v391_v40 = vld [vmem:[#allocation5 + $0x218] sm:$0xff] }
 0x148   : > { %4990 = vmatpush1.bf16.msra.mxu1 %v4989_v49  ;;  %1266 = vmatprep.mubr.f32.mxu1 %v6922_v3  ;;  %v4997_v3 = vpack.c.bf16 %v794_v11, %v782_v9  ;;  %v716_v49 = vld [vmem:[#allocation5 + $0xc40] sm:$0xff]  ;;  %v890_v9 = vld [vmem:[#allocation5 + $0x11b0] sm:$0xff]  ;;  %v7089_v63 = vld [vmem:[%s6891_s11 + $0x48] sm:$0xff] }
 0x149   : > { %4992 = vmatprep.subr.bf16.mxu1 %v4991_v56  ;;  %5264 = vmatprep.subr.bf16.mxu0 %v5263_v1  ;;  %v753_v56 = vld [vmem:[#allocation5 + $0xd68] sm:$0xff]  ;;  %v5273_v50 = vpack.c.bf16 %v728_v54, %v716_v49  ;;  %v7059_v11 = vld [vmem:[%s6891_s11] sm:$0xff]  ;;  %v415_v0 = vld [vmem:[#allocation5 + $0x2d8] sm:$0xff] }
 0x14a   : > { %v764_v1 = vld [vmem:[#allocation5 + $0xdc0] sm:$0xff] }
 0x14b   : > { %1267 = vmatmul.mubr.f32.gmra.mrb[20].mxu1 %v6927_v15  ;;  %v5267_v15 = vpack.c.bf16 %v705_v51, %v693_v21  ;;  %5266 = vmatpush1.bf16.msra.mxu0 %v5265_v30  ;;  %v801_v21 = vld [vmem:[#allocation5 + $0xee8] sm:$0xff]  ;;  %v812_v49 = vld [vmem:[#allocation5 + $0xf40] sm:$0xff] }
 0x14c   : > { %4994 = vmatpush1.bf16.msra.mxu1 %v4993_v53  ;;  %1272 = vmatprep.mubr.f32.mxu1 %v6930_v17  ;;  %v5001_v17 = vpack.c.bf16 %v818_v24, %v806_v23  ;;  %v765_v53 = vld [vmem:[#allocation5 + $0xdc8] sm:$0xff]  ;;  %v342_v23 = vld [vmem:[#allocation5 + $0x90] sm:$0xff]  ;;  %v7069_v24 = vld [vmem:[%s6891_s11 + $0x18] sm:$0xff] }
 0x14d   : > { %4996 = vmatprep.subr.bf16.mxu1 %v4995_v8  ;;  %5268 = vmatprep.subr.bf16.mxu0 %v5267_v15  ;;  %v878_v8 = vld [vmem:[#allocation5 + $0x1150] sm:$0xff]  ;;  %v5279_v18 = vpack.c.bf16 %v777_v5, %v765_v53  ;;  %v788_v15 = vld [vmem:[#allocation5 + $0xe80] sm:$0xff]  ;;  %v861_v5 = vld [vmem:[#allocation5 + $0x10c8] sm:$0xff] }
 0x14e   : > { %v5013_v20 = vpack.c.bf16 %v890_v9, %v878_v8  ;;  %v824_v54 = vld [vmem:[#allocation5 + $0xfa0] sm:$0xff]  ;;  %v402_v9 = vld [vmem:[#allocation5 + $0x270] sm:$0xff] }
 0x14f   : > { %1273 = vmatmul.mubr.f32.gmra.mrb[22].mxu1 %v6935_v29  ;;  %v5271_v29 = vpack.c.bf16 %v729_v36, %v717_v35  ;;  %5270 = vmatpush1.bf16.msra.mxu0 %v5269_v47  ;;  %v825_v35 = vld [vmem:[#allocation5 + $0xfa8] sm:$0xff]  ;;  %v5285_v47 = vpack.c.bf16 %v800_v32, %v788_v15  ;;  %v7113_v15 = vld [vmem:[%s6891_s11 + $0x98] sm:$0xff] }
 0x150   : > { %4998 = vmatpush1.bf16.msra.mxu1 %v4997_v3  ;;  %1278 = vmatprep.mubr.f32.mxu1 %v6938_v31  ;;  %v5005_v31 = vpack.c.bf16 %v842_v39, %v830_v38  ;;  %v789_v3 = vld [vmem:[#allocation5 + $0xe88] sm:$0xff]  ;;  %v366_v38 = vld [vmem:[#allocation5 + $0x150] sm:$0xff] }
 0x151   : > { %5000 = vmatprep.subr.bf16.mxu1 %v4999_v22  ;;  %5272 = vmatprep.subr.bf16.mxu0 %v5271_v29  ;;  %v330_v22 = vld [vmem:[#allocation5 + $0x30] sm:$0xff]  ;;  %v5283_v30 = vpack.c.bf16 %v801_v21, %v789_v3  ;;  %v872_v3 = vld [vmem:[#allocation5 + $0x1120] sm:$0xff] }
 0x152   : > { %1933 = vmatmul.mubr.f32.vlgmr.msra.gmra.mrb[16].mxu0 %v7059_v11  ;;  %v5113_v34 = vpack.c.bf16 %v342_v23, %v330_v22  ;;  %v7079_v39 = vld [vmem:[%s6891_s11 + $0x30] sm:$0xff]  ;;  %v897_v22 = vld [vmem:[#allocation5 + $0x11e8] sm:$0xff] }
 0x153   : > { %1279 = vmatmul.mubr.f32.gmra.mrb[24].mxu1 %v6943_v43  ;;  %v5275_v43 = vpack.c.bf16 %v753_v56, %v741_v55  ;;  %5274 = vmatpush1.bf16.msra.mxu0 %v5273_v50  ;;  %v837_v55 = vld [vmem:[#allocation5 + $0x1008] sm:$0xff] }
 0x154   : > { %5002 = vmatpush1.bf16.msra.mxu1 %v5001_v17  ;;  %1284 = vmatprep.mubr.f32.mxu1 %v6946_v45  ;;  %v5009_v45 = vpack.c.bf16 %v866_v60, %v854_v59  ;;  %v813_v17 = vld [vmem:[#allocation5 + $0xf48] sm:$0xff]  ;;  %v378_v59 = vld [vmem:[#allocation5 + $0x1b0] sm:$0xff] }
 0x155   : > { %5004 = vmatprep.subr.bf16.mxu1 %v5003_v37  ;;  %1938 = vmatprep.mubr.f32.mxu0 %v7063_v13  ;;  %v354_v37 = vld [vmem:[#allocation5 + $0xf0] sm:$0xff]  ;;  %v5287_v29 = vpack.c.bf16 %v825_v35, %v813_v17  ;;  %v849_v56 = vld [vmem:[#allocation5 + $0x1068] sm:$0xff]  ;;  %v884_v17 = vld [vmem:[#allocation5 + $0x1180] sm:$0xff] }
 0x156   : > { %5276 = vmatprep.subr.bf16.mxu0 %v5275_v43  ;;  %1939 = vmatmul.mubr.f32.gmra.mrb[18].mxu0 %v7069_v24  ;;  %v390_v60 = vld [vmem:[#allocation5 + $0x210] sm:$0xff]  ;;  %v7093_v50 = vld [vmem:[%s6891_s11 + $0x68] sm:$0xff]  ;;  %v5289_v43 = vpack.c.bf16 %v824_v54, %v812_v49  ;;  %v896_v35 = vld [vmem:[#allocation5 + $0x11e0] sm:$0xff] }
 0x157   : > { %1285 = vmatmul.mubr.f32.gmra.mrb[26].mxu1 %v6951_v58  ;;  %v331_v58 = vld [vmem:[#allocation5 + $0x38] sm:$0xff]  ;;  %1944 = vmatprep.mubr.f32.mxu0 %v7073_v28  ;;  %v5121_v53 = vpack.c.bf16 %v390_v60, %v378_v59  ;;  %v7123_v54 = vld [vmem:[%s6891_s11 + $0xb0] sm:$0xff]  ;;  %v2423_v60 = vld [vmem:[#allocation8 + $0x38] sm:$0xff] }
 0x158   : > { %5006 = vmatpush1.bf16.msra.mxu1 %v5005_v31  ;;  %1290 = vmatprep.mubr.f32.mxu1 %v6954_v62  ;;  %v5277_v62 = vpack.c.bf16 %v752_v4, %v740_v2  ;;  %v5111_v51 = vpack.c.bf16 %v343_v12, %v331_v58  ;;  %v5117_v31 = vpack.c.bf16 %v366_v38, %v354_v37  ;;  %v836_v4 = vld [vmem:[#allocation5 + $0x1000] sm:$0xff]  ;;  %v414_v58 = vld [vmem:[#allocation5 + $0x2d0] sm:$0xff]  ;;  %v487_v49 = vld [vmem:[#allocation5 + $0x518] sm:$0xff] }
 0x159   : > { %5008 = vmatprep.subr.bf16.mxu1 %v5007_v57  ;;  %v5291_v2 = vpack.c.bf16 %v849_v56, %v837_v55  ;;  %v7099_v12 = vld [vmem:[%s6891_s11 + $0x60] sm:$0xff]  ;;  %v5125_v21 = vpack.c.bf16 %v414_v58, %v402_v9  ;;  %v2417_v37 = vld [vmem:[#allocation8 + $0x8] sm:$0xff]  ;;  %v2420_v38 = vld [vmem:[#allocation8 + $0x20] sm:$0xff] }
 0x15a   : > { %5278 = vmatpush1.bf16.msra.mxu0 %v5277_v62  ;;  %v439_v62 = vld [vmem:[#allocation5 + $0x398] sm:$0xff]  ;;  %v5399_v55 = vpack.c.bf16 %v2420_v38, %v2417_v37  ;;  %v2416_v56 = vld [vmem:[#allocation8] sm:$0xff] }
 0x15b   : > { %1291 = vmatmul.mubr.f32.gmra.mrb[28].mxu1 %v6959_v10  ;;  %v355_v10 = vld [vmem:[#allocation5 + $0xf8] sm:$0xff]  ;;  %5280 = vmatprep.subr.bf16.mxu0 %v5279_v18  ;;  %v7103_v18 = vld [vmem:[%s6891_s11 + $0x80] sm:$0xff] }
 0x15c   : > { %5010 = vmatpush1.bf16.msra.mxu1 %v5009_v45  ;;  %1296 = vmatprep.mubr.f32.mxu1 %v6962_v14  ;;  %v5281_v14 = vpack.c.bf16 %v776_v19, %v764_v1  ;;  %v5115_v36 = vpack.c.bf16 %v367_v27, %v355_v10  ;;  %v848_v45 = vld [vmem:[#allocation5 + $0x1060] sm:$0xff]  ;;  %v426_v10 = vld [vmem:[#allocation5 + $0x330] sm:$0xff] }
 0x15d   : > { %5012 = vmatprep.subr.bf16.mxu1 %v5011_v6  ;;  %1945 = vmatmul.mubr.f32.gmra.mrb[20].mxu0 %v7079_v39  ;;  %v873_v6 = vld [vmem:[#allocation5 + $0x1128] sm:$0xff]  ;;  %v5293_v1 = vpack.c.bf16 %v848_v45, %v836_v4  ;;  %v438_v27 = vld [vmem:[#allocation5 + $0x390] sm:$0xff]  ;;  %v499_v45 = vld [vmem:[#allocation5 + $0x578] sm:$0xff] }
 0x15e   : > { %5282 = vmatpush1.bf16.msra.mxu0 %v5281_v14  ;;  %1950 = vmatprep.mubr.f32.mxu0 %v7083_v44  ;;  %v5295_v19 = vpack.c.bf16 %v873_v6, %v861_v5  ;;  %v7109_v14 = vld [vmem:[%s6891_s11 + $0x78] sm:$0xff]  ;;  %v7129_v4 = vld [vmem:[%s6891_s11 + $0xa8] sm:$0xff] }
 0x15f   : > { %1297 = vmatmul.mubr.f32.gmra.mrb[30].mxu1 %v6969_v26  ;;  %v379_v26 = vld [vmem:[#allocation5 + $0x1b8] sm:$0xff]  ;;  %5284 = vmatprep.subr.bf16.mxu0 %v5283_v30 }
 0x160   : > { %5014 = vmatpush1.bf16.msra.mxu1 %v5013_v20  ;;  %1367 = vmatprep.mubr.f32.mxu1 %v6637_v41  ;;  %v5119_v57 = vpack.c.bf16 %v391_v40, %v379_v26  ;;  %v860_v20 = vld [vmem:[#allocation5 + $0x10c0] sm:$0xff]  ;;  %v463_v30 = vld [vmem:[#allocation5 + $0x458] sm:$0xff]  ;;  %v450_v40 = vld [vmem:[#allocation5 + $0x3f0] sm:$0xff] }
 0x161   : > { %5112 = vmatprep.subr.bf16.mxu1 %v5111_v51  ;;  %1951 = vmatmul.mubr.f32.gmra.mrb[22].mxu0 %v7089_v63  ;;  %v885_v51 = vld [vmem:[#allocation5 + $0x1188] sm:$0xff]  ;;  %v5297_v32 = vpack.c.bf16 %v872_v3, %v860_v20  ;;  %v2422_v6 = vld [vmem:[#allocation8 + $0x30] sm:$0xff]  ;;  %v2429_v58 = vld [vmem:[#allocation8 + $0x68] sm:$0xff] }
 0x162   : > { %5286 = vmatpush1.bf16.msra.mxu0 %v5285_v47  ;;  %1956 = vmatprep.mubr.f32.mxu0 %v7093_v50  ;;  %v462_v47 = vld [vmem:[#allocation5 + $0x450] sm:$0xff]  ;;  %v523_v3 = vld [vmem:[#allocation5 + $0x638] sm:$0xff] }
 0x163   : > { %1368 = vmatmul.mubr.f32.vlgmr.msra.gmra.mrb[16].mxu1 %v6976_v42  ;;  %v403_v42 = vld [vmem:[#allocation5 + $0x278] sm:$0xff]  ;;  %5288 = vmatprep.subr.bf16.mxu0 %v5287_v29  ;;  %v7119_v29 = vld [vmem:[%s6891_s11 + $0x90] sm:$0xff]  ;;  %v5133_v59 = vpack.c.bf16 %v462_v47, %v450_v40 }
 0x164   : > { %5114 = vmatpush1.bf16.msra.mxu1 %v5113_v34  ;;  %1373 = vmatprep.mubr.f32.mxu1 %v6637_v41  ;;  %v5123_v8 = vpack.c.bf16 %v415_v0, %v403_v42  ;;  %v5299_v34 = vpack.c.bf16 %v897_v22, %v885_v51  ;;  %v2426_v42 = vld [vmem:[#allocation8 + $0x50] sm:$0xff]  ;;  %v7136_v20 = vld [vmem:[%s6891_s11 + $0x10] sm:$0xff] }
 0x165   : > { %5116 = vmatprep.subr.bf16.mxu1 %v5115_v36  ;;  %1957 = vmatmul.mubr.f32.gmra.mrb[24].mxu0 %v7099_v12  ;;  %v5129_v36 = vpack.c.bf16 %v438_v27, %v426_v10  ;;  %v5403_v5 = vpack.c.bf16 %v2426_v42, %v2423_v60  ;;  %v2428_v22 = vld [vmem:[#allocation8 + $0x60] sm:$0xff]  ;;  %v2435_v27 = vld [vmem:[#allocation8 + $0x98] sm:$0xff]  ;;  %v2434_v38 = vld [vmem:[#allocation8 + $0x90] sm:$0xff] }
 0x166   : > { %5290 = vmatpush1.bf16.msra.mxu0 %v5289_v43  ;;  %1962 = vmatprep.mubr.f32.mxu0 %v7103_v18  ;;  %v474_v43 = vld [vmem:[#allocation5 + $0x4b0] sm:$0xff]  ;;  %v2443_v42 = vld [vmem:[#allocation8 + $0xd8] sm:$0xff] }
 0x167   : > { %1374 = vmatmul.mubr.f32.gmra.mrb[18].mxu1 %v6983_v61  ;;  %v427_v61 = vld [vmem:[#allocation5 + $0x338] sm:$0xff]  ;;  %5292 = vmatprep.subr.bf16.mxu0 %v5291_v2  ;;  %v486_v2 = vld [vmem:[#allocation5 + $0x510] sm:$0xff] }
 0x168   : > { %5118 = vmatpush1.bf16.msra.mxu1 %v5117_v31  ;;  %1379 = vmatprep.mubr.f32.mxu1 %v6637_v41  ;;  %v5127_v23 = vpack.c.bf16 %v439_v62, %v427_v61  ;;  %v5301_v31 = vpack.c.bf16 %v896_v35, %v884_v17  ;;  %v5137_v9 = vpack.c.bf16 %v486_v2, %v474_v43  ;;  %v2432_v61 = vld [vmem:[#allocation8 + $0x80] sm:$0xff]  ;;  %v547_v35 = vld [vmem:[#allocation5 + $0x6f8] sm:$0xff]  ;;  %v2447_v43 = vld [vmem:[#allocation8 + $0xf8] sm:$0xff] }
 0x169   : > { %5120 = vmatprep.subr.bf16.mxu1 %v5119_v57  ;;  %1963 = vmatmul.mubr.f32.gmra.mrb[26].mxu0 %v7109_v14  ;;  %v2419_v57 = vld [vmem:[#allocation8 + $0x18] sm:$0xff]  ;;  %v5407_v51 = vpack.c.bf16 %v2432_v61, %v2429_v58  ;;  %v2441_v47 = vld [vmem:[#allocation8 + $0xc8] sm:$0xff]  ;;  %v2450_v2 = vld [vmem:[#allocation8 + $0x110] sm:$0xff] }
 0x16a   : > { %5294 = vmatpush1.bf16.msra.mxu0 %v5293_v1  ;;  %1968 = vmatprep.mubr.f32.mxu0 %v7113_v15  ;;  %v498_v1 = vld [vmem:[#allocation5 + $0x570] sm:$0xff]  ;;  %v7143_v17 = vld [vmem:[%s6891_s11 + $0x28] sm:$0xff]  ;;  %v5419_v58 = vpack.c.bf16 %v2450_v2, %v2447_v43  ;;  %v2446_v61 = vld [vmem:[#allocation8 + $0xf0] sm:$0xff] }
 0x16b   : > { %1380 = vmatmul.mubr.f32.gmra.mrb[20].mxu1 %v6990_v16  ;;  %v451_v16 = vld [vmem:[#allocation5 + $0x3f8] sm:$0xff]  ;;  %5296 = vmatprep.subr.bf16.mxu0 %v5295_v19  ;;  %v510_v19 = vld [vmem:[#allocation5 + $0x5d0] sm:$0xff] }
 0x16c   : > { %5122 = vmatpush1.bf16.msra.mxu1 %v5121_v53  ;;  %1385 = vmatprep.mubr.f32.mxu1 %v6637_v41  ;;  %v5131_v26 = vpack.c.bf16 %v463_v30, %v451_v16  ;;  %v5401_v53 = vpack.c.bf16 %v2419_v57, %v2416_v56  ;;  %v5141_v10 = vpack.c.bf16 %v510_v19, %v498_v1  ;;  %v2438_v16 = vld [vmem:[#allocation8 + $0xb0] sm:$0xff]  ;;  %v2453_v19 = vld [vmem:[#allocation8 + $0x128] sm:$0xff] }
 0x16d   : > { %5124 = vmatprep.subr.bf16.mxu1 %v5123_v8  ;;  %1969 = vmatmul.mubr.f32.gmra.mrb[28].mxu0 %v7119_v29  ;;  %v2425_v8 = vld [vmem:[#allocation8 + $0x48] sm:$0xff]  ;;  %v5411_v37 = vpack.c.bf16 %v2438_v16, %v2435_v27  ;;  %v7150_v56 = vld [vmem:[%s6891_s11 + $0x40] sm:$0xff] }
 0x16e   : > { %5298 = vmatpush1.bf16.msra.mxu0 %v5297_v32  ;;  %1974 = vmatprep.mubr.f32.mxu0 %v7123_v54  ;;  %v522_v32 = vld [vmem:[#allocation5 + $0x630] sm:$0xff]  ;;  %v571_v57 = vld [vmem:[#allocation5 + $0x7b8] sm:$0xff] }
 0x16f   : > { %1386 = vmatmul.mubr.f32.gmra.mrb[22].mxu1 %v6997_v33  ;;  %v475_v33 = vld [vmem:[#allocation5 + $0x4b8] sm:$0xff]  ;;  %5300 = vmatprep.subr.bf16.mxu0 %v5299_v34  ;;  %v534_v34 = vld [vmem:[#allocation5 + $0x690] sm:$0xff] }
 0x170   : > { %5126 = vmatpush1.bf16.msra.mxu1 %v5125_v21  ;;  %1391 = vmatprep.mubr.f32.mxu1 %v6637_v41  ;;  %v5135_v0 = vpack.c.bf16 %v487_v49, %v475_v33  ;;  %v5405_v21 = vpack.c.bf16 %v2425_v8, %v2422_v6  ;;  %v5145_v40 = vpack.c.bf16 %v534_v34, %v522_v32  ;;  %v2444_v33 = vld [vmem:[#allocation8 + $0xe0] sm:$0xff]  ;;  %v595_v6 = vld [vmem:[#allocation5 + $0x878] sm:$0xff]  ;;  %v2455_v32 = vld [vmem:[#allocation8 + $0x138] sm:$0xff] }
 0x171   : > { %5128 = vmatprep.subr.bf16.mxu1 %v5127_v23  ;;  %1975 = vmatmul.mubr.f32.gmra.mrb[30].mxu0 %v7129_v4  ;;  %v2431_v23 = vld [vmem:[#allocation8 + $0x78] sm:$0xff]  ;;  %v5415_v60 = vpack.c.bf16 %v2444_v33, %v2441_v47  ;;  %v607_v8 = vld [vmem:[#allocation5 + $0x8d8] sm:$0xff] }
 0x172   : > { %5302 = vmatpush1.bf16.msra.mxu0 %v5301_v31  ;;  %2045 = vmatprep.mubr.f32.mxu0 %v6637_v41  ;;  %v546_v31 = vld [vmem:[#allocation5 + $0x6f0] sm:$0xff]  ;;  %v655_v47 = vld [vmem:[#allocation5 + $0xa58] sm:$0xff] }
 0x173   : > { %1392 = vmatmul.mubr.f32.gmra.mrb[24].mxu1 %v7004_v52  ;;  %v511_v52 = vld [vmem:[#allocation5 + $0x5d8] sm:$0xff]  ;;  %5400 = vmatprep.subr.bf16.mxu0 %v5399_v55  ;;  %v558_v55 = vld [vmem:[#allocation5 + $0x750] sm:$0xff] }
 0x174   : > { %5130 = vmatpush1.bf16.msra.mxu1 %v5129_v36  ;;  %1397 = vmatprep.mubr.f32.mxu1 %v6637_v41  ;;  %v5139_v62 = vpack.c.bf16 %v511_v52, %v499_v45  ;;  %v5409_v36 = vpack.c.bf16 %v2431_v23, %v2428_v22  ;;  %v570_v52 = vld [vmem:[#allocation5 + $0x7b0] sm:$0xff]  ;;  %v619_v23 = vld [vmem:[#allocation5 + $0x938] sm:$0xff] }
 0x175   : > { %5132 = vmatprep.subr.bf16.mxu1 %v5131_v26  ;;  %2046 = vmatmul.mubr.f32.vlgmr.msra.gmra.mrb[16].mxu0 %v7136_v20  ;;  %v2437_v26 = vld [vmem:[#allocation8 + $0xa8] sm:$0xff] }
 0x176   : > { %5402 = vmatpush1.bf16.msra.mxu0 %v5401_v53  ;;  %2051 = vmatprep.mubr.f32.mxu0 %v6637_v41  ;;  %v582_v53 = vld [vmem:[#allocation5 + $0x810] sm:$0xff]  ;;  %v667_v43 = vld [vmem:[#allocation5 + $0xab8] sm:$0xff] }
 0x177   : > { %1398 = vmatmul.mubr.f32.gmra.mrb[26].mxu1 %v7011_v7  ;;  %v535_v7 = vld [vmem:[#allocation5 + $0x698] sm:$0xff]  ;;  %5404 = vmatprep.subr.bf16.mxu0 %v5403_v5  ;;  %v5153_v1 = vpack.c.bf16 %v582_v53, %v570_v52  ;;  %v7160_v22 = vld [vmem:[%s6891_s11 + $0x70] sm:$0xff] }
 0x178   : > { %5134 = vmatpush1.bf16.msra.mxu1 %v5133_v59  ;;  %1403 = vmatprep.mubr.f32.mxu1 %v6637_v41  ;;  %v5143_v30 = vpack.c.bf16 %v535_v7, %v523_v3  ;;  %v5413_v59 = vpack.c.bf16 %v2437_v26, %v2434_v38  ;;  %v7155_v5 = vld [vmem:[%s6891_s11 + $0x58] sm:$0xff]  ;;  %v2456_v3 = vld [vmem:[#allocation8 + $0x140] sm:$0xff]  ;;  %v5155_v7 = vpack.c.bf16 %v607_v8, %v595_v6  ;;  %v2467_v6 = vld [vmem:[#allocation8 + $0x198] sm:$0xff] }
 0x179   : > { %5136 = vmatprep.subr.bf16.mxu1 %v5135_v0  ;;  %2052 = vmatmul.mubr.f32.gmra.mrb[18].mxu0 %v7143_v17  ;;  %v5149_v0 = vpack.c.bf16 %v558_v55, %v546_v31  ;;  %v5423_v16 = vpack.c.bf16 %v2456_v3, %v2453_v19  ;;  %v630_v38 = vld [vmem:[#allocation5 + $0x990] sm:$0xff]  ;;  %v7165_v26 = vld [vmem:[%s6891_s11 + $0x88] sm:$0xff]  ;;  %v2458_v31 = vld [vmem:[#allocation8 + $0x150] sm:$0xff] }
 0x17a   : > { %5406 = vmatpush1.bf16.msra.mxu0 %v5405_v21  ;;  %2057 = vmatprep.mubr.f32.mxu0 %v6637_v41  ;;  %v594_v21 = vld [vmem:[#allocation5 + $0x870] sm:$0xff]  ;;  %v679_v2 = vld [vmem:[#allocation5 + $0xb18] sm:$0xff] }
 0x17b   : > { %1404 = vmatmul.mubr.f32.gmra.mrb[28].mxu1 %v7018_v25  ;;  %v559_v25 = vld [vmem:[#allocation5 + $0x758] sm:$0xff]  ;;  %5408 = vmatprep.subr.bf16.mxu0 %v5407_v51  ;;  %v606_v51 = vld [vmem:[#allocation5 + $0x8d0] sm:$0xff] }
 0x17c   : > { %5138 = vmatpush1.bf16.msra.mxu1 %v5137_v9  ;;  %1409 = vmatprep.mubr.f32.mxu1 %v6637_v41  ;;  %v5147_v49 = vpack.c.bf16 %v559_v25, %v547_v35  ;;  %v5157_v34 = vpack.c.bf16 %v606_v51, %v594_v21  ;;  %v2459_v35 = vld [vmem:[#allocation8 + $0x158] sm:$0xff]  ;;  %v2462_v25 = vld [vmem:[#allocation8 + $0x170] sm:$0xff]  ;;  %v2461_v55 = vld [vmem:[#allocation8 + $0x168] sm:$0xff] }
 0x17d   : > { %5140 = vmatprep.subr.bf16.mxu1 %v5139_v62  ;;  %2058 = vmatmul.mubr.f32.gmra.mrb[20].mxu0 %v7150_v56  ;;  %v2449_v62 = vld [vmem:[#allocation8 + $0x108] sm:$0xff]  ;;  %v2464_v53 = vld [vmem:[#allocation8 + $0x180] sm:$0xff] }
 0x17e   : > { %5410 = vmatpush1.bf16.msra.mxu0 %v5409_v36  ;;  %2063 = vmatprep.mubr.f32.mxu0 %v6637_v41  ;;  %v5421_v27 = vpack.c.bf16 %v2449_v62, %v2446_v61  ;;  %v5167_v61 = vpack.c.bf16 %v679_v2, %v667_v43  ;;  %v666_v62 = vld [vmem:[#allocation5 + $0xab0] sm:$0xff]  ;;  %v7175_v19 = vld [vmem:[%s6891_s11 + $0xb8] sm:$0xff]  ;;  %v5433_v21 = vpack.c.bf16 %v2467_v6, %v2464_v53 }
 0x17f   : > { %1410 = vmatmul.mubr.f32.gmra.mrb[30].mxu1 %v7025_v46  ;;  %v583_v46 = vld [vmem:[#allocation5 + $0x818] sm:$0xff]  ;;  %5412 = vmatprep.subr.bf16.mxu0 %v5411_v37  ;;  %v618_v37 = vld [vmem:[#allocation5 + $0x930] sm:$0xff] }
 0x180   : > { %5142 = vmatpush1.bf16.msra.mxu1 %v5141_v10  ;;  %1706 = vmatprep.mubr.f32.mxu1 %v7043_v48  ;;  %v2440_v48 = vld [vmem:[#allocation8 + $0xc0] sm:$0xff]  ;;  %v5151_v45 = vpack.c.bf16 %v583_v46, %v571_v57  ;;  %v631_v10 = vld [vmem:[#allocation5 + $0x998] sm:$0xff]  ;;  %v5161_v57 = vpack.c.bf16 %v630_v38, %v618_v37 }
 0x181   : > { %5144 = vmatprep.subr.bf16.mxu1 %v5143_v30  ;;  %2064 = vmatmul.mubr.f32.gmra.mrb[22].mxu0 %v7155_v5  ;;  %v5417_v9 = vpack.c.bf16 %v2443_v42, %v2440_v48  ;;  %v2452_v30 = vld [vmem:[#allocation8 + $0x120] sm:$0xff]  ;;  %v5159_v36 = vpack.c.bf16 %v631_v10, %v619_v23  ;;  %v2465_v46 = vld [vmem:[#allocation8 + $0x188] sm:$0xff]  ;;  %v2470_v23 = vld [vmem:[#allocation8 + $0x1b0] sm:$0xff] }
 0x182   : > { %5414 = vmatpush1.bf16.msra.mxu0 %v5413_v59  ;;  %2069 = vmatprep.mubr.f32.mxu0 %v6637_v41  ;;  %v5425_v33 = vpack.c.bf16 %v2455_v32, %v2452_v30  ;;  %v2468_v59 = vld [vmem:[#allocation8 + $0x1a0] sm:$0xff]  ;;  %v691_v3 = vld [vmem:[#allocation5 + $0xb78] sm:$0xff] }
 0x183   : > { %5416 = vmatprep.subr.bf16.mxu0 %v5415_v60  ;;  %v642_v48 = vld [vmem:[#allocation5 + $0x9f0] sm:$0xff]  ;;  %v5431_v52 = vpack.c.bf16 %v2468_v59, %v2465_v46  ;;  %v739_v59 = vld [vmem:[#allocation5 + $0xcf8] sm:$0xff] }
 0x184   : > { %5146 = vmatpush1.bf16.msra.mxu1 %v5145_v40  ;;  %v643_v40 = vld [vmem:[#allocation5 + $0x9f8] sm:$0xff]  ;;  %v654_v42 = vld [vmem:[#allocation5 + $0xa50] sm:$0xff] }
 0x185   : > { %5148 = vmatprep.subr.bf16.mxu1 %v5147_v49  ;;  %2070 = vmatmul.mubr.f32.gmra.mrb[24].mxu0 %v7160_v22  ;;  %v5427_v49 = vpack.c.bf16 %v2462_v25, %v2459_v35  ;;  %v5163_v60 = vpack.c.bf16 %v655_v47, %v643_v40  ;;  %v5165_v8 = vpack.c.bf16 %v654_v42, %v642_v48  ;;  %v2473_v10 = vld [vmem:[#allocation8 + $0x1c8] sm:$0xff]  ;;  %v2480_v30 = vld [vmem:[#allocation8 + $0x200] sm:$0xff]  ;;  %v2479_v47 = vld [vmem:[#allocation8 + $0x1f8] sm:$0xff] }
 0x186   : > { %5418 = vmatpush1.bf16.msra.mxu0 %v5417_v9  ;;  %2075 = vmatprep.mubr.f32.mxu0 %v6637_v41  ;;  %v2471_v9 = vld [vmem:[#allocation8 + $0x1b8] sm:$0xff]  ;;  %v702_v35 = vld [vmem:[#allocation5 + $0xbd0] sm:$0xff]  ;;  %v715_v25 = vld [vmem:[#allocation5 + $0xc38] sm:$0xff]  ;;  %v5437_v37 = vpack.c.bf16 %v2473_v10, %v2470_v23 }
 0x187   : > { %5420 = vmatprep.subr.bf16.mxu0 %v5419_v58  ;;  %v2474_v58 = vld [vmem:[#allocation8 + $0x1d0] sm:$0xff]  ;;  %v2476_v40 = vld [vmem:[#allocation8 + $0x1e0] sm:$0xff]  ;;  %v2485_v2 = vld [vmem:[#allocation8 + $0x228] sm:$0xff] }
 0x188   : > { %5150 = vmatpush1.bf16.msra.mxu1 %v5149_v0  ;;  %v7170_v0 = vld [vmem:[%s6891_s11 + $0xa0] sm:$0xff]  ;;  %v5435_v51 = vpack.c.bf16 %v2474_v58, %v2471_v9  ;;  %v726_v46 = vld [vmem:[#allocation5 + $0xc90] sm:$0xff]  ;;  %v5441_v48 = vpack.c.bf16 %v2479_v47, %v2476_v40  ;;  %v763_v58 = vld [vmem:[#allocation5 + $0xdb8] sm:$0xff] }
 0x189   : > { %5152 = vmatprep.subr.bf16.mxu1 %v5151_v45  ;;  %2076 = vmatmul.mubr.f32.gmra.mrb[26].mxu0 %v7165_v26  ;;  %v5429_v45 = vpack.c.bf16 %v2461_v55, %v2458_v31  ;;  %v2486_v31 = vld [vmem:[#allocation8 + $0x230] sm:$0xff]  ;;  %v2492_v53 = vld [vmem:[#allocation8 + $0x260] sm:$0xff] }
 0x18a   : > { %5422 = vmatpush1.bf16.msra.mxu0 %v5421_v27  ;;  %2081 = vmatprep.mubr.f32.mxu0 %v6637_v41  ;;  %v2482_v43 = vld [vmem:[#allocation8 + $0x210] sm:$0xff]  ;;  %v750_v9 = vld [vmem:[#allocation5 + $0xd50] sm:$0xff] }
 0x18b   : > { %5424 = vmatprep.subr.bf16.mxu0 %v5423_v16  ;;  %v2477_v16 = vld [vmem:[#allocation8 + $0x1e8] sm:$0xff]  ;;  %v2498_v23 = vld [vmem:[#allocation8 + $0x290] sm:$0xff] }
 0x18c   : > { %5154 = vmatpush1.bf16.msra.mxu1 %v5153_v1  ;;  %v678_v1 = vld [vmem:[#allocation5 + $0xb10] sm:$0xff]  ;;  %v5439_v38 = vpack.c.bf16 %v2480_v30, %v2477_v16  ;;  %v787_v30 = vld [vmem:[#allocation5 + $0xe78] sm:$0xff] }
 0x18d   : > { %5156 = vmatprep.subr.bf16.mxu1 %v5155_v7  ;;  %2082 = vmatmul.mubr.f32.gmra.mrb[28].mxu0 %v7170_v0  ;;  %v703_v7 = vld [vmem:[#allocation5 + $0xbd8] sm:$0xff]  ;;  %v5169_v27 = vpack.c.bf16 %v678_v1, %v666_v62  ;;  %v5445_v62 = vpack.c.bf16 %v2485_v2, %v2482_v43  ;;  %v774_v16 = vld [vmem:[#allocation5 + $0xe10] sm:$0xff] }
 0x18e   : > { %5426 = vmatpush1.bf16.msra.mxu0 %v5425_v33  ;;  %2087 = vmatprep.mubr.f32.mxu0 %v6637_v41  ;;  %v5171_v32 = vpack.c.bf16 %v703_v7, %v691_v3  ;;  %v2488_v3 = vld [vmem:[#allocation8 + $0x240] sm:$0xff]  ;;  %v2491_v7 = vld [vmem:[#allocation8 + $0x258] sm:$0xff]  ;;  %v835_v43 = vld [vmem:[#allocation5 + $0xff8] sm:$0xff] }
 0x18f   : > { %5428 = vmatprep.subr.bf16.mxu0 %v5427_v49  ;;  %v2483_v49 = vld [vmem:[#allocation8 + $0x218] sm:$0xff]  ;;  %v786_v40 = vld [vmem:[#allocation5 + $0xe70] sm:$0xff]  ;;  %v847_v2 = vld [vmem:[#allocation5 + $0x1058] sm:$0xff] }
 0x190   : > { %5158 = vmatpush1.bf16.msra.mxu1 %v5157_v34  ;;  %v690_v34 = vld [vmem:[#allocation5 + $0xb70] sm:$0xff]  ;;  %v5443_v42 = vpack.c.bf16 %v2486_v31, %v2483_v49  ;;  %v823_v49 = vld [vmem:[#allocation5 + $0xf98] sm:$0xff] }
 0x191   : > { %5160 = vmatprep.subr.bf16.mxu1 %v5159_v36  ;;  %2088 = vmatmul.mubr.f32.gmra.mrb[30].mxu0 %v7175_v19  ;;  %v727_v36 = vld [vmem:[#allocation5 + $0xc98] sm:$0xff]  ;;  %v5173_v33 = vpack.c.bf16 %v702_v35, %v690_v34  ;;  %v5449_v34 = vpack.c.bf16 %v2491_v7, %v2488_v3  ;;  %v798_v47 = vld [vmem:[#allocation5 + $0xed0] sm:$0xff] }
 0x192   : > { %5430 = vmatpush1.bf16.msra.mxu0 %v5429_v45  ;;  %v5175_v55 = vpack.c.bf16 %v727_v36, %v715_v25  ;;  %v2494_v35 = vld [vmem:[#allocation8 + $0x270] sm:$0xff]  ;;  %v2497_v25 = vld [vmem:[#allocation8 + $0x288] sm:$0xff] }
 0x193   : > { %5432 = vmatprep.subr.bf16.mxu0 %v5431_v52  ;;  %v2489_v52 = vld [vmem:[#allocation8 + $0x248] sm:$0xff]  ;;  %v5453_v31 = vpack.c.bf16 %v2497_v25, %v2494_v35 }
 0x194   : > { %5162 = vmatpush1.bf16.msra.mxu1 %v5161_v57  ;;  %v714_v57 = vld [vmem:[#allocation5 + $0xc30] sm:$0xff]  ;;  %v5447_v1 = vpack.c.bf16 %v2492_v53, %v2489_v52  ;;  %v2506_v52 = vld [vmem:[#allocation8 + $0x2d0] sm:$0xff] }
 0x195   : > { %5164 = vmatprep.subr.bf16.mxu1 %v5163_v60  ;;  %v751_v60 = vld [vmem:[#allocation5 + $0xd58] sm:$0xff]  ;;  %v5177_v45 = vpack.c.bf16 %v726_v46, %v714_v57  ;;  %v2503_v57 = vld [vmem:[#allocation8 + $0x2b8] sm:$0xff]  ;;  %v346_v35 = vld [vmem:[#allocation5 + $0xb0] sm:$0xff] }
 0x196   : > { %5434 = vmatpush1.bf16.msra.mxu0 %v5433_v21  ;;  %v5179_v6 = vpack.c.bf16 %v751_v60, %v739_v59  ;;  %v2501_v36 = vld [vmem:[#allocation8 + $0x2a8] sm:$0xff]  ;;  %v2507_v46 = vld [vmem:[#allocation8 + $0x2d8] sm:$0xff]  ;;  %v2510_v59 = vld [vmem:[#allocation8 + $0x2f0] sm:$0xff] }
 0x197   : > { %5436 = vmatprep.subr.bf16.mxu0 %v5435_v51  ;;  %v2495_v51 = vld [vmem:[#allocation8 + $0x278] sm:$0xff]  ;;  %v2509_v53 = vld [vmem:[#allocation8 + $0x2e8] sm:$0xff] }
 0x198   : > { %5166 = vmatpush1.bf16.msra.mxu1 %v5165_v8  ;;  %v738_v8 = vld [vmem:[#allocation5 + $0xcf0] sm:$0xff]  ;;  %v5461_v3 = vpack.c.bf16 %v2509_v53, %v2506_v52  ;;  %v359_v25 = vld [vmem:[#allocation5 + $0x118] sm:$0xff]  ;;  %v7207_v52 = vld [vmem:[#allocation7] sm:$0xff] }
 0x199   : > { %5168 = vmatprep.subr.bf16.mxu1 %v5167_v61  ;;  %v775_v61 = vld [vmem:[#allocation5 + $0xe18] sm:$0xff]  ;;  %v5181_v21 = vpack.c.bf16 %v750_v9, %v738_v8  ;;  %v2516_v8 = vld [vmem:[#allocation8 + $0x320] sm:$0xff]  ;;  %v5195_v9 = vpack.c.bf16 %v847_v2, %v835_v43 }
 0x19a   : > { %5438 = vmatpush1.bf16.msra.mxu0 %v5437_v37  ;;  %v5183_v10 = vpack.c.bf16 %v775_v61, %v763_v58  ;;  %v2504_v37 = vld [vmem:[#allocation8 + $0x2c0] sm:$0xff]  ;;  %v455_v2 = vld [vmem:[#allocation5 + $0x418] sm:$0xff] }
 0x19b   : > { %5440 = vmatprep.subr.bf16.mxu0 %v5439_v38  ;;  %v834_v58 = vld [vmem:[#allocation5 + $0xff0] sm:$0xff] }
 0x19c   : > { %5170 = vmatpush1.bf16.msra.mxu1 %v5169_v27  ;;  %v762_v27 = vld [vmem:[#allocation5 + $0xdb0] sm:$0xff] }
 0x19d   : > { %5172 = vmatprep.subr.bf16.mxu1 %v5171_v32  ;;  %v799_v32 = vld [vmem:[#allocation5 + $0xed8] sm:$0xff]  ;;  %v846_v61 = vld [vmem:[#allocation5 + $0x1050] sm:$0xff] }
 0x19e   : > { %5442 = vmatpush1.bf16.msra.mxu0 %v5441_v48  ;;  %v5187_v38 = vpack.c.bf16 %v799_v32, %v787_v30  ;;  %v810_v48 = vld [vmem:[#allocation5 + $0xf30] sm:$0xff]  ;;  %v5197_v7 = vpack.c.bf16 %v846_v61, %v834_v58  ;;  %v347_v32 = vld [vmem:[#allocation5 + $0xb8] sm:$0xff] }
 0x19f   : > { %5444 = vmatprep.subr.bf16.mxu0 %v5443_v42  ;;  %v822_v42 = vld [vmem:[#allocation5 + $0xf90] sm:$0xff]  ;;  %v491_v58 = vld [vmem:[#allocation5 + $0x538] sm:$0xff] }
 0x1a0   : > { %5174 = vmatpush1.bf16.msra.mxu1 %v5173_v33  ;;  %v811_v33 = vld [vmem:[#allocation5 + $0xf38] sm:$0xff]  ;;  %v894_v30 = vld [vmem:[#allocation5 + $0x11d0] sm:$0xff] }
 0x1a1   : > { %5176 = vmatprep.subr.bf16.mxu1 %v5175_v55  ;;  %v2500_v55 = vld [vmem:[#allocation8 + $0x2a0] sm:$0xff]  ;;  %v5191_v60 = vpack.c.bf16 %v823_v49, %v811_v33  ;;  %v407_v49 = vld [vmem:[#allocation5 + $0x298] sm:$0xff] }
 0x1a2   : > { %5446 = vmatpush1.bf16.msra.mxu0 %v5445_v62  ;;  %v859_v62 = vld [vmem:[#allocation5 + $0x10b8] sm:$0xff]  ;;  %v382_v33 = vld [vmem:[#allocation5 + $0x1d0] sm:$0xff] }
 0x1a3   : > { %1707 = vmatmul.mubr.f32.vlgmr.msra.gmra.mrb[32].mxu1 %v7059_v11  ;;  %5448 = vmatprep.subr.bf16.mxu0 %v5447_v1  ;;  %v5451_v11 = vpack.c.bf16 %v2498_v23, %v2495_v51  ;;  %v871_v1 = vld [vmem:[#allocation5 + $0x1118] sm:$0xff]  ;;  %v870_v51 = vld [vmem:[#allocation5 + $0x1110] sm:$0xff] }
 0x1a4   : > { %5178 = vmatpush1.bf16.msra.mxu1 %v5177_v45  ;;  %1712 = vmatprep.mubr.f32.mxu1 %v7063_v13  ;;  %v5185_v13 = vpack.c.bf16 %v774_v16, %v762_v27  ;;  %v5457_v45 = vpack.c.bf16 %v2503_v57, %v2500_v55  ;;  %v883_v23 = vld [vmem:[#allocation5 + $0x1178] sm:$0xff]  ;;  %v882_v16 = vld [vmem:[#allocation5 + $0x1170] sm:$0xff] }
 0x1a5   : > { %5180 = vmatprep.subr.bf16.mxu1 %v5179_v6  ;;  %v2513_v6 = vld [vmem:[#allocation8 + $0x308] sm:$0xff] }
 0x1a6   : > { %5450 = vmatpush1.bf16.msra.mxu0 %v5449_v34  ;;  %v5205_v34 = vpack.c.bf16 %v894_v30, %v882_v16  ;;  %v442_v43 = vld [vmem:[#allocation5 + $0x3b0] sm:$0xff]  ;;  %v2519_v16 = vld [vmem:[#allocation8 + $0x338] sm:$0xff]  ;;  %v2522_v30 = vld [vmem:[#allocation8 + $0x350] sm:$0xff] }
 0x1a7   : > { %1713 = vmatmul.mubr.f32.gmra.mrb[34].mxu1 %v7069_v24  ;;  %5452 = vmatprep.subr.bf16.mxu0 %v5451_v11  ;;  %v5455_v24 = vpack.c.bf16 %v2504_v37, %v2501_v36  ;;  %v358_v37 = vld [vmem:[#allocation5 + $0x110] sm:$0xff] }
 0x1a8   : > { %5182 = vmatpush1.bf16.msra.mxu1 %v5181_v21  ;;  %1718 = vmatprep.mubr.f32.mxu1 %v7073_v28  ;;  %v5189_v28 = vpack.c.bf16 %v798_v47, %v786_v40  ;;  %v858_v21 = vld [vmem:[#allocation5 + $0x10b0] sm:$0xff]  ;;  %v395_v40 = vld [vmem:[#allocation5 + $0x238] sm:$0xff] }
 0x1a9   : > { %5184 = vmatprep.subr.bf16.mxu1 %v5183_v10  ;;  %v895_v10 = vld [vmem:[#allocation5 + $0x11d8] sm:$0xff] }
 0x1aa   : > { %5454 = vmatpush1.bf16.msra.mxu0 %v5453_v31  ;;  %v5203_v27 = vpack.c.bf16 %v895_v10, %v883_v23  ;;  %v419_v31 = vld [vmem:[#allocation5 + $0x2f8] sm:$0xff]  ;;  %v2512_v23 = vld [vmem:[#allocation8 + $0x300] sm:$0xff]  ;;  %v2515_v10 = vld [vmem:[#allocation8 + $0x318] sm:$0xff] }
 0x1ab   : > { %1719 = vmatmul.mubr.f32.gmra.mrb[36].mxu1 %v7079_v39  ;;  %5456 = vmatprep.subr.bf16.mxu0 %v5455_v24  ;;  %v5459_v39 = vpack.c.bf16 %v2510_v59, %v2507_v46  ;;  %v904_v24 = vlaneseq  ;;  %v5315_v57 = vpack.c.bf16 %v419_v31, %v407_v49  ;;  %v431_v46 = vld [vmem:[#allocation5 + $0x358] sm:$0xff]  ;;  %v538_v49 = vld [vmem:[#allocation5 + $0x6b0] sm:$0xff] }
 0x1ac   : > { %5186 = vmatpush1.bf16.msra.mxu1 %v5185_v13  ;;  %1724 = vmatprep.mubr.f32.mxu1 %v7083_v44  ;;  %v5193_v44 = vpack.c.bf16 %v822_v42, %v810_v48  ;;  %v371_v13 = vld [vmem:[#allocation5 + $0x178] sm:$0xff]  ;;  %v430_v42 = vld [vmem:[#allocation5 + $0x350] sm:$0xff] }
 0x1ad   : > { %5188 = vmatprep.subr.bf16.mxu1 %v5187_v38  ;;  %v5307_v36 = vpack.c.bf16 %v371_v13, %v359_v25  ;;  %v383_v38 = vld [vmem:[#allocation5 + $0x1d8] sm:$0xff]  ;;  %v5465_v25 = vpack.c.bf16 %v2515_v10, %v2512_v23 }
 0x1ae   : > { %5458 = vmatpush1.bf16.msra.mxu0 %v5457_v45  ;;  %v5311_v47 = vpack.c.bf16 %v395_v40, %v383_v38  ;;  %v443_v59 = vld [vmem:[#allocation5 + $0x3b8] sm:$0xff] }
 0x1af   : > { %1725 = vmatmul.mubr.f32.gmra.mrb[38].mxu1 %v7089_v63  ;;  %5460 = vmatprep.subr.bf16.mxu0 %v5459_v39  ;;  %v5463_v63 = vpack.c.bf16 %v2516_v8, %v2513_v6  ;;  %v467_v45 = vld [vmem:[#allocation5 + $0x478] sm:$0xff]  ;;  %v454_v6 = vld [vmem:[#allocation5 + $0x410] sm:$0xff] }
 0x1b0   : > { %5190 = vmatpush1.bf16.msra.mxu1 %v5189_v28  ;;  %1730 = vmatprep.mubr.f32.mxu1 %v7093_v50  ;;  %v5199_v50 = vpack.c.bf16 %v871_v1, %v859_v62  ;;  %v418_v28 = vld [vmem:[#allocation5 + $0x2f0] sm:$0xff] }
 0x1b1   : > { %5192 = vmatprep.subr.bf16.mxu1 %v5191_v60  ;;  %v7199_v60 = vshrl.u32 %v904_v24, 7  ;;  %v466_v8 = vld [vmem:[#allocation5 + $0x470] sm:$0xff] }
 0x1b2   : > { %5462 = vmatpush1.bf16.msra.mxu0 %v5461_v3  ;;  %v5325_v62 = vpack.c.bf16 %v466_v8, %v454_v6  ;;  %v478_v3 = vld [vmem:[#allocation5 + $0x4d0] sm:$0xff] }
 0x1b3   : > { %1731 = vmatmul.mubr.f32.gmra.mrb[40].mxu1 %v7099_v12  ;;  %5464 = vmatprep.subr.bf16.mxu0 %v5463_v63  ;;  %v5201_v12 = vpack.c.bf16 %v870_v51, %v858_v21  ;;  %v7204_v39 = vsub.s32 0, %v7199_v60  ;;  %v7210_v53 = vsub.s32 1, %v7199_v60  ;;  %v490_v63 = vld [vmem:[#allocation5 + $0x530] sm:$0xff]  ;;  %v515_v51 = vld [vmem:[#allocation5 + $0x5f8] sm:$0xff] }
 0x1b4   : > { %5194 = vmatpush1.bf16.msra.mxu1 %v5193_v44  ;;  %1736 = vmatprep.mubr.f32.mxu1 %v7103_v18  ;;  %v335_v18 = vld [vmem:[#allocation5 + $0x58] sm:$0xff]  ;;  %v5323_v44 = vpack.c.bf16 %v467_v45, %v455_v2  ;;  %v2531_v45 = vld [vmem:[#allocation8 + $0x398] sm:$0xff]  ;;  %v562_v6 = vld [vmem:[#allocation5 + $0x770] sm:$0xff] }
 0x1b5   : > { %5196 = vmatprep.subr.bf16.mxu1 %v5195_v9  ;;  %v5303_v11 = vpack.c.bf16 %v347_v32, %v335_v18  ;;  %8300 = vst [vmem:[#allocation16_spill] sm:$0xff] %v7204_v39  ;;  %8301 = vst [vmem:[#allocation17_spill] sm:$0xff] %v7210_v53  ;;  %v479_v9 = vld [vmem:[#allocation5 + $0x4d8] sm:$0xff]  ;;  %v7220_v61 = vrot.slane %v7207_v52, %v7210_v53  ;;  %v502_v18 = vld [vmem:[#allocation5 + $0x590] sm:$0xff] }
 0x1b6   : > { %v5327_v1 = vpack.c.bf16 %v491_v58, %v479_v9  ;;  %v514_v32 = vld [vmem:[#allocation5 + $0x5f0] sm:$0xff]  ;;  %v575_v58 = vld [vmem:[#allocation5 + $0x7d8] sm:$0xff] }
 0x1b7   : > { %1737 = vmatmul.mubr.f32.gmra.mrb[42].mxu1 %v7109_v14  ;;  %v334_v14 = vld [vmem:[#allocation5 + $0x50] sm:$0xff] }
 0x1b8   : > { %5198 = vmatpush1.bf16.msra.mxu1 %v5197_v7  ;;  %1742 = vmatprep.mubr.f32.mxu1 %v7113_v15  ;;  %v5305_v15 = vpack.c.bf16 %v346_v35, %v334_v14  ;;  %v539_v35 = vld [vmem:[#allocation5 + $0x6b8] sm:$0xff] }
 0x1b9   : > { %5200 = vmatprep.subr.bf16.mxu1 %v5199_v50  ;;  %v503_v50 = vld [vmem:[#allocation5 + $0x598] sm:$0xff] }
 0x1ba   : > { %v5331_v14 = vpack.c.bf16 %v515_v51, %v503_v50  ;;  %v2521_v38 = vld [vmem:[#allocation8 + $0x348] sm:$0xff]  ;;  %v2530_v51 = vld [vmem:[#allocation8 + $0x390] sm:$0xff] }
 0x1bb   : > { %1743 = vmatmul.mubr.f32.gmra.mrb[44].mxu1 %v7119_v29  ;;  %v370_v29 = vld [vmem:[#allocation5 + $0x170] sm:$0xff] }
 0x1bc   : > { %5202 = vmatpush1.bf16.msra.mxu1 %v5201_v12  ;;  %1748 = vmatprep.mubr.f32.mxu1 %v7123_v54  ;;  %v5309_v54 = vpack.c.bf16 %v370_v29, %v358_v37  ;;  %v5467_v37 = vpack.c.bf16 %v2522_v30, %v2519_v16  ;;  %v2518_v29 = vld [vmem:[#allocation8 + $0x330] sm:$0xff]  ;;  %v2533_v23 = vld [vmem:[#allocation8 + $0x3a8] sm:$0xff]  ;;  %v2540_v30 = vld [vmem:[#allocation8 + $0x3e0] sm:$0xff] }
 0x1bd   : > { %5204 = vmatprep.subr.bf16.mxu1 %v5203_v27  ;;  %v5329_v27 = vpack.c.bf16 %v490_v63, %v478_v3  ;;  %v2537_v16 = vld [vmem:[#allocation8 + $0x3c8] sm:$0xff] }
 0x1bf   : > { %1749 = vmatmul.mubr.f32.gmra.mrb[46].mxu1 %v7129_v4  ;;  %v394_v4 = vld [vmem:[#allocation5 + $0x230] sm:$0xff] }
 0x1c0   : > { %5206 = vmatpush1.bf16.msra.mxu1 %v5205_v34  ;;  %1819 = vmatprep.mubr.f32.mxu1 %v6637_v41  ;;  %v5313_v55 = vpack.c.bf16 %v394_v4, %v382_v33  ;;  %v2528_v33 = vld [vmem:[#allocation8 + $0x380] sm:$0xff] }
 0x1c1   : > { %5304 = vmatprep.subr.bf16.mxu1 %v5303_v11 }
 0x1c3   : > { %1820 = vmatmul.mubr.f32.vlgmr.msra.gmra.mrb[32].mxu1 %v7136_v20  ;;  %v406_v20 = vld [vmem:[#allocation5 + $0x290] sm:$0xff] }
 0x1c4   : > { %5306 = vmatpush1.bf16.msra.mxu1 %v5305_v15  ;;  %1825 = vmatprep.mubr.f32.mxu1 %v6637_v41  ;;  %v5317_v48 = vpack.c.bf16 %v418_v28, %v406_v20  ;;  %v5469_v20 = vpack.c.bf16 %v2521_v38, %v2518_v29 }
 0x1c5   : > { %5308 = vmatprep.subr.bf16.mxu1 %v5307_v36 }
 0x1c7   : > { %1826 = vmatmul.mubr.f32.gmra.mrb[34].mxu1 %v7143_v17  ;;  %v5319_v17 = vpack.c.bf16 %v443_v59, %v431_v46 }
 0x1c8   : > { %5310 = vmatpush1.bf16.msra.mxu1 %v5309_v54  ;;  %1831 = vmatprep.mubr.f32.mxu1 %v6637_v41  ;;  %v5333_v54 = vpack.c.bf16 %v514_v32, %v502_v18  ;;  %v574_v32 = vld [vmem:[#allocation5 + $0x7d0] sm:$0xff] }
 0x1c9   : > { %5312 = vmatprep.subr.bf16.mxu1 %v5311_v47  ;;  %v2525_v47 = vld [vmem:[#allocation8 + $0x368] sm:$0xff] }
 0x1cb   : > { %1832 = vmatmul.mubr.f32.gmra.mrb[36].mxu1 %v7150_v56  ;;  %v5321_v56 = vpack.c.bf16 %v442_v43, %v430_v42  ;;  %v2527_v42 = vld [vmem:[#allocation8 + $0x378] sm:$0xff] }
 0x1cc   : > { %5314 = vmatpush1.bf16.msra.mxu1 %v5313_v55  ;;  %1837 = vmatprep.mubr.f32.mxu1 %v6637_v41  ;;  %v551_v55 = vld [vmem:[#allocation5 + $0x718] sm:$0xff] }
 0x1cd   : > { %5316 = vmatprep.subr.bf16.mxu1 %v5315_v57  ;;  %v563_v57 = vld [vmem:[#allocation5 + $0x778] sm:$0xff] }
 0x1cf   : > { %1838 = vmatmul.mubr.f32.gmra.mrb[38].mxu1 %v7155_v5  ;;  %v7215_v5 = vrot.slane %v7207_v52, %v7204_v39  ;;  %v2523_v39 = vld [vmem:[#allocation8 + $0x358] sm:$0xff] }
 0x1d0   : > { %5318 = vmatpush1.bf16.msra.mxu1 %v5317_v48  ;;  %1843 = vmatprep.mubr.f32.mxu1 %v6637_v41  ;;  %v5471_v48 = vpack.c.bf16 %v2528_v33, %v2525_v47  ;;  %v2536_v47 = vld [vmem:[#allocation8 + $0x3c0] sm:$0xff]  ;;  %v2539_v33 = vld [vmem:[#allocation8 + $0x3d8] sm:$0xff] }
 0x1d1   : > { %5320 = vmatprep.subr.bf16.mxu1 %v5319_v17  ;;  %v2524_v17 = vld [vmem:[#allocation8 + $0x360] sm:$0xff] }
 0x1d2   : > { %v5473_v3 = vpack.c.bf16 %v2527_v42, %v2524_v17  ;;  %v623_v17 = vld [vmem:[#allocation5 + $0x958] sm:$0xff] }
 0x1d3   : > { %1844 = vmatmul.mubr.f32.gmra.mrb[40].mxu1 %v7160_v22  ;;  %v635_v42 = vld [vmem:[#allocation5 + $0x9b8] sm:$0xff] }
 0x1d4   : > { %5322 = vmatpush1.bf16.msra.mxu1 %v5321_v56  ;;  %1849 = vmatprep.mubr.f32.mxu1 %v6637_v41  ;;  %v2534_v56 = vld [vmem:[#allocation8 + $0x3b0] sm:$0xff] }
 0x1d5   : > { %5324 = vmatprep.subr.bf16.mxu1 %v5323_v44  ;;  %v550_v44 = vld [vmem:[#allocation5 + $0x710] sm:$0xff] }
 0x1d6   : > { %v1143_v7 = vpop.f32.mrb[0].mxu1 }
 0x1d7   : > { %v7223_v22 = vadd.f32 %v1143_v7, %v7215_v5  ;;  %v1145_v21 = vpop.f32.mrb[1].mxu1  ;;  %1850 = vmatmul.mubr.f32.gmra.mrb[42].mxu1 %v7165_v26  ;;  %v527_v26 = vld [vmem:[#allocation5 + $0x658] sm:$0xff] }
 0x1d8   : > { %v7227_v12 = vadd.f32 %v1145_v21, %v7220_v61  ;;  %5326 = vmatpush1.bf16.msra.mxu1 %v5325_v62  ;;  %1855 = vmatprep.mubr.f32.mxu1 %v6637_v41  ;;  %v5335_v4 = vpack.c.bf16 %v539_v35, %v527_v26  ;;  %v587_v62 = vld [vmem:[#allocation5 + $0x838] sm:$0xff]  ;;  %v5475_v21 = vpack.c.bf16 %v2534_v56, %v2531_v45 }
 0x1d9   : > { %5328 = vmatprep.subr.bf16.mxu1 %v5327_v1  ;;  %v8262_v13 = vmax.f32 %v7223_v22, 0.0  ;;  %v6385_v1 = vld [vmem:[%s6891_s11 + $0x8] sm:$0xff]  ;;  %v5343_v18 = vpack.c.bf16 %v587_v62, %v575_v58  ;;  %v599_v35 = vld [vmem:[#allocation5 + $0x898] sm:$0xff] }
 0x1da   : > { %v8263_v34 = vmax.f32 %v7227_v12, 0.0  ;;  %v1149_v11 = vpop.f32.mrb[2].mxu1 }
 0x1db   : > { %v7233_v15 = vadd.f32 %v1149_v11, %v7215_v5  ;;  %v1151_v36 = vpop.f32.mrb[3].mxu1  ;;  %1856 = vmatmul.mubr.f32.gmra.mrb[44].mxu1 %v7170_v0  ;;  %v526_v0 = vld [vmem:[#allocation5 + $0x650] sm:$0xff] }
 0x1dc   : > { %v7237_v40 = vadd.f32 %v1151_v36, %v7220_v61  ;;  %5330 = vmatpush1.bf16.msra.mxu1 %v5329_v27  ;;  %3073 = vmatprep.mubr.f32.mxu0 %v8263_v34  ;;  %v5337_v2 = vpack.c.bf16 %v538_v49, %v526_v0  ;;  %v5341_v27 = vpack.c.bf16 %v562_v6, %v550_v44  ;;  %v586_v11 = vld [vmem:[#allocation5 + $0x830] sm:$0xff]  ;;  %v2543_v49 = vld [vmem:[#allocation8 + $0x3f8] sm:$0xff]  ;;  %v2542_v6 = vld [vmem:[#allocation8 + $0x3f0] sm:$0xff] }
 0x1dd   : > { %3074 = vmatmul.mubr.f32.vlgmr.msra.gmra.mrb[32].mxu0 %v8262_v13  ;;  %1861 = vmatprep.mubr.f32.mxu1 %v6637_v41  ;;  %v8259_v28 = vmax.f32 %v7233_v15, 0.0  ;;  %v5477_v36 = vpack.c.bf16 %v2533_v23, %v2530_v51  ;;  %v5345_v0 = vpack.c.bf16 %v586_v11, %v574_v32  ;;  %v622_v51 = vld [vmem:[#allocation5 + $0x950] sm:$0xff]  ;;  %v659_v32 = vld [vmem:[#allocation5 + $0xa78] sm:$0xff] }
 0x1de   : > { %v8261_v31 = vmax.f32 %v7237_v40, 0.0  ;;  %v1155_v24 = vpop.f32.mrb[4].mxu1  ;;  %5332 = vmatprep.subr.bf16.mxu1 %v5331_v14  ;;  %5466 = vmatpush1.bf16.msra.mxu0 %v5465_v25  ;;  %v611_v25 = vld [vmem:[#allocation5 + $0x8f8] sm:$0xff]  ;;  %v634_v23 = vld [vmem:[#allocation5 + $0x9b0] sm:$0xff] }
 0x1df   : > { %v7247_v46 = vadd.f32 %v1155_v24, %v7215_v5  ;;  %v1157_v59 = vpop.f32.mrb[5].mxu1  ;;  %1862 = vmatmul.mubr.f32.gmra.mrb[46].mxu1 %v7175_v19  ;;  %5468 = vmatprep.subr.bf16.mxu0 %v5467_v37  ;;  %v5339_v19 = vpack.c.bf16 %v563_v57, %v551_v55  ;;  %v2546_v24 = vld [vmem:[#allocation8 + $0x410] sm:$0xff]  ;;  %v5347_v55 = vpack.c.bf16 %v611_v25, %v599_v35  ;;  %v598_v57 = vld [vmem:[#allocation5 + $0x890] sm:$0xff] }
 0x1e0   : > { %v7251_v43 = vadd.f32 %v1157_v59, %v7220_v61  ;;  %5334 = vmatpush1.bf16.msra.mxu1 %v5333_v54  ;;  %3079 = vmatprep.mubr.f32.mxu0 %v8261_v31  ;;  %v5479_v54 = vpack.c.bf16 %v2540_v30, %v2537_v16  ;;  %v5483_v44 = vpack.c.bf16 %v2546_v24, %v2543_v49  ;;  %v2555_v49 = vld [vmem:[#allocation8 + $0x458] sm:$0xff]  ;;  %v2558_v24 = vld [vmem:[#allocation8 + $0x470] sm:$0xff] }
 0x1e1   : > { %3080 = vmatmul.mubr.f32.gmra.mrb[34].mxu0 %v8259_v28  ;;  %5336 = vmatprep.subr.bf16.mxu1 %v5335_v4  ;;  %v8257_v63 = vmax.f32 %v7247_v46, 0.0  ;;  %v826_v28 = vld [vmem:[#allocation5 + $0xfb0] sm:$0xff]  ;;  %v6407_v31 = vld [vmem:[%s6891_s11 + $0xa0] sm:$0xff] }
 0x1e2   : > { %v8258_v8 = vmax.f32 %v7251_v43, 0.0  ;;  %v1161_v9 = vpop.f32.mrb[6].mxu1  ;;  %5470 = vmatpush1.bf16.msra.mxu0 %v5469_v20  ;;  %2158 = vmatprep.mubr.f32.mxu1 %v6385_v1  ;;  %v610_v20 = vld [vmem:[#allocation5 + $0x8f0] sm:$0xff]  ;;  %v2562_v13 = vld [vmem:[#allocation8 + $0x490] sm:$0xff] }
 0x1e3   : > { %v7261_v7 = vadd.f32 %v1161_v9, %v7215_v5  ;;  %v1163_v50 = vpop.f32.mrb[7].mxu1  ;;  %5472 = vmatprep.subr.bf16.mxu0 %v5471_v48  ;;  %v2545_v9 = vld [vmem:[#allocation8 + $0x408] sm:$0xff]  ;;  %v5349_v62 = vpack.c.bf16 %v610_v20, %v598_v57 }
 0x1e4   : > { %v7264_v10 = vadd.f32 %v1163_v50, %v7220_v61  ;;  %5338 = vmatpush1.bf16.msra.mxu1 %v5337_v2  ;;  %3085 = vmatprep.mubr.f32.mxu0 %v8258_v8  ;;  %v5481_v2 = vpack.c.bf16 %v2539_v33, %v2536_v47  ;;  %v2552_v50 = vld [vmem:[#allocation8 + $0x440] sm:$0xff]  ;;  %v5485_v11 = vpack.c.bf16 %v2545_v9, %v2542_v6 }
 0x1e5   : > { %3086 = vmatmul.mubr.f32.gmra.mrb[36].mxu0 %v8257_v63  ;;  %5340 = vmatprep.subr.bf16.mxu1 %v5339_v19  ;;  %v8255_v37 = vmax.f32 %v7261_v7, 0.0  ;;  %v7292_v1 = vpop.f32.mrb[0].mxu0  ;;  %v5353_v33 = vpack.c.bf16 %v634_v23, %v622_v51  ;;  %v646_v57 = vld [vmem:[#allocation5 + $0xa10] sm:$0xff] }
 0x1e6   : > { %v8256_v14 = vmax.f32 %v7264_v10, 0.0  ;;  %v1167_v26 = vpop.f32.mrb[8].mxu1  ;;  %5474 = vmatpush1.bf16.msra.mxu0 %v5473_v3  ;;  %v2549_v3 = vld [vmem:[#allocation8 + $0x428] sm:$0xff] }
 0x1e7   : > { %v7273_v29 = vadd.f32 %v1167_v26, %v7215_v5  ;;  %v1169_v38 = vpop.f32.mrb[9].mxu1  ;;  %5476 = vmatprep.subr.bf16.mxu0 %v5475_v21  ;;  %v5351_v21 = vpack.c.bf16 %v635_v42, %v623_v17  ;;  %v658_v20 = vld [vmem:[#allocation5 + $0xa70] sm:$0xff] }
 0x1e8   : > { %v7276_v4 = vadd.f32 %v1169_v38, %v7220_v61  ;;  %5342 = vmatpush1.bf16.msra.mxu1 %v5341_v27  ;;  %3091 = vmatprep.mubr.f32.mxu0 %v8256_v14  ;;  %v7296_v27 = vpop.f32.mrb[1].mxu0  ;;  %v2548_v38 = vld [vmem:[#allocation8 + $0x420] sm:$0xff]  ;;  %v5357_v23 = vpack.c.bf16 %v658_v20, %v646_v57  ;;  %v2563_v20 = vld [vmem:[#allocation8 + $0x498] sm:$0xff] }
 0x1e9   : > { %3092 = vmatmul.mubr.f32.gmra.mrb[38].mxu0 %v8255_v37  ;;  %5344 = vmatprep.subr.bf16.mxu1 %v5343_v18  ;;  %v8253_v45 = vmax.f32 %v7273_v29, 0.0  ;;  %v647_v18 = vld [vmem:[#allocation5 + $0xa18] sm:$0xff]  ;;  %v2560_v57 = vld [vmem:[#allocation8 + $0x480] sm:$0xff] }
 0x1ea   : > { %v8254_v59 = vmax.f32 %v7276_v4, 0.0  ;;  %v1173_v48 = vpop.f32.mrb[10].mxu1  ;;  %5478 = vmatpush1.bf16.msra.mxu0 %v5477_v36  ;;  %v5487_v36 = vpack.c.bf16 %v2552_v50, %v2549_v3  ;;  %v5491_v3 = vpack.c.bf16 %v2558_v24, %v2555_v49  ;;  %v2554_v50 = vld [vmem:[#allocation8 + $0x450] sm:$0xff]  ;;  %v814_v8 = vld [vmem:[#allocation5 + $0xf50] sm:$0xff] }
 0x1eb   : > { %v7285_v56 = vadd.f32 %v1173_v48, %v7215_v5  ;;  %v1175_v19 = vpop.f32.mrb[11].mxu1  ;;  %5480 = vmatprep.subr.bf16.mxu0 %v5479_v54  ;;  %v2551_v54 = vld [vmem:[#allocation8 + $0x438] sm:$0xff]  ;;  %v2594_v37 = vld [vmem:[#allocation8 + $0x590] sm:$0xff] }
 0x1ec   : > { %v7288_v58 = vadd.f32 %v1175_v19, %v7220_v61  ;;  %5346 = vmatpush1.bf16.msra.mxu1 %v5345_v0  ;;  %3097 = vmatprep.mubr.f32.mxu0 %v8254_v59  ;;  %v7308_v0 = vpop.f32.mrb[2].mxu0  ;;  %v683_v19 = vld [vmem:[#allocation5 + $0xb38] sm:$0xff] }
 0x1ed   : > { %3098 = vmatmul.mubr.f32.gmra.mrb[40].mxu0 %v8253_v45  ;;  %5348 = vmatprep.subr.bf16.mxu1 %v5347_v55  ;;  %v8251_v26 = vmax.f32 %v7285_v56, 0.0  ;;  %v5355_v55 = vpack.c.bf16 %v659_v32, %v647_v18  ;;  %v7312_v48 = vpop.f32.mrb[3].mxu0  ;;  %v2561_v18 = vld [vmem:[#allocation8 + $0x488] sm:$0xff]  ;;  %v2564_v32 = vld [vmem:[#allocation8 + $0x4a0] sm:$0xff] }
 0x1ee   : > { %v8252_v16 = vmax.f32 %v7288_v58, 0.0  ;;  %v1179_v30 = vpop.f32.mrb[12].mxu1  ;;  %5482 = vmatpush1.bf16.msra.mxu0 %v5481_v2  ;;  %v671_v2 = vld [vmem:[#allocation5 + $0xad8] sm:$0xff]  ;;  %v5495_v24 = vpack.c.bf16 %v2564_v32, %v2561_v18 }
 0x1ef   : > { %v7301_v35 = vadd.f32 %v1179_v30, %v7215_v5  ;;  %v1181_v25 = vpop.f32.mrb[13].mxu1  ;;  %5484 = vmatprep.subr.bf16.mxu0 %v5483_v44  ;;  %v5489_v44 = vpack.c.bf16 %v2551_v54, %v2548_v38  ;;  %v7324_v30 = vpop.f32.mrb[4].mxu0  ;;  %v695_v38 = vld [vmem:[#allocation5 + $0xb98] sm:$0xff] }
 0x1f0   : > { %v7304_v47 = vadd.f32 %v1181_v25, %v7220_v61  ;;  %5350 = vmatpush1.bf16.msra.mxu1 %v5349_v62  ;;  %3103 = vmatprep.mubr.f32.mxu0 %v8252_v16  ;;  %v682_v25 = vld [vmem:[#allocation5 + $0xb30] sm:$0xff]  ;;  %v707_v54 = vld [vmem:[#allocation5 + $0xbf8] sm:$0xff] }
 0x1f1   : > { %3104 = vmatmul.mubr.f32.gmra.mrb[42].mxu0 %v8251_v26  ;;  %5352 = vmatprep.subr.bf16.mxu1 %v5351_v21  ;;  %v8248_v6 = vmax.f32 %v7301_v35, 0.0  ;;  %v2557_v21 = vld [vmem:[#allocation8 + $0x468] sm:$0xff] }
 0x1f2   : > { %v8249_v17 = vmax.f32 %v7304_v47, 0.0  ;;  %v1185_v42 = vpop.f32.mrb[14].mxu1  ;;  %5486 = vmatpush1.bf16.msra.mxu0 %v5485_v11  ;;  %v670_v11 = vld [vmem:[#allocation5 + $0xad0] sm:$0xff]  ;;  %v731_v18 = vld [vmem:[#allocation5 + $0xcb8] sm:$0xff] }
 0x1f3   : > { %v7317_v9 = vadd.f32 %v1185_v42, %v7215_v5  ;;  %v1187_v62 = vpop.f32.mrb[15].mxu1  ;;  %5488 = vmatprep.subr.bf16.mxu0 %v5487_v36  ;;  %v5359_v5 = vpack.c.bf16 %v683_v19, %v671_v2  ;;  %v7328_v36 = vpop.f32.mrb[5].mxu0  ;;  %v2567_v2 = vld [vmem:[#allocation8 + $0x4b8] sm:$0xff]  ;;  %v2570_v19 = vld [vmem:[#allocation8 + $0x4d0] sm:$0xff] }
 0x1f4   : > { %v7320_v51 = vadd.f32 %v1187_v62, %v7220_v61  ;;  %5354 = vmatpush1.bf16.msra.mxu1 %v5353_v33  ;;  %3109 = vmatprep.mubr.f32.mxu0 %v8249_v17  ;;  %v5493_v33 = vpack.c.bf16 %v2557_v21, %v2554_v50  ;;  %v7334_v42 = vpop.f32.mrb[6].mxu0  ;;  %v694_v62 = vld [vmem:[#allocation5 + $0xb90] sm:$0xff]  ;;  %v719_v21 = vld [vmem:[#allocation5 + $0xc58] sm:$0xff]  ;;  %v5499_v32 = vpack.c.bf16 %v2570_v19, %v2567_v2  ;;  %v2579_v19 = vld [vmem:[#allocation8 + $0x518] sm:$0xff] }
 0x1f5   : > { %3110 = vmatmul.mubr.f32.gmra.mrb[44].mxu0 %v8248_v6  ;;  %5356 = vmatprep.subr.bf16.mxu1 %v5355_v55  ;;  %v8250_v49 = vmax.f32 %v7317_v9, 0.0  ;;  %v5361_v55 = vpack.c.bf16 %v682_v25, %v670_v11  ;;  %v706_v50 = vld [vmem:[#allocation5 + $0xbf0] sm:$0xff]  ;;  %v2566_v11 = vld [vmem:[#allocation8 + $0x4b0] sm:$0xff] }
 0x1f6   : > { %v8247_v61 = vmax.f32 %v7320_v51, 0.0  ;;  %5490 = vmatpush1.bf16.msra.mxu0 %v5489_v44  ;;  %v5363_v44 = vpack.c.bf16 %v707_v54, %v695_v38  ;;  %v2569_v25 = vld [vmem:[#allocation8 + $0x4c8] sm:$0xff] }
 0x1f7   : > { %5492 = vmatprep.subr.bf16.mxu0 %v5491_v3  ;;  %v7338_v3 = vpop.f32.mrb[7].mxu0  ;;  %v2573_v17 = vld [vmem:[#allocation8 + $0x4e8] sm:$0xff] }
 0x1f8   : > { %5358 = vmatpush1.bf16.msra.mxu1 %v5357_v23  ;;  %3115 = vmatprep.mubr.f32.mxu0 %v8247_v61  ;;  %v5497_v23 = vpack.c.bf16 %v2563_v20, %v2560_v57  ;;  %v5365_v61 = vpack.c.bf16 %v706_v50, %v694_v62  ;;  %v7340_v6 = vpop.f32.mrb[8].mxu0  ;;  %v718_v38 = vld [vmem:[#allocation5 + $0xc50] sm:$0xff]  ;;  %v743_v16 = vld [vmem:[#allocation5 + $0xd18] sm:$0xff]  ;;  %v2575_v20 = vld [vmem:[#allocation8 + $0x4f8] sm:$0xff] }
 0x1f9   : > { %3116 = vmatmul.mubr.f32.gmra.mrb[46].mxu0 %v8250_v49  ;;  %5360 = vmatprep.subr.bf16.mxu1 %v5359_v5  ;;  %v2576_v49 = vld [vmem:[#allocation8 + $0x500] sm:$0xff]  ;;  %v5367_v5 = vpack.c.bf16 %v731_v18, %v719_v21  ;;  %v7342_v26 = vpop.f32.mrb[9].mxu0  ;;  %v755_v45 = vld [vmem:[#allocation5 + $0xd78] sm:$0xff] }
 0x1fa   : > { %5494 = vmatpush1.bf16.msra.mxu0 %v5493_v33  ;;  %v730_v54 = vld [vmem:[#allocation5 + $0xcb0] sm:$0xff]  ;;  %v5501_v33 = vpack.c.bf16 %v2569_v25, %v2566_v11  ;;  %v7344_v2 = vpop.f32.mrb[10].mxu0  ;;  %v5371_v62 = vpack.c.bf16 %v755_v45, %v743_v16  ;;  %v779_v11 = vld [vmem:[#allocation5 + $0xe38] sm:$0xff] }
 0x1fb   : > { %5496 = vmatprep.subr.bf16.mxu0 %v5495_v24  ;;  %v5503_v24 = vpack.c.bf16 %v2576_v49, %v2573_v17  ;;  %v2572_v57 = vld [vmem:[#allocation8 + $0x4e0] sm:$0xff]  ;;  %v7346_v18 = vpop.f32.mrb[11].mxu0  ;;  %v6386_v49 = vld [vmem:[%s6891_s11] sm:$0xff]  ;;  %v2581_v25 = vld [vmem:[#allocation8 + $0x528] sm:$0xff] }
 0x1fc   : > { %5362 = vmatpush1.bf16.msra.mxu1 %v5361_v55  ;;  %v5369_v55 = vpack.c.bf16 %v730_v54, %v718_v38  ;;  %v742_v50 = vld [vmem:[#allocation5 + $0xd10] sm:$0xff]  ;;  %v5505_v17 = vpack.c.bf16 %v2575_v20, %v2572_v57  ;;  %v6387_v38 = vld [vmem:[%s6891_s11 + $0x20] sm:$0xff] }
 0x1fd   : > { %5364 = vmatprep.subr.bf16.mxu1 %v5363_v44  ;;  %v2582_v44 = vld [vmem:[#allocation8 + $0x530] sm:$0xff]  ;;  %v754_v21 = vld [vmem:[#allocation5 + $0xd70] sm:$0xff]  ;;  %v7350_v45 = vpop.f32.mrb[12].mxu0 }
 0x1fe   : > { %5498 = vmatpush1.bf16.msra.mxu0 %v5497_v23  ;;  %v767_v23 = vld [vmem:[#allocation5 + $0xdd8] sm:$0xff]  ;;  %v2588_v54 = vld [vmem:[#allocation8 + $0x560] sm:$0xff]  ;;  %v7352_v20 = vpop.f32.mrb[13].mxu0 }
 0x1ff   : > { %5500 = vmatprep.subr.bf16.mxu0 %v5499_v32  ;;  %v2578_v32 = vld [vmem:[#allocation8 + $0x510] sm:$0xff]  ;;  %v2585_v16 = vld [vmem:[#allocation8 + $0x548] sm:$0xff]  ;;  %v5375_v59 = vpack.c.bf16 %v779_v11, %v767_v23  ;;  %v2591_v11 = vld [vmem:[#allocation8 + $0x578] sm:$0xff] }
 0x200   : > { %5366 = vmatpush1.bf16.msra.mxu1 %v5365_v61  ;;  %v5507_v61 = vpack.c.bf16 %v2582_v44, %v2579_v19  ;;  %v778_v57 = vld [vmem:[#allocation5 + $0xe30] sm:$0xff]  ;;  %v803_v19 = vld [vmem:[#allocation5 + $0xef8] sm:$0xff]  ;;  %v5509_v44 = vpack.c.bf16 %v2581_v25, %v2578_v32 }
 0x201   : > { %5368 = vmatprep.subr.bf16.mxu1 %v5367_v5  ;;  %v5373_v5 = vpack.c.bf16 %v754_v21, %v742_v50  ;;  %v2584_v50 = vld [vmem:[#allocation8 + $0x540] sm:$0xff]  ;;  %v2587_v21 = vld [vmem:[#allocation8 + $0x558] sm:$0xff]  ;;  %v7356_v23 = vpop.f32.mrb[14].mxu0 }
 0x202   : > { %5502 = vmatpush1.bf16.msra.mxu0 %v5501_v33  ;;  %v766_v33 = vld [vmem:[#allocation5 + $0xdd0] sm:$0xff]  ;;  %8302 = vst [vmem:[#allocation18_spill] sm:$0xff] %v7356_v23  ;;  %v7358_v25 = vpop.f32.mrb[15].mxu0 }
 0x203   : > { %2159 = vmatmul.mubr.f32.vlgmr.msra.gmra.mrb[48].mxu1 %v6386_v49  ;;  %5504 = vmatprep.subr.bf16.mxu0 %v5503_v24  ;;  %v791_v24 = vld [vmem:[#allocation5 + $0xe98] sm:$0xff]  ;;  %v5511_v49 = vpack.c.bf16 %v2588_v54, %v2585_v16  ;;  %v802_v32 = vld [vmem:[#allocation5 + $0xef0] sm:$0xff]  ;;  %v5513_v54 = vpack.c.bf16 %v2587_v21, %v2584_v50 }
 0x204   : > { %5370 = vmatpush1.bf16.msra.mxu1 %v5369_v55  ;;  %2164 = vmatprep.mubr.f32.mxu1 %v6387_v38  ;;  %v6388_v55 = vld [vmem:[%s6891_s11 + $0x18] sm:$0xff]  ;;  %v5379_v14 = vpack.c.bf16 %v803_v19, %v791_v24  ;;  %v2600_v19 = vld [vmem:[#allocation8 + $0x5c0] sm:$0xff] }
 0x205   : > { %5372 = vmatprep.subr.bf16.mxu1 %v5371_v62  ;;  %v6389_v38 = vld [vmem:[%s6891_s11 + $0x38] sm:$0xff]  ;;  %v5377_v62 = vpack.c.bf16 %v778_v57, %v766_v33 }
 0x206   : > { %5506 = vmatpush1.bf16.msra.mxu0 %v5505_v17  ;;  %v790_v17 = vld [vmem:[#allocation5 + $0xe90] sm:$0xff]  ;;  %v827_v16 = vld [vmem:[#allocation5 + $0xfb8] sm:$0xff] }
 0x207   : > { %2165 = vmatmul.mubr.f32.gmra.mrb[50].mxu1 %v6388_v55  ;;  %5508 = vmatprep.subr.bf16.mxu0 %v5507_v61  ;;  %v815_v61 = vld [vmem:[#allocation5 + $0xf58] sm:$0xff]  ;;  %v5515_v55 = vpack.c.bf16 %v2594_v37, %v2591_v11  ;;  %v2596_v11 = vld [vmem:[#allocation8 + $0x5a0] sm:$0xff] }
 0x208   : > { %5374 = vmatpush1.bf16.msra.mxu1 %v5373_v5  ;;  %2170 = vmatprep.mubr.f32.mxu1 %v6389_v38  ;;  %v6390_v5 = vld [vmem:[%s6891_s11 + $0x30] sm:$0xff]  ;;  %v2590_v33 = vld [vmem:[#allocation8 + $0x570] sm:$0xff]  ;;  %v5383_v63 = vpack.c.bf16 %v827_v16, %v815_v61 }
 0x209   : > { %5376 = vmatprep.subr.bf16.mxu1 %v5375_v59  ;;  %v2593_v57 = vld [vmem:[#allocation8 + $0x588] sm:$0xff]  ;;  %v5381_v59 = vpack.c.bf16 %v802_v32, %v790_v17  ;;  %v6393_v17 = vld [vmem:[%s6891_s11 + $0x68] sm:$0xff]  ;;  %v5385_v32 = vpack.c.bf16 %v826_v28, %v814_v8  ;;  %v6395_v28 = vld [vmem:[%s6891_s11 + $0x80] sm:$0xff] }
 0x20a   : > { %5510 = vmatpush1.bf16.msra.mxu0 %v5509_v44  ;;  %v6391_v38 = vld [vmem:[%s6891_s11 + $0x50] sm:$0xff]  ;;  %v839_v44 = vld [vmem:[#allocation5 + $0x1018] sm:$0xff]  ;;  %v5517_v21 = vpack.c.bf16 %v2593_v57, %v2590_v33 }
 0x20b   : > { %2171 = vmatmul.mubr.f32.gmra.mrb[52].mxu1 %v6390_v5  ;;  %5512 = vmatprep.subr.bf16.mxu0 %v5511_v49  ;;  %v2597_v24 = vld [vmem:[#allocation8 + $0x5a8] sm:$0xff]  ;;  %v6392_v49 = vld [vmem:[%s6891_s11 + $0x48] sm:$0xff] }
 0x20c   : > { %5378 = vmatpush1.bf16.msra.mxu1 %v5377_v62  ;;  %2176 = vmatprep.mubr.f32.mxu1 %v6391_v38  ;;  %v851_v50 = vld [vmem:[#allocation5 + $0x1078] sm:$0xff]  ;;  %v5519_v37 = vpack.c.bf16 %v2600_v19, %v2597_v24  ;;  %v2599_v62 = vld [vmem:[#allocation8 + $0x5b8] sm:$0xff]  ;;  %v838_v16 = vld [vmem:[#allocation5 + $0x1010] sm:$0xff] }
 0x20d   : > { %5380 = vmatprep.subr.bf16.mxu1 %v5379_v14  ;;  %v2603_v5 = vld [vmem:[#allocation8 + $0x5d8] sm:$0xff]  ;;  %v2606_v14 = vld [vmem:[#allocation8 + $0x5f0] sm:$0xff]  ;;  %v5387_v61 = vpack.c.bf16 %v851_v50, %v839_v44  ;;  %v850_v38 = vld [vmem:[#allocation5 + $0x1070] sm:$0xff]  ;;  %v5521_v57 = vpack.c.bf16 %v2599_v62, %v2596_v11 }
 0x20e   : > { %5514 = vmatpush1.bf16.msra.mxu0 %v5513_v54  ;;  %v863_v54 = vld [vmem:[#allocation5 + $0x10d8] sm:$0xff]  ;;  %v5523_v24 = vpack.c.bf16 %v2606_v14, %v2603_v5  ;;  %v5389_v8 = vpack.c.bf16 %v850_v38, %v838_v16  ;;  %v2612_v44 = vld [vmem:[#allocation8 + $0x620] sm:$0xff] }
 0x20f   : > { %2177 = vmatmul.mubr.f32.gmra.mrb[54].mxu1 %v6392_v49  ;;  %5516 = vmatprep.subr.bf16.mxu0 %v5515_v55  ;;  %v875_v33 = vld [vmem:[#allocation5 + $0x1138] sm:$0xff]  ;;  %v6394_v55 = vld [vmem:[%s6891_s11 + $0x60] sm:$0xff]  ;;  %v862_v49 = vld [vmem:[#allocation5 + $0x10d0] sm:$0xff] }
 0x210   : > { %5382 = vmatpush1.bf16.msra.mxu1 %v5381_v59  ;;  %2182 = vmatprep.mubr.f32.mxu1 %v6393_v17  ;;  %v2602_v19 = vld [vmem:[#allocation8 + $0x5d0] sm:$0xff]  ;;  %v2605_v59 = vld [vmem:[#allocation8 + $0x5e8] sm:$0xff]  ;;  %v5391_v50 = vpack.c.bf16 %v875_v33, %v863_v54 }
 0x211   : > { %5384 = vmatprep.subr.bf16.mxu1 %v5383_v63  ;;  %v2609_v63 = vld [vmem:[#allocation8 + $0x608] sm:$0xff]  ;;  %v5525_v62 = vpack.c.bf16 %v2605_v59, %v2602_v19  ;;  %v2466_v54 = vld [vmem:[#allocation8 + $0x190] sm:$0xff] }
 0x212   : > { %5518 = vmatpush1.bf16.msra.mxu0 %v5517_v21  ;;  %v874_v17 = vld [vmem:[#allocation5 + $0x1130] sm:$0xff]  ;;  %v887_v21 = vld [vmem:[#allocation5 + $0x1198] sm:$0xff]  ;;  %v5527_v5 = vpack.c.bf16 %v2612_v44, %v2609_v63  ;;  %v2475_v63 = vld [vmem:[#allocation8 + $0x1d8] sm:$0xff] }
 0x213   : > { %2183 = vmatmul.mubr.f32.gmra.mrb[56].mxu1 %v6394_v55  ;;  %5520 = vmatprep.subr.bf16.mxu0 %v5519_v37  ;;  %v899_v11 = vld [vmem:[#allocation5 + $0x11f8] sm:$0xff]  ;;  %v5393_v14 = vpack.c.bf16 %v874_v17, %v862_v49  ;;  %v898_v38 = vld [vmem:[#allocation5 + $0x11f0] sm:$0xff]  ;;  %v6400_v44 = vld [vmem:[%s6891_s11 + $0xa8] sm:$0xff] }
 0x214   : > { %5386 = vmatpush1.bf16.msra.mxu1 %v5385_v32  ;;  %2188 = vmatprep.mubr.f32.mxu1 %v6395_v28  ;;  %v6396_v37 = vld [vmem:[%s6891_s11 + $0x78] sm:$0xff]  ;;  %v5395_v16 = vpack.c.bf16 %v899_v11, %v887_v21  ;;  %v6399_v55 = vld [vmem:[%s6891_s11 + $0xb0] sm:$0xff]  ;;  %v2427_v21 = vld [vmem:[#allocation8 + $0x58] sm:$0xff] }
 0x215   : > { %5388 = vmatprep.subr.bf16.mxu1 %v5387_v61  ;;  %v6397_v32 = vld [vmem:[%s6891_s11 + $0x98] sm:$0xff]  ;;  %v886_v61 = vld [vmem:[#allocation5 + $0x1190] sm:$0xff] }
 0x216   : > { %5522 = vmatpush1.bf16.msra.mxu0 %v5521_v57  ;;  %v2469_v33 = vld [vmem:[#allocation8 + $0x1a8] sm:$0xff]  ;;  %v2418_v59 = vld [vmem:[#allocation8 + $0x10] sm:$0xff]  ;;  %v2424_v17 = vld [vmem:[#allocation8 + $0x40] sm:$0xff] }
 0x217   : > { %2189 = vmatmul.mubr.f32.gmra.mrb[58].mxu1 %v6396_v37  ;;  %5524 = vmatprep.subr.bf16.mxu0 %v5523_v24  ;;  %v6398_v57 = vld [vmem:[%s6891_s11 + $0x90] sm:$0xff]  ;;  %v5397_v24 = vpack.c.bf16 %v898_v38, %v886_v61  ;;  %v5783_v19 = vpack.c.bf16 %v2469_v33, %v2466_v54  ;;  %v2478_v11 = vld [vmem:[#allocation8 + $0x1f0] sm:$0xff]  ;;  %v2487_v38 = vld [vmem:[#allocation8 + $0x238] sm:$0xff] }
 0x218   : > { %5390 = vmatpush1.bf16.msra.mxu1 %v5389_v8  ;;  %2194 = vmatprep.mubr.f32.mxu1 %v6397_v32  ;;  %v2421_v28 = vld [vmem:[#allocation8 + $0x28] sm:$0xff]  ;;  %v2472_v8 = vld [vmem:[#allocation8 + $0x1c0] sm:$0xff] }
 0x219   : > { %5392 = vmatprep.subr.bf16.mxu1 %v5391_v50  ;;  %v5785_v50 = vpack.c.bf16 %v2421_v28, %v2418_v59  ;;  %v5787_v49 = vpack.c.bf16 %v2475_v63, %v2472_v8  ;;  %v6401_v37 = vld [vmem:[%s6891_s11 + $0x10] sm:$0xff]  ;;  %v6402_v54 = vld [vmem:[%s6891_s11 + $0x28] sm:$0xff]  ;;  %v6403_v28 = vld [vmem:[%s6891_s11 + $0x40] sm:$0xff] }
 0x21a   : > { %5526 = vmatpush1.bf16.msra.mxu0 %v5525_v62  ;;  %v2481_v62 = vld [vmem:[#allocation8 + $0x208] sm:$0xff]  ;;  %v2484_v61 = vld [vmem:[#allocation8 + $0x220] sm:$0xff] }
 0x21b   : > { %2195 = vmatmul.mubr.f32.gmra.mrb[60].mxu1 %v6398_v57  ;;  %5528 = vmatprep.subr.bf16.mxu0 %v5527_v5  ;;  %v5789_v5 = vpack.c.bf16 %v2427_v21, %v2424_v17  ;;  %v5791_v32 = vpack.c.bf16 %v2481_v62, %v2478_v11  ;;  %v5795_v57 = vpack.c.bf16 %v2487_v38, %v2484_v61  ;;  %v2493_v59 = vld [vmem:[#allocation8 + $0x268] sm:$0xff]  ;;  %v2499_v17 = vld [vmem:[#allocation8 + $0x298] sm:$0xff]  ;;  %v7380_v11 = vsub.s32 2, %v7199_v60 }
 0x21c   : > { %5394 = vmatpush1.bf16.msra.mxu1 %v5393_v14  ;;  %2200 = vmatprep.mubr.f32.mxu1 %v6399_v55  ;;  %v2430_v14 = vld [vmem:[#allocation8 + $0x70] sm:$0xff]  ;;  %v2436_v55 = vld [vmem:[#allocation8 + $0xa0] sm:$0xff]  ;;  %v2505_v61 = vld [vmem:[#allocation8 + $0x2c8] sm:$0xff] }
 0x21d   : > { %5396 = vmatprep.subr.bf16.mxu1 %v5395_v16  ;;  %v2433_v16 = vld [vmem:[#allocation8 + $0x88] sm:$0xff]  ;;  %8303 = vst [vmem:[#allocation19_spill] sm:$0xff] %v7380_v11 }
 0x21e   : > { %v5793_v33 = vpack.c.bf16 %v2433_v16, %v2430_v14  ;;  %v6404_v21 = vld [vmem:[%s6891_s11 + $0x58] sm:$0xff]  ;;  %v2451_v14 = vld [vmem:[#allocation8 + $0x118] sm:$0xff]  ;;  %v6405_v38 = vld [vmem:[%s6891_s11 + $0x70] sm:$0xff] }
 0x21f   : > { %2201 = vmatmul.mubr.f32.gmra.mrb[62].mxu1 %v6400_v44  ;;  %v2442_v44 = vld [vmem:[#allocation8 + $0xd0] sm:$0xff] }
 0x220   : > { %5398 = vmatpush1.bf16.msra.mxu1 %v5397_v24  ;;  %2271 = vmatprep.mubr.f32.mxu1 %v6637_v41  ;;  %v2439_v24 = vld [vmem:[#allocation8 + $0xb8] sm:$0xff]  ;;  %v2502_v16 = vld [vmem:[#allocation8 + $0x2b0] sm:$0xff] }
 0x221   : > { %5784 = vmatprep.subr.bf16.mxu1 %v5783_v19  ;;  %v2490_v19 = vld [vmem:[#allocation8 + $0x250] sm:$0xff]  ;;  %v5797_v8 = vpack.c.bf16 %v2439_v24, %v2436_v55  ;;  %v5807_v55 = vpack.c.bf16 %v2505_v61, %v2502_v16 }
 0x222   : > { %v5799_v63 = vpack.c.bf16 %v2493_v59, %v2490_v19  ;;  %v2454_v24 = vld [vmem:[#allocation8 + $0x130] sm:$0xff]  ;;  %v2457_v19 = vld [vmem:[#allocation8 + $0x148] sm:$0xff] }
 0x223   : > { %2272 = vmatmul.mubr.f32.vlgmr.msra.gmra.mrb[48].mxu1 %v6401_v37  ;;  %v8260_v37 = vsub.s32 3, %v7199_v60 }
 0x224   : > { %5786 = vmatpush3.bf16.msra.mxu1 %v5785_v50  ;;  %2277 = vmatprep.mubr.f32.mxu1 %v6637_v41  ;;  %v2445_v50 = vld [vmem:[#allocation8 + $0xe8] sm:$0xff] }
 0x225   : > { %5788 = vmatprep.subr.bf16.mxu1 %v5787_v49  ;;  %v2496_v49 = vld [vmem:[#allocation8 + $0x280] sm:$0xff]  ;;  %v5801_v62 = vpack.c.bf16 %v2445_v50, %v2442_v44  ;;  %v2611_v50 = vld [vmem:[#allocation8 + $0x618] sm:$0xff] }
 0x226   : > { %v6406_v44 = vld [vmem:[%s6891_s11 + $0x88] sm:$0xff] }
 0x227   : > { %2278 = vmatmul.mubr.f32.gmra.mrb[50].mxu1 %v6402_v54  ;;  %v7387_v54 = vrot.slane %v7207_v52, %v7380_v11  ;;  %v6408_v11 = vld [vmem:[%s6891_s11 + $0xb8] sm:$0xff] }
 0x228   : > { %5790 = vmatpush3.bf16.msra.mxu1 %v5789_v5  ;;  %2283 = vmatprep.mubr.f32.mxu1 %v6637_v41  ;;  %v5803_v5 = vpack.c.bf16 %v2499_v17, %v2496_v49  ;;  %v2508_v49 = vld [vmem:[#allocation8 + $0x2e0] sm:$0xff]  ;;  %v2511_v17 = vld [vmem:[#allocation8 + $0x2f8] sm:$0xff] }
 0x229   : > { %5792 = vmatprep.subr.bf16.mxu1 %v5791_v32  ;;  %v2448_v32 = vld [vmem:[#allocation8 + $0x100] sm:$0xff] }
 0x22b   : > { %2284 = vmatmul.mubr.f32.gmra.mrb[52].mxu1 %v6403_v28  ;;  %v2608_v28 = vld [vmem:[#allocation8 + $0x600] sm:$0xff] }
 0x22c   : > { %5794 = vmatpush3.bf16.msra.mxu1 %v5793_v33  ;;  %2289 = vmatprep.mubr.f32.mxu1 %v6637_v41  ;;  %v7393_v33 = vrot.slane %v7207_v52, %v8260_v37  ;;  %v5809_v52 = vpack.c.bf16 %v2457_v19, %v2454_v24  ;;  %v2617_v19 = vld [vmem:[#allocation8 + $0x648] sm:$0xff] }
 0x22d   : > { %5796 = vmatprep.subr.bf16.mxu1 %v5795_v57  ;;  %v5805_v57 = vpack.c.bf16 %v2451_v14, %v2448_v32  ;;  %v2460_v32 = vld [vmem:[#allocation8 + $0x160] sm:$0xff]  ;;  %v2463_v14 = vld [vmem:[#allocation8 + $0x178] sm:$0xff] }
 0x22f   : > { %2290 = vmatmul.mubr.f32.gmra.mrb[54].mxu1 %v6404_v21 }
 0x230   : > { %5798 = vmatpush3.bf16.msra.mxu1 %v5797_v8  ;;  %2295 = vmatprep.mubr.f32.mxu1 %v6637_v41 }
 0x231   : > { %5800 = vmatprep.subr.bf16.mxu1 %v5799_v63 }
 0x233   : > { %2296 = vmatmul.mubr.f32.gmra.mrb[56].mxu1 %v6405_v38  ;;  %v5529_v38 = vpack.c.bf16 %v2611_v50, %v2608_v28  ;;  %v5813_v28 = vpack.c.bf16 %v2463_v14, %v2460_v32  ;;  %v2621_v50 = vld [vmem:[#allocation8 + $0x668] sm:$0xff] }
 0x234   : > { %5802 = vmatpush3.bf16.msra.mxu1 %v5801_v62  ;;  %2301 = vmatprep.mubr.f32.mxu1 %v6637_v41  ;;  %v2615_v62 = vld [vmem:[#allocation8 + $0x638] sm:$0xff] }
 0x235   : > { %5804 = vmatprep.subr.bf16.mxu1 %v5803_v5  ;;  %v2618_v5 = vld [vmem:[#allocation8 + $0x650] sm:$0xff] }
 0x236   : > { %v1369_v59 = vpop.f32.mrb[16].mxu1  ;;  %v5531_v24 = vpack.c.bf16 %v2618_v5, %v2615_v62 }
 0x237   : > { %v7396_v8 = vadd.f32 %v1369_v59, %v7387_v54  ;;  %v1371_v63 = vpop.f32.mrb[17].mxu1  ;;  %2302 = vmatmul.mubr.f32.gmra.mrb[58].mxu1 %v6406_v44  ;;  %v5811_v59 = vpack.c.bf16 %v2511_v17, %v2508_v49  ;;  %v2614_v44 = vld [vmem:[#allocation8 + $0x630] sm:$0xff]  ;;  %v2624_v49 = vld [vmem:[#allocation8 + $0x680] sm:$0xff] }
 0x238   : > { %v7400_v21 = vadd.f32 %v1371_v63, %v7393_v33  ;;  %5806 = vmatpush3.bf16.msra.mxu1 %v5805_v57  ;;  %2307 = vmatprep.mubr.f32.mxu1 %v6637_v41  ;;  %v5533_v62 = vpack.c.bf16 %v2617_v19, %v2614_v44  ;;  %v2627_v44 = vld [vmem:[#allocation8 + $0x698] sm:$0xff]  ;;  %v2630_v19 = vld [vmem:[#allocation8 + $0x6b0] sm:$0xff] }
 0x239   : > { %5808 = vmatprep.subr.bf16.mxu1 %v5807_v55  ;;  %v8267_v37 = vmax.f32 %v7396_v8, 0.0  ;;  %v2565_v55 = vld [vmem:[#allocation8 + $0x4a8] sm:$0xff] }
 0x23a   : > { %v8264_v16 = vmax.f32 %v7400_v21, 0.0  ;;  %v1375_v61 = vpop.f32.mrb[18].mxu1  ;;  %v5815_v5 = vpack.c.bf16 %v2565_v55, %v2562_v13  ;;  %v8305_v55 = vmax.f32 %v7227_v12, 0.0 }
 0x23b   : > { %v7406_v63 = vadd.f32 %v1375_v61, %v7387_v54  ;;  %v1377_v57 = vpop.f32.mrb[19].mxu1  ;;  %2308 = vmatmul.mubr.f32.gmra.mrb[60].mxu1 %v6407_v31  ;;  %v2514_v61 = vld [vmem:[#allocation8 + $0x310] sm:$0xff]  ;;  %v2568_v31 = vld [vmem:[#allocation8 + $0x4c0] sm:$0xff] }
 0x23c   : > { %v7410_v34 = vadd.f32 %v1377_v57, %v7393_v33  ;;  %3186 = vmatprep.mubr.f32.mxu0 %v8264_v16  ;;  %5810 = vmatpush3.bf16.msra.mxu1 %v5809_v52  ;;  %v2517_v57 = vld [vmem:[#allocation8 + $0x328] sm:$0xff]  ;;  %v2620_v16 = vld [vmem:[#allocation8 + $0x660] sm:$0xff] }
 0x23d   : > { %3187 = vmatmul.mubr.f32.vlgmr.msra.gmra.mrb[32].mxu0 %v8267_v37  ;;  %2313 = vmatprep.mubr.f32.mxu1 %v6637_v41  ;;  %v8272_v52 = vmax.f32 %v7406_v63, 0.0  ;;  %v5535_v41 = vpack.c.bf16 %v2624_v49, %v2621_v50  ;;  %v2623_v37 = vld [vmem:[#allocation8 + $0x678] sm:$0xff] }
 0x23e   : > { %5530 = vmatpush1.bf16.msra.mxu0 %v5529_v38  ;;  %v1381_v17 = vpop.f32.mrb[20].mxu1  ;;  %5812 = vmatprep.subr.bf16.mxu1 %v5811_v59  ;;  %v2571_v38 = vld [vmem:[#allocation8 + $0x4d8] sm:$0xff]  ;;  %v8304_v13 = vmax.f32 %v7410_v34, 0.0  ;;  %v5537_v49 = vpack.c.bf16 %v2623_v37, %v2620_v16  ;;  %v8307_v16 = vmax.f32 %v7237_v40, 0.0 }
 0x23f   : > { %v7420_v32 = vadd.f32 %v1381_v17, %v7387_v54  ;;  %v1383_v14 = vpop.f32.mrb[21].mxu1  ;;  %2314 = vmatmul.mubr.f32.gmra.mrb[62].mxu1 %v6408_v11  ;;  %5532 = vmatprep.subr.bf16.mxu0 %v5531_v24  ;;  %v5817_v11 = vpack.c.bf16 %v2517_v57, %v2514_v61  ;;  %v5819_v17 = vpack.c.bf16 %v2571_v38, %v2568_v31  ;;  %v2629_v57 = vld [vmem:[#allocation8 + $0x6a8] sm:$0xff] }
 0x240   : > { %v7424_v59 = vadd.f32 %v1383_v14, %v7393_v33  ;;  %3192 = vmatprep.mubr.f32.mxu0 %v8304_v13  ;;  %5814 = vmatpush3.bf16.msra.mxu1 %v5813_v28  ;;  %v2520_v14 = vld [vmem:[#allocation8 + $0x340] sm:$0xff]  ;;  %v2626_v13 = vld [vmem:[#allocation8 + $0x690] sm:$0xff]  ;;  %v5539_v61 = vpack.c.bf16 %v2630_v19, %v2627_v44  ;;  %v2633_v31 = vld [vmem:[#allocation8 + $0x6c8] sm:$0xff] }
 0x241   : > { %3751 = vmatprep.mubr.f32.mxu1 %v8305_v55  ;;  %3193 = vmatmul.mubr.f32.gmra.mrb[34].mxu0 %v8272_v52  ;;  %v8274_v28 = vmax.f32 %v7420_v32, 0.0  ;;  %v8306_v55 = vmax.f32 %v7223_v22, 0.0  ;;  %v2577_v52 = vld [vmem:[#allocation8 + $0x508] sm:$0xff]  ;;  %v5821_v22 = vpack.c.bf16 %v2523_v39, %v2520_v14  ;;  %v5541_v44 = vpack.c.bf16 %v2629_v57, %v2626_v13  ;;  %v2635_v14 = vld [vmem:[#allocation8 + $0x6d8] sm:$0xff]  ;;  %v2642_v57 = vld [vmem:[#allocation8 + $0x710] sm:$0xff] }
 0x242   : > { %v8273_v24 = vmax.f32 %v7424_v59, 0.0  ;;  %5534 = vmatpush1.bf16.msra.mxu0 %v5533_v62  ;;  %v1387_v50 = vpop.f32.mrb[22].mxu1  ;;  %5816 = vmatprep.subr.bf16.mxu1 %v5815_v5  ;;  %v2574_v62 = vld [vmem:[#allocation8 + $0x4f0] sm:$0xff]  ;;  %v2636_v5 = vld [vmem:[#allocation8 + $0x6e0] sm:$0xff]  ;;  %v2639_v13 = vld [vmem:[#allocation8 + $0x6f8] sm:$0xff] }
 0x243   : > { %v7435_v53 = vadd.f32 %v1387_v50, %v7387_v54  ;;  %v1389_v12 = vpop.f32.mrb[23].mxu1  ;;  %3752 = vmatmul.mubr.f32.vlgmr.msra.gmra.mrb[64].mxu1 %v8306_v55  ;;  %5536 = vmatprep.subr.bf16.mxu0 %v5535_v41  ;;  %v5823_v19 = vpack.c.bf16 %v2577_v52, %v2574_v62  ;;  %v2526_v50 = vld [vmem:[#allocation8 + $0x370] sm:$0xff]  ;;  %v2632_v55 = vld [vmem:[#allocation8 + $0x6c0] sm:$0xff]  ;;  %v5543_v39 = vpack.c.bf16 %v2636_v5, %v2633_v31  ;;  %v8309_v52 = vmax.f32 %v7251_v43, 0.0 }
 0x244   : > { %v7440_v37 = vadd.f32 %v1389_v12, %v7393_v33  ;;  %3198 = vmatprep.mubr.f32.mxu0 %v8273_v24  ;;  %3756 = vmatprep.mubr.f32.mxu1 %v8307_v16  ;;  %v2529_v12 = vld [vmem:[#allocation8 + $0x388] sm:$0xff]  ;;  %v8308_v24 = vmax.f32 %v7233_v15, 0.0  ;;  %v5545_v62 = vpack.c.bf16 %v2635_v14, %v2632_v55  ;;  %v2532_v5 = vld [vmem:[#allocation8 + $0x3a0] sm:$0xff]  ;;  %v8311_v55 = vmax.f32 %v7264_v10, 0.0  ;;  %v2538_v10 = vld [vmem:[#allocation8 + $0x3d0] sm:$0xff] }
 0x245   : > { %5818 = vmatpush3.bf16.msra.mxu1 %v5817_v11  ;;  %3199 = vmatmul.mubr.f32.gmra.mrb[36].mxu0 %v8274_v28  ;;  %v8276_v40 = vmax.f32 %v7435_v53, 0.0  ;;  %v2583_v28 = vld [vmem:[#allocation8 + $0x538] sm:$0xff]  ;;  %v5825_v15 = vpack.c.bf16 %v2529_v12, %v2526_v50  ;;  %v5547_v50 = vpack.c.bf16 %v2642_v57, %v2639_v13  ;;  %v2641_v12 = vld [vmem:[#allocation8 + $0x708] sm:$0xff] }
 0x246   : > { %v8275_v41 = vmax.f32 %v7440_v37, 0.0  ;;  %5538 = vmatpush1.bf16.msra.mxu0 %v5537_v49  ;;  %v1393_v38 = vpop.f32.mrb[24].mxu1  ;;  %5820 = vmatprep.subr.bf16.mxu1 %v5819_v17  ;;  %v2580_v49 = vld [vmem:[#allocation8 + $0x520] sm:$0xff]  ;;  %v2645_v14 = vld [vmem:[#allocation8 + $0x728] sm:$0xff]  ;;  %v2595_v13 = vld [vmem:[#allocation8 + $0x598] sm:$0xff] }
 0x247   : > { %v7451_v16 = vadd.f32 %v1393_v38, %v7387_v54  ;;  %v1395_v11 = vpop.f32.mrb[25].mxu1  ;;  %3757 = vmatmul.mubr.f32.gmra.mrb[66].mxu1 %v8308_v24  ;;  %5540 = vmatprep.subr.bf16.mxu0 %v5539_v61  ;;  %v5827_v31 = vpack.c.bf16 %v2583_v28, %v2580_v49  ;;  %v2535_v38 = vld [vmem:[#allocation8 + $0x3b8] sm:$0xff]  ;;  %v2648_v49 = vld [vmem:[#allocation8 + $0x740] sm:$0xff] }
 0x248   : > { %v7456_v17 = vadd.f32 %v1395_v11, %v7393_v33  ;;  %3204 = vmatprep.mubr.f32.mxu0 %v8275_v41  ;;  %3761 = vmatprep.mubr.f32.mxu1 %v8309_v52  ;;  %v2638_v11 = vld [vmem:[#allocation8 + $0x6f0] sm:$0xff]  ;;  %v8310_v41 = vmax.f32 %v7247_v46, 0.0  ;;  %v7479_v46 = vpop.f32.mrb[16].mxu0 }
 0x249   : > { %5822 = vmatpush3.bf16.msra.mxu1 %v5821_v22  ;;  %3205 = vmatmul.mubr.f32.gmra.mrb[38].mxu0 %v8276_v40  ;;  %v8278_v43 = vmax.f32 %v7451_v16, 0.0  ;;  %v2589_v40 = vld [vmem:[#allocation8 + $0x568] sm:$0xff]  ;;  %8312 = vst [vmem:[#allocation20_spill] sm:$0xff] %v7479_v46 }
 0x24a   : > { %v8277_v24 = vmax.f32 %v7456_v17, 0.0  ;;  %5542 = vmatpush1.bf16.msra.mxu0 %v5541_v44  ;;  %v1399_v61 = vpop.f32.mrb[26].mxu1  ;;  %5824 = vmatprep.subr.bf16.mxu1 %v5823_v19  ;;  %v2586_v44 = vld [vmem:[#allocation8 + $0x550] sm:$0xff]  ;;  %v926_v19 = vsub.s32 5, %v7199_v60 }
 0x24b   : > { %v7467_v52 = vadd.f32 %v1399_v61, %v7387_v54  ;;  %v1401_v22 = vpop.f32.mrb[27].mxu1  ;;  %3762 = vmatmul.mubr.f32.gmra.mrb[68].mxu1 %v8310_v41  ;;  %5544 = vmatprep.subr.bf16.mxu0 %v5543_v39  ;;  %v5829_v41 = vpack.c.bf16 %v2535_v38, %v2532_v5  ;;  %v7483_v39 = vpop.f32.mrb[17].mxu0  ;;  %v5549_v61 = vpack.c.bf16 %v2641_v12, %v2638_v11  ;;  %v8314_v5 = vmax.f32 %v7261_v7, 0.0  ;;  %v2651_v7 = vld [vmem:[#allocation8 + $0x758] sm:$0xff] }
 0x24c   : > { %v7473_v28 = vadd.f32 %v1401_v22, %v7393_v33  ;;  %3210 = vmatprep.mubr.f32.mxu0 %v8277_v24  ;;  %3766 = vmatprep.mubr.f32.mxu1 %v8311_v55  ;;  %8313 = vst [vmem:[#allocation21_spill] sm:$0xff] %v7483_v39  ;;  %v5831_v22 = vpack.c.bf16 %v2589_v40, %v2586_v44  ;;  %v2541_v55 = vld [vmem:[#allocation8 + $0x3e8] sm:$0xff]  ;;  %v2644_v24 = vld [vmem:[#allocation8 + $0x720] sm:$0xff]  ;;  %v8316_v44 = vmax.f32 %v7276_v4, 0.0 }
 0x24d   : > { %5826 = vmatpush3.bf16.msra.mxu1 %v5825_v15  ;;  %3211 = vmatmul.mubr.f32.gmra.mrb[40].mxu0 %v8278_v43  ;;  %v8279_v23 = vmax.f32 %v7467_v52, 0.0  ;;  %v5551_v38 = vpack.c.bf16 %v2648_v49, %v2645_v14  ;;  %v2647_v43 = vld [vmem:[#allocation8 + $0x738] sm:$0xff]  ;;  %v7504_v14 = vpop.f32.mrb[18].mxu0  ;;  %v5833_v49 = vpack.c.bf16 %v2541_v55, %v2538_v10  ;;  %v2544_v4 = vld [vmem:[#allocation8 + $0x400] sm:$0xff]  ;;  %v2650_v55 = vld [vmem:[#allocation8 + $0x750] sm:$0xff] }
 0x24e   : > { %5546 = vmatpush1.bf16.msra.mxu0 %v5545_v62  ;;  %v1405_v57 = vpop.f32.mrb[28].mxu1  ;;  %5828 = vmatprep.subr.bf16.mxu1 %v5827_v31  ;;  %v2592_v62 = vld [vmem:[#allocation8 + $0x580] sm:$0xff]  ;;  %v7492_v31 = vld [vmem:[#allocation7] sm:$0xff]  ;;  %v8315_v12 = vmax.f32 %v7473_v28, 0.0  ;;  %8317 = vst [vmem:[#allocation22_spill] sm:$0xff] %v7504_v14 }
 0x24f   : > { %v7488_v15 = vadd.f32 %v1405_v57, %v7387_v54  ;;  %v1407_v46 = vpop.f32.mrb[29].mxu1  ;;  %3767 = vmatmul.mubr.f32.gmra.mrb[70].mxu1 %v8314_v5  ;;  %5548 = vmatprep.subr.bf16.mxu0 %v5547_v50  ;;  %v7495_v40 = vrot.slane %v7492_v31, %v926_v19  ;;  %v2654_v50 = vld [vmem:[#allocation8 + $0x770] sm:$0xff]  ;;  %v7508_v19 = vpop.f32.mrb[19].mxu0  ;;  %v5553_v5 = vpack.c.bf16 %v2647_v43, %v2644_v24 }
 0x250   : > { %v7498_v11 = vadd.f32 %v1407_v46, %v7393_v33  ;;  %3216 = vmatprep.mubr.f32.mxu0 %v8315_v12  ;;  %3771 = vmatprep.mubr.f32.mxu1 %v8316_v44  ;;  %v5835_v12 = vpack.c.bf16 %v2595_v13, %v2592_v62  ;;  %v2547_v44 = vld [vmem:[#allocation8 + $0x418] sm:$0xff]  ;;  %v5555_v10 = vpack.c.bf16 %v2654_v50, %v2651_v7  ;;  %v2653_v46 = vld [vmem:[#allocation8 + $0x768] sm:$0xff]  ;;  %v2598_v13 = vld [vmem:[#allocation8 + $0x5b0] sm:$0xff] }
 0x251   : > { %5830 = vmatpush3.bf16.msra.mxu1 %v5829_v41  ;;  %3217 = vmatmul.mubr.f32.gmra.mrb[42].mxu0 %v8279_v23  ;;  %v8280_v39 = vmax.f32 %v7488_v15, 0.0  ;;  %v8318_v23 = vmax.f32 %v7273_v29, 0.0  ;;  %v2601_v29 = vld [vmem:[#allocation8 + $0x5c8] sm:$0xff]  ;;  %v5557_v7 = vpack.c.bf16 %v2653_v46, %v2650_v55  ;;  %v8322_v46 = vmax.f32 %v7304_v47, 0.0  ;;  %v2666_v55 = vld [vmem:[#allocation8 + $0x7d0] sm:$0xff]  ;;  %v2556_v47 = vld [vmem:[#allocation8 + $0x460] sm:$0xff] }
 0x252   : > { %5550 = vmatpush1.bf16.msra.mxu0 %v5549_v61  ;;  %v1411_v57 = vpop.f32.mrb[30].mxu1  ;;  %5832 = vmatprep.subr.bf16.mxu1 %v5831_v22  ;;  %v7519_v61 = vadd.f32 %v7296_v27, %v7495_v40  ;;  %v8319_v43 = vmax.f32 %v7498_v11, 0.0  ;;  %v5837_v22 = vpack.c.bf16 %v2547_v44, %v2544_v4  ;;  %v2657_v27 = vld [vmem:[#allocation8 + $0x788] sm:$0xff]  ;;  %v2659_v4 = vld [vmem:[#allocation8 + $0x798] sm:$0xff]  ;;  %v2604_v44 = vld [vmem:[#allocation8 + $0x5e0] sm:$0xff] }
 0x253   : > { %v7513_v14 = vadd.f32 %v1411_v57, %v7387_v54  ;;  %v1413_v41 = vpop.f32.mrb[31].mxu1  ;;  %3772 = vmatmul.mubr.f32.gmra.mrb[72].mxu1 %v8318_v23  ;;  %5552 = vmatprep.subr.bf16.mxu0 %v5551_v38  ;;  %v8320_v54 = vmax.f32 %v7288_v58, 0.0  ;;  %v7528_v23 = vpop.f32.mrb[20].mxu0  ;;  %v2660_v38 = vld [vmem:[#allocation8 + $0x7a0] sm:$0xff]  ;;  %v2550_v58 = vld [vmem:[#allocation8 + $0x430] sm:$0xff]  ;;  %v2553_v50 = vld [vmem:[#allocation8 + $0x448] sm:$0xff] }
 0x254   : > { %v7522_v24 = vadd.f32 %v1413_v41, %v7393_v33  ;;  %3222 = vmatprep.mubr.f32.mxu0 %v8319_v43  ;;  %v7532_v62 = vpop.f32.mrb[21].mxu0  ;;  %v2656_v57 = vld [vmem:[#allocation8 + $0x780] sm:$0xff]  ;;  %v5839_v43 = vpack.c.bf16 %v2601_v29, %v2598_v13 }
 0x255   : > { %3776 = vmatprep.mubr.f32.mxu1 %v8320_v54  ;;  %5834 = vmatpush3.bf16.msra.mxu1 %v5833_v49  ;;  %v8321_v49 = vmax.f32 %v7285_v56, 0.0  ;;  %v2607_v54 = vld [vmem:[#allocation8 + $0x5f8] sm:$0xff]  ;;  %v7543_v41 = vpop.f32.mrb[22].mxu0  ;;  %v8324_v56 = vmax.f32 %v7513_v14, 0.0  ;;  %v5561_v29 = vpack.c.bf16 %v2659_v4, %v2656_v57 }
 0x256   : > { %3223 = vmatmul.mubr.f32.gmra.mrb[44].mxu0 %v8280_v39  ;;  %v8281_v33 = vmax.f32 %v7522_v24, 0.0  ;;  %5836 = vmatprep.subr.bf16.mxu1 %v5835_v12  ;;  %v8282_v39 = vmax.f32 %v7519_v61, 0.0  ;;  %v2663_v12 = vld [vmem:[#allocation8 + $0x7b8] sm:$0xff]  ;;  %8323 = vst [vmem:[#allocation23_spill] sm:$0xff] %v7543_v41  ;;  %v7547_v13 = vpop.f32.mrb[23].mxu0  ;;  %v2658_v41 = vld [vmem:[#allocation8 + $0x790] sm:$0xff] }
 0x257   : > { %5554 = vmatpush1.bf16.msra.mxu0 %v5553_v5  ;;  %3777 = vmatmul.mubr.f32.gmra.mrb[74].mxu1 %v8321_v49  ;;  %v5559_v5 = vpack.c.bf16 %v2660_v38, %v2657_v27  ;;  %v5843_v49 = vpack.c.bf16 %v2607_v54, %v2604_v44  ;;  %v2662_v27 = vld [vmem:[#allocation8 + $0x7b0] sm:$0xff]  ;;  %v8325_v38 = vmax.f32 %v7301_v35, 0.0  ;;  %v2613_v54 = vld [vmem:[#allocation8 + $0x628] sm:$0xff] }
 0x258   : > { %5556 = vmatprep.subr.bf16.mxu0 %v5555_v10  ;;  %3228 = vmatprep.mubr.f32.mxu0 %v8281_v33  ;;  %v5841_v10 = vpack.c.bf16 %v2553_v50, %v2550_v58  ;;  %v2665_v33 = vld [vmem:[#allocation8 + $0x7c8] sm:$0xff]  ;;  %v8326_v58 = vmax.f32 %v7320_v51, 0.0  ;;  %v2672_v50 = vld [vmem:[#allocation8 + $0x800] sm:$0xff]  ;;  %v2610_v44 = vld [vmem:[#allocation8 + $0x610] sm:$0xff] }
 0x259   : > { %3781 = vmatprep.mubr.f32.mxu1 %v8322_v46  ;;  %5838 = vmatpush3.bf16.msra.mxu1 %v5837_v22  ;;  %v2559_v46 = vld [vmem:[#allocation8 + $0x478] sm:$0xff]  ;;  %v5563_v22 = vpack.c.bf16 %v2666_v55, %v2663_v12  ;;  %v5565_v35 = vpack.c.bf16 %v2665_v33, %v2662_v27  ;;  %v2668_v12 = vld [vmem:[#allocation8 + $0x7e0] sm:$0xff]  ;;  %v5849_v33 = vpack.c.bf16 %v2613_v54, %v2610_v44 }
 0x25a   : > { %3229 = vmatmul.mubr.f32.gmra.mrb[46].mxu0 %v8324_v56  ;;  %5840 = vmatprep.subr.bf16.mxu1 %v5839_v43  ;;  %v2661_v56 = vld [vmem:[#allocation8 + $0x7a8] sm:$0xff]  ;;  %v5845_v57 = vpack.c.bf16 %v2559_v46, %v2556_v47  ;;  %v2671_v55 = vld [vmem:[#allocation8 + $0x7f8] sm:$0xff]  ;;  %v2678_v46 = vld [vmem:[#allocation8 + $0x830] sm:$0xff] }
 0x25b   : > { %5558 = vmatpush1.bf16.msra.mxu0 %v5557_v7  ;;  %3299 = vmatprep.mubr.f32.mxu0 %v8282_v39  ;;  %v2669_v7 = vld [vmem:[#allocation8 + $0x7e8] sm:$0xff]  ;;  %v7555_v39 = vpop.f32.mrb[24].mxu0  ;;  %v5847_v43 = vpack.c.bf16 %v2661_v56, %v2658_v41  ;;  %v2675_v47 = vld [vmem:[#allocation8 + $0x818] sm:$0xff]  ;;  %v2616_v27 = vld [vmem:[#allocation8 + $0x640] sm:$0xff] }
 0x25c   : > { %3782 = vmatmul.mubr.f32.gmra.mrb[76].mxu1 %v8325_v38  ;;  %5560 = vmatprep.subr.bf16.mxu0 %v5559_v5  ;;  %v7557_v4 = vpop.f32.mrb[25].mxu0  ;;  %v8327_v5 = vmax.f32 %v7317_v9, 0.0  ;;  %v5567_v51 = vpack.c.bf16 %v2672_v50, %v2669_v7  ;;  %v2664_v38 = vld [vmem:[#allocation8 + $0x7c0] sm:$0xff]  ;;  %v5569_v9 = vpack.c.bf16 %v2671_v55, %v2668_v12  ;;  %v2674_v56 = vld [vmem:[#allocation8 + $0x810] sm:$0xff]  ;;  %v5571_v7 = vpack.c.bf16 %v2678_v46, %v2675_v47  ;;  %v2677_v50 = vld [vmem:[#allocation8 + $0x828] sm:$0xff] }
 0x25d   : > { %3786 = vmatprep.mubr.f32.mxu1 %v8326_v58  ;;  %5842 = vmatpush3.bf16.msra.mxu1 %v5841_v10  ;;  %v2667_v58 = vld [vmem:[#allocation8 + $0x7d8] sm:$0xff]  ;;  %v8328_v10 = vmax.f32 %v7400_v21, 0.0  ;;  %v2670_v21 = vld [vmem:[#allocation8 + $0x7f0] sm:$0xff]  ;;  %v5573_v12 = vpack.c.bf16 %v2677_v50, %v2674_v56  ;;  %v2676_v46 = vld [vmem:[#allocation8 + $0x820] sm:$0xff] }
 0x25e   : > { %5844 = vmatprep.subr.bf16.mxu1 %v5843_v49  ;;  %v5851_v49 = vpack.c.bf16 %v2667_v58, %v2664_v38  ;;  %v2622_v55 = vld [vmem:[#allocation8 + $0x670] sm:$0xff]  ;;  %v2625_v38 = vld [vmem:[#allocation8 + $0x688] sm:$0xff]  ;;  %v2680_v58 = vld [vmem:[#allocation8 + $0x840] sm:$0xff] }
 0x25f   : > { %5562 = vmatpush1.bf16.msra.mxu0 %v5561_v29  ;;  %v7563_v29 = vpop.f32.mrb[26].mxu0  ;;  %v2683_v47 = vld [vmem:[#allocation8 + $0x858] sm:$0xff] }
 0x260   : > { %3787 = vmatmul.mubr.f32.gmra.mrb[78].mxu1 %v8327_v5  ;;  %5564 = vmatprep.subr.bf16.mxu0 %v5563_v22  ;;  %8329 = vst [vmem:[#allocation24_spill] sm:$0xff] %v7563_v29  ;;  %v7565_v41 = vpop.f32.mrb[27].mxu0  ;;  %v2619_v22 = vld [vmem:[#allocation8 + $0x658] sm:$0xff]  ;;  %v2673_v5 = vld [vmem:[#allocation8 + $0x808] sm:$0xff] }
 0x261   : > { %3856 = vmatprep.mubr.f32.mxu1 %v8328_v10  ;;  %5846 = vmatpush3.bf16.msra.mxu1 %v5845_v57  ;;  %v8330_v10 = vmax.f32 %v7396_v8, 0.0  ;;  %v2681_v29 = vld [vmem:[#allocation8 + $0x848] sm:$0xff]  ;;  %v2684_v57 = vld [vmem:[#allocation8 + $0x860] sm:$0xff]  ;;  %v7569_v44 = vpop.f32.mrb[28].mxu0  ;;  %v2631_v50 = vld [vmem:[#allocation8 + $0x6b8] sm:$0xff] }
 0x262   : > { %5848 = vmatprep.subr.bf16.mxu1 %v5847_v43  ;;  %8331 = vst [vmem:[#allocation25_spill] sm:$0xff] %v7569_v44  ;;  %v5853_v43 = vpack.c.bf16 %v2619_v22, %v2616_v27  ;;  %v7573_v54 = vpop.f32.mrb[29].mxu0  ;;  %v5575_v8 = vpack.c.bf16 %v2684_v57, %v2681_v29  ;;  %v8333_v44 = vmax.f32 %v7406_v63, 0.0  ;;  %v5577_v29 = vpack.c.bf16 %v2683_v47, %v2680_v58  ;;  %v2682_v57 = vld [vmem:[#allocation8 + $0x850] sm:$0xff]  ;;  %v2692_v47 = vld [vmem:[#allocation8 + $0x8a0] sm:$0xff] }
 0x263   : > { %5566 = vmatpush1.bf16.msra.mxu0 %v5565_v35  ;;  %v8332_v35 = vmax.f32 %v7410_v34, 0.0  ;;  %v2687_v34 = vld [vmem:[#allocation8 + $0x878] sm:$0xff]  ;;  %v2634_v58 = vld [vmem:[#allocation8 + $0x6d0] sm:$0xff] }
 0x264   : > { %5568 = vmatprep.subr.bf16.mxu0 %v5567_v51  ;;  %3857 = vmatmul.mubr.f32.vlgmr.msra.gmra.mrb[80].mxu1 %v8330_v10  ;;  %v5855_v51 = vpack.c.bf16 %v2673_v5, %v2670_v21  ;;  %v2679_v10 = vld [vmem:[#allocation8 + $0x838] sm:$0xff]  ;;  %v7577_v27 = vpop.f32.mrb[30].mxu0  ;;  %v2686_v21 = vld [vmem:[#allocation8 + $0x870] sm:$0xff]  ;;  %v2689_v5 = vld [vmem:[#allocation8 + $0x888] sm:$0xff] }
 0x265   : > { %3861 = vmatprep.mubr.f32.mxu1 %v8332_v35  ;;  %5850 = vmatpush3.bf16.msra.mxu1 %v5849_v33  ;;  %v2690_v33 = vld [vmem:[#allocation8 + $0x890] sm:$0xff]  ;;  %v7581_v22 = vpop.f32.mrb[31].mxu0  ;;  %v5859_v56 = vpack.c.bf16 %v2679_v10, %v2676_v46  ;;  %v8335_v35 = vmax.f32 %v7420_v32, 0.0  ;;  %v922_v46 = vsub.s32 4, %v7199_v60  ;;  %v2695_v32 = vld [vmem:[#allocation8 + $0x8b8] sm:$0xff] }
 0x266   : > { %5852 = vmatprep.subr.bf16.mxu1 %v5851_v49  ;;  %v5857_v49 = vpack.c.bf16 %v2625_v38, %v2622_v55  ;;  %v5579_v63 = vpack.c.bf16 %v2690_v33, %v2687_v34  ;;  %v8336_v55 = vmax.f32 %v7440_v37, 0.0  ;;  %v2688_v34 = vld [vmem:[#allocation8 + $0x880] sm:$0xff]  ;;  %v2691_v33 = vld [vmem:[#allocation8 + $0x898] sm:$0xff] }
 0x267   : > { %5570 = vmatpush1.bf16.msra.mxu0 %v5569_v9  ;;  %v8334_v9 = vmax.f32 %v7424_v59, 0.0  ;;  %v2693_v59 = vld [vmem:[#allocation8 + $0x8a8] sm:$0xff]  ;;  %v2699_v37 = vld [vmem:[#allocation8 + $0x8d8] sm:$0xff] }
 0x268   : > { %5572 = vmatprep.subr.bf16.mxu0 %v5571_v7  ;;  %3862 = vmatmul.mubr.f32.gmra.mrb[82].mxu1 %v8333_v44  ;;  %v2628_v7 = vld [vmem:[#allocation8 + $0x6a0] sm:$0xff]  ;;  %v2685_v44 = vld [vmem:[#allocation8 + $0x868] sm:$0xff] }
 0x269   : > { %3866 = vmatprep.mubr.f32.mxu1 %v8334_v9  ;;  %5854 = vmatpush3.bf16.msra.mxu1 %v5853_v43  ;;  %v2696_v43 = vld [vmem:[#allocation8 + $0x8c0] sm:$0xff]  ;;  %v5863_v38 = vpack.c.bf16 %v2685_v44, %v2682_v57  ;;  %v8337_v9 = vmax.f32 %v7435_v53, 0.0  ;;  %v7593_v57 = vrot.slane %v7492_v31, %v922_v46  ;;  %v2701_v44 = vld [vmem:[#allocation8 + $0x8e8] sm:$0xff]  ;;  %v2646_v46 = vld [vmem:[#allocation8 + $0x730] sm:$0xff] }
 0x26a   : > { %5856 = vmatprep.subr.bf16.mxu1 %v5855_v51  ;;  %v5581_v51 = vpack.c.bf16 %v2689_v5, %v2686_v21  ;;  %v5583_v10 = vpack.c.bf16 %v2696_v43, %v2693_v59  ;;  %v2640_v21 = vld [vmem:[#allocation8 + $0x700] sm:$0xff]  ;;  %v2698_v5 = vld [vmem:[#allocation8 + $0x8d0] sm:$0xff]  ;;  %v2697_v59 = vld [vmem:[#allocation8 + $0x8c8] sm:$0xff] }
 0x26b   : > { %5574 = vmatpush1.bf16.msra.mxu0 %v5573_v12  ;;  %v5861_v12 = vpack.c.bf16 %v2631_v50, %v2628_v7  ;;  %v5585_v7 = vpack.c.bf16 %v2695_v32, %v2692_v47  ;;  %v5867_v50 = vpack.c.bf16 %v2691_v33, %v2688_v34  ;;  %v2705_v43 = vld [vmem:[#allocation8 + $0x908] sm:$0xff]  ;;  %v7605_v32 = vadd.f32 %v7312_v48, %v7495_v40  ;;  %v2707_v34 = vld [vmem:[#allocation8 + $0x918] sm:$0xff]  ;;  %v2700_v33 = vld [vmem:[#allocation8 + $0x8e0] sm:$0xff] }
 0x26c   : > { %5576 = vmatprep.subr.bf16.mxu0 %v5575_v8  ;;  %3867 = vmatmul.mubr.f32.gmra.mrb[84].mxu1 %v8335_v35  ;;  %v2637_v8 = vld [vmem:[#allocation8 + $0x6e8] sm:$0xff]  ;;  %v2694_v35 = vld [vmem:[#allocation8 + $0x8b0] sm:$0xff]  ;;  %v7614_v48 = vadd.f32 %v7308_v0, %v7593_v57 }
 0x26d   : > { %3871 = vmatprep.mubr.f32.mxu1 %v8336_v55  ;;  %5858 = vmatpush3.bf16.msra.mxu1 %v5857_v49  ;;  %v2702_v49 = vld [vmem:[#allocation8 + $0x8f0] sm:$0xff]  ;;  %v2708_v55 = vld [vmem:[#allocation8 + $0x920] sm:$0xff]  ;;  %v2757_v0 = vld [vmem:[#allocation8 + $0xaa8] sm:$0xff] }
 0x26e   : > { %5860 = vmatprep.subr.bf16.mxu1 %v5859_v56  ;;  %v5865_v56 = vpack.c.bf16 %v2637_v8, %v2634_v58  ;;  %v5587_v53 = vpack.c.bf16 %v2702_v49, %v2699_v37  ;;  %v5871_v58 = vpack.c.bf16 %v2697_v59, %v2694_v35  ;;  %v7601_v8 = vadd.f32 %v7292_v1, %v7593_v57  ;;  %v2711_v1 = vld [vmem:[#allocation8 + $0x938] sm:$0xff]  ;;  %v2714_v49 = vld [vmem:[#allocation8 + $0x950] sm:$0xff]  ;;  %v2713_v35 = vld [vmem:[#allocation8 + $0x948] sm:$0xff] }
 0x26f   : > { %5578 = vmatpush1.bf16.msra.mxu0 %v5577_v29  ;;  %v8338_v29 = vmax.f32 %v7456_v17, 0.0  ;;  %v8339_v17 = vmax.f32 %v7451_v16, 0.0  ;;  %v5591_v47 = vpack.c.bf16 %v2708_v55, %v2705_v43  ;;  %v2649_v16 = vld [vmem:[#allocation8 + $0x748] sm:$0xff]  ;;  %v8342_v37 = vmax.f32 %v7498_v11, 0.0  ;;  %v2754_v59 = vld [vmem:[#allocation8 + $0xa90] sm:$0xff]  ;;  %v2720_v55 = vld [vmem:[#allocation8 + $0x980] sm:$0xff] }
 0x270   : > { %5580 = vmatprep.subr.bf16.mxu0 %v5579_v63  ;;  %3872 = vmatmul.mubr.f32.gmra.mrb[86].mxu1 %v8337_v9  ;;  %v2643_v63 = vld [vmem:[#allocation8 + $0x718] sm:$0xff]  ;;  %v2337_v11 = vmax.f32 %v7605_v32, 0.0  ;;  %v2717_v43 = vld [vmem:[#allocation8 + $0x968] sm:$0xff]  ;;  %v2760_v32 = vld [vmem:[#allocation8 + $0xac0] sm:$0xff] }
 0x271   : > { %3876 = vmatprep.mubr.f32.mxu1 %v8338_v29  ;;  %5862 = vmatpush3.bf16.msra.mxu1 %v5861_v12  ;;  %v8340_v12 = vmax.f32 %v7473_v28, 0.0  ;;  %v8341_v28 = vmax.f32 %v7467_v52, 0.0  ;;  %v2703_v9 = vld [vmem:[#allocation8 + $0x8f8] sm:$0xff]  ;;  %v5873_v29 = vpack.c.bf16 %v2649_v16, %v2646_v46  ;;  %v5599_v46 = vpack.c.bf16 %v2720_v55, %v2717_v43  ;;  %v2716_v16 = vld [vmem:[#allocation8 + $0x960] sm:$0xff] }
 0x272   : > { %5864 = vmatprep.subr.bf16.mxu1 %v5863_v38  ;;  %v5589_v38 = vpack.c.bf16 %v2701_v44, %v2698_v5  ;;  %v7619_v5 = vadd.f32 %v7328_v36, %v7495_v40  ;;  %v5595_v44 = vpack.c.bf16 %v2714_v49, %v2711_v1  ;;  %v7628_v36 = vadd.f32 %v7324_v30, %v7593_v57  ;;  %v2712_v49 = vld [vmem:[#allocation8 + $0x940] sm:$0xff] }
 0x273   : > { %5582 = vmatpush1.bf16.msra.mxu0 %v5581_v51  ;;  %v5869_v51 = vpack.c.bf16 %v2643_v63, %v2640_v21  ;;  %v2655_v21 = vld [vmem:[#allocation8 + $0x778] sm:$0xff]  ;;  %v2710_v63 = vld [vmem:[#allocation8 + $0x930] sm:$0xff]  ;;  %v7635_v30 = vadd.f32 %v7338_v3, %v7495_v40  ;;  %v7644_v1 = vadd.f32 %v7334_v42, %v7593_v57  ;;  %v2769_v42 = vld [vmem:[#allocation8 + $0xb08] sm:$0xff] }
 0x274   : > { %5584 = vmatprep.subr.bf16.mxu0 %v5583_v10  ;;  %3877 = vmatmul.mubr.f32.gmra.mrb[88].mxu1 %v8339_v17  ;;  %v2704_v10 = vld [vmem:[#allocation8 + $0x900] sm:$0xff]  ;;  %v8344_v17 = vmax.f32 %v7522_v24, 0.0  ;;  %v2349_v24 = vmax.f32 %v7619_v5, 0.0  ;;  %v7649_v5 = vadd.f32 %v7342_v26, %v7495_v40 }
 0x275   : > { %3881 = vmatprep.mubr.f32.mxu1 %v8340_v12  ;;  %5866 = vmatpush3.bf16.msra.mxu1 %v5865_v56  ;;  %v2324_v56 = vmax.f32 %v7601_v8, 0.0  ;;  %v5593_v52 = vpack.c.bf16 %v2707_v34, %v2704_v10  ;;  %v2709_v8 = vld [vmem:[#allocation8 + $0x928] sm:$0xff]  ;;  %v2719_v10 = vld [vmem:[#allocation8 + $0x978] sm:$0xff] }
 0x276   : > { %5868 = vmatprep.subr.bf16.mxu1 %v5867_v50  ;;  %v2652_v50 = vld [vmem:[#allocation8 + $0x760] sm:$0xff]  ;;  %v2763_v34 = vld [vmem:[#allocation8 + $0xad8] sm:$0xff]  ;;  %v5601_v3 = vpack.c.bf16 %v2719_v10, %v2716_v16  ;;  %v7670_v10 = vadd.f32 %v7344_v2, %v7593_v57  ;;  %v2781_v2 = vld [vmem:[#allocation8 + $0xb68] sm:$0xff] }
 0x277   : > { %5586 = vmatpush1.bf16.msra.mxu0 %v5585_v7  ;;  %v5875_v7 = vpack.c.bf16 %v2703_v9, %v2700_v33  ;;  %v5877_v12 = vpack.c.bf16 %v2655_v21, %v2652_v50  ;;  %v2723_v33 = vld [vmem:[#allocation8 + $0x998] sm:$0xff]  ;;  %v2726_v9 = vld [vmem:[#allocation8 + $0x9b0] sm:$0xff]  ;;  %v2725_v50 = vld [vmem:[#allocation8 + $0x9a8] sm:$0xff] }
 0x278   : > { %5588 = vmatprep.subr.bf16.mxu0 %v5587_v53  ;;  %3882 = vmatmul.mubr.f32.gmra.mrb[90].mxu1 %v8341_v28  ;;  %v8343_v53 = vmax.f32 %v7488_v15, 0.0  ;;  %v5597_v15 = vpack.c.bf16 %v2713_v35, %v2710_v63  ;;  %v8346_v28 = vmax.f32 %v7519_v61, 0.0  ;;  %v5883_v61 = vpack.c.bf16 %v2763_v34, %v2760_v32  ;;  %v2766_v21 = vld [vmem:[#allocation8 + $0xaf0] sm:$0xff]  ;;  %v2737_v34 = vld [vmem:[#allocation8 + $0xa08] sm:$0xff] }
 0x279   : > { %3886 = vmatprep.mubr.f32.mxu1 %v8342_v37  ;;  %5870 = vmatpush3.bf16.msra.mxu1 %v5869_v51  ;;  %v2336_v51 = vmax.f32 %v7614_v48, 0.0  ;;  %v2348_v37 = vmax.f32 %v7628_v36, 0.0  ;;  %v2361_v63 = vmax.f32 %v7635_v30, 0.0  ;;  %v5887_v43 = vpack.c.bf16 %v2769_v42, %v2766_v21  ;;  %v2724_v48 = vld [vmem:[#allocation8 + $0x9a0] sm:$0xff]  ;;  %v2730_v36 = vld [vmem:[#allocation8 + $0x9d0] sm:$0xff]  ;;  %v2743_v21 = vld [vmem:[#allocation8 + $0xa38] sm:$0xff] }
 0x27a   : > { %5872 = vmatprep.subr.bf16.mxu1 %v5871_v58  ;;  %v2706_v58 = vld [vmem:[#allocation8 + $0x910] sm:$0xff] }
 0x27b   : > { %5590 = vmatpush1.bf16.msra.mxu0 %v5589_v38  ;;  %v5879_v38 = vpack.c.bf16 %v2757_v0, %v2754_v59  ;;  %v2360_v59 = vmax.f32 %v7644_v1, 0.0  ;;  %v7656_v0 = vadd.f32 %v7340_v6, %v7593_v57  ;;  %v2775_v6 = vld [vmem:[#allocation8 + $0xb38] sm:$0xff] }
 0x27c   : > { %5592 = vmatprep.subr.bf16.mxu0 %v5591_v47  ;;  %3887 = vmatmul.mubr.f32.gmra.mrb[92].mxu1 %v8343_v53  ;;  %v8345_v47 = vmax.f32 %v7513_v14, 0.0  ;;  %v5881_v14 = vpack.c.bf16 %v2709_v8, %v2706_v58  ;;  %v2729_v53 = vld [vmem:[#allocation8 + $0x9c8] sm:$0xff]  ;;  %v7661_v58 = vadd.f32 %v7346_v18, %v7495_v40  ;;  %v2735_v8 = vld [vmem:[#allocation8 + $0x9f8] sm:$0xff] }
 0x27d   : > { %3891 = vmatprep.mubr.f32.mxu1 %v8344_v17  ;;  %5874 = vmatpush3.bf16.msra.mxu1 %v5873_v29  ;;  %v2715_v29 = vld [vmem:[#allocation8 + $0x958] sm:$0xff]  ;;  %v2718_v17 = vld [vmem:[#allocation8 + $0x970] sm:$0xff]  ;;  %v2372_v16 = vmax.f32 %v7656_v0, 0.0 }
 0x27e   : > { %3300 = vmatmul.mubr.f32.vlgmr.msra.gmra.mrb[32].mxu0 %v2324_v56  ;;  %5876 = vmatprep.subr.bf16.mxu1 %v5875_v7  ;;  %v2722_v7 = vld [vmem:[#allocation8 + $0x990] sm:$0xff]  ;;  %v5885_v35 = vpack.c.bf16 %v2715_v29, %v2712_v49  ;;  %v2384_v29 = vmax.f32 %v7670_v10, 0.0  ;;  %v2739_v1 = vld [vmem:[#allocation8 + $0xa18] sm:$0xff] }
 0x27f   : > { %3305 = vmatprep.mubr.f32.mxu0 %v2337_v11  ;;  %5594 = vmatpush1.bf16.msra.mxu0 %v5593_v52  ;;  %v5603_v52 = vpack.c.bf16 %v2726_v9, %v2723_v33  ;;  %v5605_v26 = vpack.c.bf16 %v2725_v50, %v2722_v7  ;;  %v2385_v33 = vmax.f32 %v7661_v58, 0.0  ;;  %v7675_v9 = vadd.f32 %v7352_v20, %v7495_v40  ;;  %v2740_v50 = vld [vmem:[#allocation8 + $0xa20] sm:$0xff]  ;;  %v2793_v58 = vld [vmem:[#allocation8 + $0xbc8] sm:$0xff]  ;;  %v2742_v0 = vld [vmem:[#allocation8 + $0xa30] sm:$0xff] }
 0x280   : > { %3892 = vmatmul.mubr.f32.gmra.mrb[94].mxu1 %v8345_v47  ;;  %5596 = vmatprep.subr.bf16.mxu0 %v5595_v44  ;;  %v2732_v44 = vld [vmem:[#allocation8 + $0x9e0] sm:$0xff]  ;;  %v2738_v47 = vld [vmem:[#allocation8 + $0xa10] sm:$0xff] }
 0x281   : > { %3961 = vmatprep.mubr.f32.mxu1 %v8346_v28  ;;  %5878 = vmatpush3.bf16.msra.mxu1 %v5877_v12  ;;  %v5607_v55 = vpack.c.bf16 %v2732_v44, %v2729_v53  ;;  %v2728_v12 = vld [vmem:[#allocation8 + $0x9c0] sm:$0xff]  ;;  %v5611_v30 = vpack.c.bf16 %v2738_v47, %v2735_v8  ;;  %v2734_v28 = vld [vmem:[#allocation8 + $0x9f0] sm:$0xff]  ;;  %v2397_v42 = vmax.f32 %v7675_v9, 0.0  ;;  %v2787_v53 = vld [vmem:[#allocation8 + $0xb98] sm:$0xff] }
 0x282   : > { %3306 = vmatmul.mubr.f32.gmra.mrb[34].mxu0 %v2336_v51  ;;  %5880 = vmatprep.subr.bf16.mxu1 %v5879_v38  ;;  %v2373_v38 = vmax.f32 %v7649_v5, 0.0  ;;  %v5613_v20 = vpack.c.bf16 %v2737_v34, %v2734_v28  ;;  %v2784_v5 = vld [vmem:[#allocation8 + $0xb80] sm:$0xff]  ;;  %v2747_v44 = vld [vmem:[#allocation8 + $0xa58] sm:$0xff]  ;;  %v2758_v10 = vld [vmem:[#allocation8 + $0xab0] sm:$0xff] }
 0x283   : > { %3311 = vmatprep.mubr.f32.mxu0 %v2349_v24  ;;  %5598 = vmatpush1.bf16.msra.mxu0 %v5597_v15  ;;  %v2731_v15 = vld [vmem:[#allocation8 + $0x9d8] sm:$0xff]  ;;  %v2756_v8 = vld [vmem:[#allocation8 + $0xaa0] sm:$0xff] }
 0x284   : > { %5600 = vmatprep.subr.bf16.mxu0 %v5599_v46  ;;  %3962 = vmatmul.mubr.f32.vlgmr.msra.gmra.mrb[96].mxu1 %v2324_v56  ;;  %v2721_v56 = vld [vmem:[#allocation8 + $0x988] sm:$0xff]  ;;  %v5609_v18 = vpack.c.bf16 %v2731_v15, %v2728_v12  ;;  %v5899_v12 = vpack.c.bf16 %v2787_v53, %v2784_v5  ;;  %v2752_v28 = vld [vmem:[#allocation8 + $0xa80] sm:$0xff] }
 0x285   : > { %3966 = vmatprep.mubr.f32.mxu1 %v2337_v11  ;;  %5882 = vmatpush3.bf16.msra.mxu1 %v5881_v14  ;;  %v2772_v11 = vld [vmem:[#allocation8 + $0xb20] sm:$0xff]  ;;  %v5889_v46 = vpack.c.bf16 %v2721_v56, %v2718_v17  ;;  %v2741_v14 = vld [vmem:[#allocation8 + $0xa28] sm:$0xff]  ;;  %v8347_v56 = vld [vmem:[#allocation18_spill] sm:$0xff] }
 0x286   : > { %3312 = vmatmul.mubr.f32.gmra.mrb[36].mxu0 %v2348_v37  ;;  %5884 = vmatprep.subr.bf16.mxu1 %v5883_v61  ;;  %v5891_v32 = vpack.c.bf16 %v2775_v6, %v2772_v11  ;;  %v7684_v61 = vadd.f32 %v7350_v45, %v7593_v57  ;;  %v7690_v45 = vadd.f32 %v7358_v25, %v7495_v40  ;;  %v2736_v40 = vld [vmem:[#allocation8 + $0xa00] sm:$0xff]  ;;  %v2749_v11 = vld [vmem:[#allocation8 + $0xa68] sm:$0xff] }
 0x287   : > { %3317 = vmatprep.mubr.f32.mxu0 %v2361_v63  ;;  %5602 = vmatpush1.bf16.msra.mxu0 %v5601_v3  ;;  %v2744_v3 = vld [vmem:[#allocation8 + $0xa40] sm:$0xff]  ;;  %v5617_v25 = vpack.c.bf16 %v2743_v21, %v2740_v50  ;;  %v2761_v5 = vld [vmem:[#allocation8 + $0xac8] sm:$0xff] }
 0x288   : > { %5604 = vmatprep.subr.bf16.mxu0 %v5603_v52  ;;  %3967 = vmatmul.mubr.f32.gmra.mrb[98].mxu1 %v2336_v51  ;;  %v2727_v51 = vld [vmem:[#allocation8 + $0x9b8] sm:$0xff]  ;;  %v5615_v7 = vpack.c.bf16 %v2744_v3, %v2741_v14  ;;  %v2396_v17 = vmax.f32 %v7684_v61, 0.0  ;;  %v2409_v6 = vmax.f32 %v7690_v45, 0.0  ;;  %v2796_v9 = vld [vmem:[#allocation8 + $0xbe0] sm:$0xff]  ;;  %v2762_v3 = vld [vmem:[#allocation8 + $0xad0] sm:$0xff] }
 0x289   : > { %3971 = vmatprep.mubr.f32.mxu1 %v2349_v24  ;;  %5886 = vmatpush3.bf16.msra.mxu1 %v5885_v35  ;;  %v2778_v24 = vld [vmem:[#allocation8 + $0xb50] sm:$0xff]  ;;  %v5893_v49 = vpack.c.bf16 %v2727_v51, %v2724_v48  ;;  %v930_v48 = vsub.s32 6, %v7199_v60  ;;  %v2759_v14 = vld [vmem:[#allocation8 + $0xab8] sm:$0xff]  ;;  %v2748_v21 = vld [vmem:[#allocation8 + $0xa60] sm:$0xff] }
 0x28a   : > { %3318 = vmatmul.mubr.f32.gmra.mrb[38].mxu0 %v2360_v59  ;;  %5888 = vmatprep.subr.bf16.mxu1 %v5887_v43  ;;  %v5895_v52 = vpack.c.bf16 %v2781_v2, %v2778_v24  ;;  %v2750_v35 = vld [vmem:[#allocation8 + $0xa70] sm:$0xff]  ;;  %v7699_v43 = vadd.f32 %v8347_v56, %v7593_v57  ;;  %v2753_v57 = vld [vmem:[#allocation8 + $0xa88] sm:$0xff]  ;;  %v2799_v2 = vld [vmem:[#allocation8 + $0xbf8] sm:$0xff] }
 0x28b   : > { %3323 = vmatprep.mubr.f32.mxu0 %v2373_v38  ;;  %5606 = vmatpush1.bf16.msra.mxu0 %v5605_v26  ;;  %v5619_v15 = vpack.c.bf16 %v2750_v35, %v2747_v44  ;;  %v5623_v24 = vpack.c.bf16 %v2756_v8, %v2753_v57  ;;  %v5907_v50 = vpack.c.bf16 %v2799_v2, %v2796_v9  ;;  %v2850_v45 = vld [vmem:[#allocation8 + $0xd90] sm:$0xff]  ;;  %v2765_v53 = vld [vmem:[#allocation8 + $0xae8] sm:$0xff]  ;;  %v2780_v2 = vld [vmem:[#allocation8 + $0xb60] sm:$0xff] }
 0x28c   : > { %5608 = vmatprep.subr.bf16.mxu0 %v5607_v55  ;;  %3972 = vmatmul.mubr.f32.gmra.mrb[100].mxu1 %v2348_v37  ;;  %v2733_v37 = vld [vmem:[#allocation8 + $0x9e8] sm:$0xff] }
 0x28d   : > { %3976 = vmatprep.mubr.f32.mxu1 %v2361_v63  ;;  %5890 = vmatpush3.bf16.msra.mxu1 %v5889_v46  ;;  %v934_v63 = vsub.s32 7, %v7199_v60  ;;  %v5897_v26 = vpack.c.bf16 %v2733_v37, %v2730_v36  ;;  %v5901_v46 = vpack.c.bf16 %v2739_v1, %v2736_v40  ;;  %v7715_v37 = vrot.slane %v7492_v31, %v930_v48  ;;  %v2802_v40 = vld [vmem:[#allocation8 + $0xc10] sm:$0xff]  ;;  %v2805_v1 = vld [vmem:[#allocation8 + $0xc28] sm:$0xff] }
 0x28e   : > { %3324 = vmatmul.mubr.f32.gmra.mrb[40].mxu0 %v2372_v16  ;;  %5892 = vmatprep.subr.bf16.mxu1 %v5891_v32  ;;  %v5913_v57 = vpack.c.bf16 %v2805_v1, %v2802_v40  ;;  %v2777_v9 = vld [vmem:[#allocation8 + $0xb48] sm:$0xff] }
 0x28f   : > { %3329 = vmatprep.mubr.f32.mxu0 %v2385_v33  ;;  %5610 = vmatpush1.bf16.msra.mxu0 %v5609_v18  ;;  %v7702_v55 = vrot.slane %v7492_v31, %v934_v63  ;;  %v2408_v18 = vmax.f32 %v7699_v43, 0.0  ;;  %v2751_v63 = vld [vmem:[#allocation8 + $0xa78] sm:$0xff]  ;;  %v2768_v31 = vld [vmem:[#allocation8 + $0xb00] sm:$0xff]  ;;  %v5629_v43 = vpack.c.bf16 %v2761_v5, %v2758_v10  ;;  %v5639_v5 = vpack.c.bf16 %v2780_v2, %v2777_v9  ;;  %v2826_v9 = vld [vmem:[#allocation8 + $0xcd0] sm:$0xff] }
 0x290   : > { %5612 = vmatprep.subr.bf16.mxu0 %v5611_v30  ;;  %3977 = vmatmul.mubr.f32.gmra.mrb[102].mxu1 %v2360_v59  ;;  %v2746_v59 = vld [vmem:[#allocation8 + $0xa50] sm:$0xff]  ;;  %v5909_v35 = vpack.c.bf16 %v2751_v63, %v2748_v21  ;;  %v2817_v21 = vld [vmem:[#allocation8 + $0xc88] sm:$0xff]  ;;  %v2776_v63 = vld [vmem:[#allocation8 + $0xb40] sm:$0xff] }
 0x291   : > { %3981 = vmatprep.mubr.f32.mxu1 %v2373_v38  ;;  %5894 = vmatpush3.bf16.msra.mxu1 %v5893_v49  ;;  %v2790_v38 = vld [vmem:[#allocation8 + $0xbb0] sm:$0xff]  ;;  %v5621_v32 = vpack.c.bf16 %v2749_v11, %v2746_v59  ;;  %v2764_v59 = vld [vmem:[#allocation8 + $0xae0] sm:$0xff]  ;;  %v2859_v11 = vld [vmem:[#allocation8 + $0xdd8] sm:$0xff] }
 0x292   : > { %3330 = vmatmul.mubr.f32.gmra.mrb[42].mxu0 %v2384_v29  ;;  %5896 = vmatprep.subr.bf16.mxu1 %v5895_v52  ;;  %v5903_v30 = vpack.c.bf16 %v2793_v58, %v2790_v38  ;;  %v2771_v38 = vld [vmem:[#allocation8 + $0xb18] sm:$0xff]  ;;  %v2774_v58 = vld [vmem:[#allocation8 + $0xb30] sm:$0xff]  ;;  %v2829_v2 = vld [vmem:[#allocation8 + $0xce8] sm:$0xff] }
 0x293   : > { %3335 = vmatprep.mubr.f32.mxu0 %v2397_v42  ;;  %5614 = vmatpush1.bf16.msra.mxu0 %v5613_v20 }
 0x294   : > { %5616 = vmatprep.subr.bf16.mxu0 %v5615_v7  ;;  %3982 = vmatmul.mubr.f32.gmra.mrb[104].mxu1 %v2372_v16  ;;  %v2745_v16 = vld [vmem:[#allocation8 + $0xa48] sm:$0xff] }
 0x295   : > { %3986 = vmatprep.mubr.f32.mxu1 %v2385_v33  ;;  %5898 = vmatpush3.bf16.msra.mxu1 %v5897_v26  ;;  %v2755_v33 = vld [vmem:[#allocation8 + $0xa98] sm:$0xff]  ;;  %v5905_v36 = vpack.c.bf16 %v2745_v16, %v2742_v0  ;;  %v2770_v0 = vld [vmem:[#allocation8 + $0xb10] sm:$0xff] }
 0x296   : > { %3336 = vmatmul.mubr.f32.gmra.mrb[44].mxu0 %v2396_v17  ;;  %v1821_v47 = vpop.f32.mrb[32].mxu1  ;;  %5900 = vmatprep.subr.bf16.mxu1 %v5899_v12  ;;  %v5625_v7 = vpack.c.bf16 %v2755_v33, %v2752_v28  ;;  %v2767_v12 = vld [vmem:[#allocation8 + $0xaf8] sm:$0xff]  ;;  %v5635_v28 = vpack.c.bf16 %v2774_v58, %v2771_v38  ;;  %v2865_v33 = vld [vmem:[#allocation8 + $0xe08] sm:$0xff] }
 0x297   : > { %3341 = vmatprep.mubr.f32.mxu0 %v2409_v6  ;;  %5618 = vmatpush1.bf16.msra.mxu0 %v5617_v25  ;;  %v1823_v51 = vpop.f32.mrb[33].mxu1  ;;  %v7720_v26 = vadd.f32 %v1821_v47, %v7715_v37  ;;  %v5633_v48 = vpack.c.bf16 %v2767_v12, %v2764_v59  ;;  %v2823_v12 = vld [vmem:[#allocation8 + $0xcb8] sm:$0xff] }
 0x298   : > { %v6024_v34 = vadd.f32 %v1823_v51, %v7702_v55  ;;  %5620 = vmatprep.subr.bf16.mxu0 %v5619_v15  ;;  %3987 = vmatmul.mubr.f32.gmra.mrb[106].mxu1 %v2384_v29  ;;  %v5627_v29 = vpack.c.bf16 %v2762_v3, %v2759_v14  ;;  %v2856_v15 = vld [vmem:[#allocation8 + $0xdc0] sm:$0xff] }
 0x299   : > { %3991 = vmatprep.mubr.f32.mxu1 %v2397_v42  ;;  %5902 = vmatpush3.bf16.msra.mxu1 %v5901_v46  ;;  %v2853_v42 = vld [vmem:[#allocation8 + $0xda8] sm:$0xff]  ;;  %v2326_v8 = vmax.f32 %v7720_v26, 0.0  ;;  %v5915_v51 = vpack.c.bf16 %v2859_v11, %v2856_v15  ;;  %v2782_v15 = vld [vmem:[#allocation8 + $0xb70] sm:$0xff] }
 0x29a   : > { %3342 = vmatmul.mubr.f32.gmra.mrb[46].mxu0 %v2408_v18  ;;  %v2327_v49 = vmax.f32 %v6024_v34, 0.0  ;;  %v1827_v20 = vpop.f32.mrb[34].mxu1  ;;  %5904 = vmatprep.subr.bf16.mxu1 %v5903_v30  ;;  %v5911_v25 = vpack.c.bf16 %v2853_v42, %v2850_v45  ;;  %v2811_v30 = vld [vmem:[#allocation8 + $0xc58] sm:$0xff]  ;;  %v2773_v34 = vld [vmem:[#allocation8 + $0xb28] sm:$0xff]  ;;  %v2868_v42 = vld [vmem:[#allocation8 + $0xe20] sm:$0xff] }
 0x29b   : > { %5622 = vmatpush1.bf16.msra.mxu0 %v5621_v32  ;;  %v1829_v52 = vpop.f32.mrb[35].mxu1  ;;  %v7727_v47 = vadd.f32 %v1827_v20, %v7715_v37  ;;  %v2808_v32 = vld [vmem:[#allocation8 + $0xc40] sm:$0xff]  ;;  %v2779_v45 = vld [vmem:[#allocation8 + $0xb58] sm:$0xff] }
 0x29c   : > { %5624 = vmatprep.subr.bf16.mxu0 %v5623_v24  ;;  %3412 = vmatprep.mubr.f32.mxu0 %v2327_v49  ;;  %v7723_v61 = vadd.f32 %v1829_v52, %v7702_v55  ;;  %v2862_v24 = vld [vmem:[#allocation8 + $0xdf0] sm:$0xff]  ;;  %v5917_v3 = vpack.c.bf16 %v2811_v30, %v2808_v32  ;;  %v5637_v52 = vpack.c.bf16 %v2773_v34, %v2770_v0 }
 0x29d   : > { %3992 = vmatmul.mubr.f32.gmra.mrb[108].mxu1 %v2396_v17  ;;  %v5631_v17 = vpack.c.bf16 %v2768_v31, %v2765_v53  ;;  %v2871_v53 = vld [vmem:[#allocation8 + $0xe38] sm:$0xff]  ;;  %v5641_v1 = vpack.c.bf16 %v2779_v45, %v2776_v63 }
 0x29e   : > { %3996 = vmatprep.mubr.f32.mxu1 %v2409_v6  ;;  %5906 = vmatpush3.bf16.msra.mxu1 %v5905_v36  ;;  %v1833_v44 = vpop.f32.mrb[36].mxu1  ;;  %v2783_v31 = vld [vmem:[#allocation8 + $0xb78] sm:$0xff]  ;;  %v5923_v59 = vpack.c.bf16 %v2871_v53, %v2868_v42  ;;  %v5929_v42 = vpack.c.bf16 %v2829_v2, %v2826_v9  ;;  %v8348_v2 = vld [vmem:[#allocation17_spill] sm:$0xff] }
 0x29f   : > { %5626 = vmatpush1.bf16.msra.mxu0 %v5625_v7  ;;  %v1835_v56 = vpop.f32.mrb[37].mxu1  ;;  %5908 = vmatprep.subr.bf16.mxu1 %v5907_v50  ;;  %v7739_v20 = vadd.f32 %v1833_v44, %v7715_v37  ;;  %v5919_v7 = vpack.c.bf16 %v2865_v33, %v2862_v24  ;;  %v2814_v50 = vld [vmem:[#allocation8 + $0xc70] sm:$0xff]  ;;  %v2883_v63 = vld [vmem:[#allocation8 + $0xe98] sm:$0xff] }
 0x2a0   : > { %5628 = vmatprep.subr.bf16.mxu0 %v5627_v29  ;;  %v7731_v16 = vadd.f32 %v1835_v56, %v7702_v55  ;;  %v2786_v44 = vld [vmem:[#allocation8 + $0xb90] sm:$0xff]  ;;  %v5921_v56 = vpack.c.bf16 %v2817_v21, %v2814_v50  ;;  %v2791_v50 = vld [vmem:[#allocation8 + $0xbb8] sm:$0xff]  ;;  %v2880_v21 = vld [vmem:[#allocation8 + $0xe80] sm:$0xff] }
 0x2a1   : > { %3997 = vmatmul.mubr.f32.gmra.mrb[110].mxu1 %v2408_v18  ;;  %v2339_v18 = vmax.f32 %v7723_v61, 0.0  ;;  %v5643_v58 = vpack.c.bf16 %v2786_v44, %v2783_v31 }
 0x2a2   : > { %5910 = vmatpush3.bf16.msra.mxu1 %v5909_v35  ;;  %4066 = vmatprep.mubr.f32.mxu1 %v2327_v49  ;;  %v1839_v6 = vpop.f32.mrb[38].mxu1  ;;  %v2338_v49 = vmax.f32 %v7727_v47, 0.0  ;;  %v2351_v10 = vmax.f32 %v7731_v16, 0.0  ;;  %v2818_v47 = vld [vmem:[#allocation8 + $0xc90] sm:$0xff] }
 0x2a3   : > { %5630 = vmatpush1.bf16.msra.mxu0 %v5629_v43  ;;  %v1841_v46 = vpop.f32.mrb[39].mxu1  ;;  %5912 = vmatprep.subr.bf16.mxu1 %v5911_v25  ;;  %v2350_v43 = vmax.f32 %v7739_v20, 0.0  ;;  %v7751_v25 = vadd.f32 %v1839_v6, %v7715_v37  ;;  %v2789_v6 = vld [vmem:[#allocation8 + $0xba8] sm:$0xff]  ;;  %v2827_v20 = vld [vmem:[#allocation8 + $0xcd8] sm:$0xff] }
 0x2a4   : > { %5632 = vmatprep.subr.bf16.mxu0 %v5631_v17  ;;  %v7743_v29 = vadd.f32 %v1841_v46, %v7702_v55  ;;  %v2820_v17 = vld [vmem:[#allocation8 + $0xca0] sm:$0xff]  ;;  %v2874_v46 = vld [vmem:[#allocation8 + $0xe50] sm:$0xff] }
 0x2a5   : > { %4067 = vmatmul.mubr.f32.vlgmr.msra.gmra.mrb[112].mxu1 %v2326_v8  ;;  %v5925_v30 = vpack.c.bf16 %v2823_v12, %v2820_v17  ;;  %v2362_v0 = vmax.f32 %v7751_v25, 0.0  ;;  %v2794_v17 = vld [vmem:[#allocation8 + $0xbd0] sm:$0xff]  ;;  %v2833_v25 = vld [vmem:[#allocation8 + $0xd08] sm:$0xff] }
 0x2a6   : > { %4071 = vmatprep.mubr.f32.mxu1 %v2339_v18  ;;  %5914 = vmatpush3.bf16.msra.mxu1 %v5913_v57  ;;  %v1845_v14 = vpop.f32.mrb[40].mxu1  ;;  %v2363_v11 = vmax.f32 %v7743_v29, 0.0  ;;  %v2785_v57 = vld [vmem:[#allocation8 + $0xb88] sm:$0xff] }
 0x2a7   : > { %5634 = vmatpush1.bf16.msra.mxu0 %v5633_v48  ;;  %v1847_v36 = vpop.f32.mrb[41].mxu1  ;;  %5916 = vmatprep.subr.bf16.mxu1 %v5915_v51  ;;  %v2877_v48 = vld [vmem:[#allocation8 + $0xe68] sm:$0xff]  ;;  %v2792_v51 = vld [vmem:[#allocation8 + $0xbc0] sm:$0xff]  ;;  %v5645_v24 = vpack.c.bf16 %v2785_v57, %v2782_v15 }
 0x2a8   : > { %5636 = vmatprep.subr.bf16.mxu0 %v5635_v28  ;;  %v7755_v38 = vadd.f32 %v1847_v36, %v7702_v55  ;;  %v7763_v28 = vadd.f32 %v1845_v14, %v7715_v37  ;;  %v5927_v33 = vpack.c.bf16 %v2877_v48, %v2874_v46  ;;  %v2795_v14 = vld [vmem:[#allocation8 + $0xbd8] sm:$0xff]  ;;  %v2797_v57 = vld [vmem:[#allocation8 + $0xbe8] sm:$0xff]  ;;  %v2886_v46 = vld [vmem:[#allocation8 + $0xeb0] sm:$0xff] }
 0x2a9   : > { %4072 = vmatmul.mubr.f32.gmra.mrb[114].mxu1 %v2338_v49  ;;  %v2889_v48 = vld [vmem:[#allocation8 + $0xec8] sm:$0xff] }
 0x2aa   : > { %4076 = vmatprep.mubr.f32.mxu1 %v2351_v10  ;;  %5918 = vmatpush3.bf16.msra.mxu1 %v5917_v3  ;;  %v1851_v35 = vpop.f32.mrb[42].mxu1  ;;  %v2788_v3 = vld [vmem:[#allocation8 + $0xba0] sm:$0xff]  ;;  %v2375_v36 = vmax.f32 %v7755_v38, 0.0  ;;  %v2374_v53 = vmax.f32 %v7763_v28, 0.0  ;;  %v5935_v9 = vpack.c.bf16 %v2889_v48, %v2886_v46  ;;  %v2839_v28 = vld [vmem:[#allocation8 + $0xd38] sm:$0xff] }
 0x2ab   : > { %5638 = vmatpush1.bf16.msra.mxu0 %v5637_v52  ;;  %v1853_v40 = vpop.f32.mrb[43].mxu1  ;;  %5920 = vmatprep.subr.bf16.mxu1 %v5919_v7  ;;  %v5647_v7 = vpack.c.bf16 %v2792_v51, %v2789_v6  ;;  %v7775_v31 = vadd.f32 %v1851_v35, %v7715_v37  ;;  %v7781_v35 = vld [vmem:[#allocation7 + $0x8] sm:$0xf]  ;;  %v2801_v6 = vld [vmem:[#allocation8 + $0xc08] sm:$0xff]  ;;  %v2804_v51 = vld [vmem:[#allocation8 + $0xc20] sm:$0xff] }
 0x2ac   : > { %5640 = vmatprep.subr.bf16.mxu0 %v5639_v5  ;;  %v7767_v52 = vadd.f32 %v1853_v40, %v7702_v55  ;;  %v2798_v5 = vld [vmem:[#allocation8 + $0xbf0] sm:$0xff]  ;;  %v5931_v40 = vpack.c.bf16 %v2883_v63, %v2880_v21  ;;  %v5655_v21 = vpack.c.bf16 %v2804_v51, %v2801_v6 }
 0x2ad   : > { %4077 = vmatmul.mubr.f32.gmra.mrb[116].mxu1 %v2350_v43  ;;  %v2838_v63 = vld [vmem:[#allocation8 + $0xd30] sm:$0xff] }
 0x2ae   : > { %4081 = vmatprep.mubr.f32.mxu1 %v2363_v11  ;;  %5922 = vmatpush3.bf16.msra.mxu1 %v5921_v56  ;;  %v1857_v32 = vpop.f32.mrb[44].mxu1  ;;  %v5649_v56 = vpack.c.bf16 %v2791_v50, %v2788_v3  ;;  %v2387_v12 = vmax.f32 %v7767_v52, 0.0  ;;  %v7793_v3 = vrot.slane %v7781_v35, %v8348_v2 }
 0x2af   : > { %5642 = vmatpush1.bf16.msra.mxu0 %v5641_v1  ;;  %v1859_v34 = vpop.f32.mrb[45].mxu1  ;;  %5924 = vmatprep.subr.bf16.mxu1 %v5923_v59  ;;  %v2832_v1 = vld [vmem:[#allocation8 + $0xd00] sm:$0xff]  ;;  %v2835_v59 = vld [vmem:[#allocation8 + $0xd18] sm:$0xff] }
 0x2b0   : > { %5644 = vmatprep.subr.bf16.mxu0 %v5643_v58  ;;  %v7779_v15 = vadd.f32 %v1859_v34, %v7702_v55  ;;  %v5651_v58 = vpack.c.bf16 %v2798_v5, %v2795_v14  ;;  %v8284_v34 = vmax.f32 %v7775_v31, 0.0  ;;  %v2841_v14 = vld [vmem:[#allocation8 + $0xd48] sm:$0xff]  ;;  %v2800_v5 = vld [vmem:[#allocation8 + $0xc00] sm:$0xff] }
 0x2b1   : > { %4082 = vmatmul.mubr.f32.gmra.mrb[118].mxu1 %v2362_v0 }
 0x2b2   : > { %4086 = vmatprep.mubr.f32.mxu1 %v2375_v36  ;;  %5926 = vmatpush3.bf16.msra.mxu1 %v5925_v30  ;;  %v1863_v45 = vpop.f32.mrb[46].mxu1  ;;  %v5933_v30 = vpack.c.bf16 %v2835_v59, %v2832_v1  ;;  %v2810_v1 = vld [vmem:[#allocation8 + $0xc50] sm:$0xff]  ;;  %v8349_v59 = vld [vmem:[#allocation16_spill] sm:$0xff] }
 0x2b3   : > { %5646 = vmatpush1.bf16.msra.mxu0 %v5645_v24  ;;  %v1865_v44 = vpop.f32.mrb[47].mxu1  ;;  %5928 = vmatprep.subr.bf16.mxu1 %v5927_v33  ;;  %v7789_v24 = vadd.f32 %v1857_v32, %v7715_v37  ;;  %v5653_v33 = vpack.c.bf16 %v2797_v57, %v2794_v17  ;;  %v2803_v32 = vld [vmem:[#allocation8 + $0xc18] sm:$0xff]  ;;  %v7809_v17 = vadd.f32 %v1863_v45, %v7715_v37  ;;  %v8350_v57 = vld [vmem:[#allocation21_spill] sm:$0xff] }
 0x2b4   : > { %5648 = vmatprep.subr.bf16.mxu0 %v5647_v7  ;;  %v8283_v7 = vmax.f32 %v7779_v15, 0.0  ;;  %v7797_v50 = vadd.f32 %v1865_v44, %v7702_v55  ;;  %v7805_v55 = vrot.slane %v7781_v35, %v8349_v59  ;;  %v7813_v46 = vadd.f32 %v8350_v57, %v7793_v3  ;;  %v2809_v45 = vld [vmem:[#allocation8 + $0xc48] sm:$0xff] }
 0x2b5   : > { %4087 = vmatmul.mubr.f32.gmra.mrb[120].mxu1 %v2374_v53  ;;  %v2398_v44 = vmax.f32 %v7789_v24, 0.0  ;;  %v5657_v6 = vpack.c.bf16 %v2803_v32, %v2800_v5  ;;  %v8351_v32 = vld [vmem:[#allocation20_spill] sm:$0xff]  ;;  %v7832_v57 = vadd.f32 %v7508_v19, %v7793_v3  ;;  %v2851_v24 = vld [vmem:[#allocation8 + $0xd98] sm:$0xff] }
 0x2b6   : > { %4091 = vmatprep.mubr.f32.mxu1 %v2387_v12  ;;  %5930 = vmatpush3.bf16.msra.mxu1 %v5929_v42  ;;  %v2892_v42 = vld [vmem:[#allocation8 + $0xee0] sm:$0xff]  ;;  %v2411_v48 = vmax.f32 %v7797_v50, 0.0 }
 0x2b7   : > { %5650 = vmatpush1.bf16.msra.mxu0 %v5649_v56  ;;  %5932 = vmatprep.subr.bf16.mxu1 %v5931_v40  ;;  %v2895_v56 = vld [vmem:[#allocation8 + $0xef8] sm:$0xff] }
 0x2b8   : > { %5652 = vmatprep.subr.bf16.mxu0 %v5651_v58  ;;  %v2807_v40 = vld [vmem:[#allocation8 + $0xc38] sm:$0xff]  ;;  %v5937_v58 = vpack.c.bf16 %v2841_v14, %v2838_v63  ;;  %v5939_v51 = vpack.c.bf16 %v2895_v56, %v2892_v42  ;;  %v2813_v63 = vld [vmem:[#allocation8 + $0xc68] sm:$0xff]  ;;  %v2410_v14 = vmax.f32 %v7809_v17, 0.0  ;;  %v7827_v42 = vadd.f32 %v8351_v32, %v7805_v55 }
 0x2b9   : > { %4092 = vmatmul.mubr.f32.gmra.mrb[122].mxu1 %v8284_v34  ;;  %v2806_v34 = vld [vmem:[#allocation8 + $0xc30] sm:$0xff]  ;;  %v5659_v37 = vpack.c.bf16 %v2810_v1, %v2807_v40  ;;  %v2329_v56 = vmax.f32 %v7813_v46, 0.0  ;;  %v2815_v40 = vld [vmem:[#allocation8 + $0xc78] sm:$0xff]  ;;  %v2940_v46 = vld [vmem:[#allocation8 + $0x1060] sm:$0xff] }
 0x2ba   : > { %4096 = vmatprep.mubr.f32.mxu1 %v8283_v7  ;;  %5934 = vmatpush3.bf16.msra.mxu1 %v5933_v30  ;;  %v2844_v30 = vld [vmem:[#allocation8 + $0xd60] sm:$0xff]  ;;  %v2847_v7 = vld [vmem:[#allocation8 + $0xd78] sm:$0xff]  ;;  %v5661_v26 = vpack.c.bf16 %v2809_v45, %v2806_v34  ;;  %v2822_v34 = vld [vmem:[#allocation8 + $0xcb0] sm:$0xff]  ;;  %v2328_v19 = vmax.f32 %v7827_v42, 0.0 }
 0x2bb   : > { %5654 = vmatpush1.bf16.msra.mxu0 %v5653_v33  ;;  %5936 = vmatprep.subr.bf16.mxu1 %v5935_v9  ;;  %v2946_v33 = vld [vmem:[#allocation8 + $0x1090] sm:$0xff]  ;;  %v2949_v9 = vld [vmem:[#allocation8 + $0x10a8] sm:$0xff]  ;;  %v5941_v5 = vpack.c.bf16 %v2847_v7, %v2844_v30  ;;  %v2907_v32 = vld [vmem:[#allocation8 + $0xf58] sm:$0xff] }
 0x2bc   : > { %5656 = vmatprep.subr.bf16.mxu0 %v5655_v21  ;;  %v2816_v21 = vld [vmem:[#allocation8 + $0xc80] sm:$0xff]  ;;  %v5943_v1 = vpack.c.bf16 %v2949_v9, %v2946_v33  ;;  %v2898_v7 = vld [vmem:[#allocation8 + $0xf10] sm:$0xff]  ;;  %v2341_v9 = vmax.f32 %v7832_v57, 0.0  ;;  %v2911_v42 = vld [vmem:[#allocation8 + $0xf78] sm:$0xff] }
 0x2bd   : > { %4097 = vmatmul.mubr.f32.gmra.mrb[124].mxu1 %v2398_v44  ;;  %v5663_v61 = vpack.c.bf16 %v2816_v21, %v2813_v63  ;;  %v8352_v30 = vld [vmem:[#allocation22_spill] sm:$0xff]  ;;  %v7850_v63 = vadd.f32 %v7532_v62, %v7793_v3 }
 0x2be   : > { %3413 = vmatmul.mubr.f32.vlgmr.msra.gmra.mrb[32].mxu0 %v2326_v8  ;;  %4101 = vmatprep.mubr.f32.mxu1 %v2411_v48  ;;  %v2812_v8 = vld [vmem:[#allocation8 + $0xc60] sm:$0xff] }
 0x2bf   : > { %5938 = vmatpush3.bf16.msra.mxu1 %v5937_v58  ;;  %3418 = vmatprep.mubr.f32.mxu0 %v2339_v18  ;;  %v2819_v18 = vld [vmem:[#allocation8 + $0xc98] sm:$0xff]  ;;  %v2901_v58 = vld [vmem:[#allocation8 + $0xf28] sm:$0xff]  ;;  %v5665_v45 = vpack.c.bf16 %v2815_v40, %v2812_v8  ;;  %v2958_v8 = vld [vmem:[#allocation8 + $0x10f0] sm:$0xff] }
 0x2c0   : > { %5658 = vmatpush1.bf16.msra.mxu0 %v5657_v6  ;;  %5940 = vmatprep.subr.bf16.mxu1 %v5939_v51  ;;  %v2952_v6 = vld [vmem:[#allocation8 + $0x10c0] sm:$0xff]  ;;  %v2955_v51 = vld [vmem:[#allocation8 + $0x10d8] sm:$0xff]  ;;  %v5945_v33 = vpack.c.bf16 %v2901_v58, %v2898_v7  ;;  %v5667_v16 = vpack.c.bf16 %v2822_v34, %v2819_v18  ;;  %v2961_v40 = vld [vmem:[#allocation8 + $0x1108] sm:$0xff]  ;;  %v2353_v7 = vmax.f32 %v7850_v63, 0.0  ;;  %v7868_v58 = vadd.f32 %v7547_v13, %v7793_v3 }
 0x2c1   : > { %4102 = vmatmul.mubr.f32.gmra.mrb[126].mxu1 %v2410_v14  ;;  %5660 = vmatprep.subr.bf16.mxu0 %v5659_v37  ;;  %v7845_v37 = vadd.f32 %v8352_v30, %v7805_v55  ;;  %v5947_v21 = vpack.c.bf16 %v2955_v51, %v2952_v6  ;;  %v2824_v18 = vld [vmem:[#allocation8 + $0xcc0] sm:$0xff]  ;;  %v5951_v34 = vpack.c.bf16 %v2961_v40, %v2958_v8  ;;  %v2910_v6 = vld [vmem:[#allocation8 + $0xf70] sm:$0xff] }
 0x2c2   : > { %3419 = vmatmul.mubr.f32.gmra.mrb[34].mxu0 %v2338_v49  ;;  %4171 = vmatprep.mubr.f32.mxu1 %v2329_v56  ;;  %v2821_v49 = vld [vmem:[#allocation8 + $0xca8] sm:$0xff]  ;;  %v2834_v51 = vld [vmem:[#allocation8 + $0xd10] sm:$0xff]  ;;  %v2964_v30 = vld [vmem:[#allocation8 + $0x1120] sm:$0xff] }
 0x2c3   : > { %5942 = vmatpush3.bf16.msra.mxu1 %v5941_v5  ;;  %3424 = vmatprep.mubr.f32.mxu0 %v2351_v10  ;;  %v2825_v10 = vld [vmem:[#allocation8 + $0xcc8] sm:$0xff]  ;;  %v2904_v5 = vld [vmem:[#allocation8 + $0xf40] sm:$0xff]  ;;  %v2340_v62 = vmax.f32 %v7845_v37, 0.0  ;;  %v2970_v40 = vld [vmem:[#allocation8 + $0x1150] sm:$0xff] }
 0x2c4   : > { %5662 = vmatpush1.bf16.msra.mxu0 %v5661_v26  ;;  %5944 = vmatprep.subr.bf16.mxu1 %v5943_v1  ;;  %v2828_v26 = vld [vmem:[#allocation8 + $0xce0] sm:$0xff]  ;;  %v7863_v1 = vadd.f32 %v7528_v23, %v7805_v55  ;;  %v2913_v23 = vld [vmem:[#allocation8 + $0xf88] sm:$0xff] }
 0x2c5   : > { %5664 = vmatprep.subr.bf16.mxu0 %v5663_v61  ;;  %v5669_v61 = vpack.c.bf16 %v2821_v49, %v2818_v47  ;;  %v5671_v29 = vpack.c.bf16 %v2828_v26, %v2825_v10  ;;  %v8353_v47 = vld [vmem:[#allocation23_spill] sm:$0xff]  ;;  %v2365_v10 = vmax.f32 %v7868_v58, 0.0  ;;  %v2917_v37 = vld [vmem:[#allocation8 + $0xfa8] sm:$0xff] }
 0x2c6   : > { %4172 = vmatmul.mubr.f32.vlgmr.msra.gmra.mrb[128].mxu1 %v2328_v19  ;;  %3425 = vmatmul.mubr.f32.gmra.mrb[36].mxu0 %v2350_v43  ;;  %v5949_v43 = vpack.c.bf16 %v2907_v32, %v2904_v5  ;;  %v2352_v13 = vmax.f32 %v7863_v1, 0.0  ;;  %v7881_v49 = vadd.f32 %v8353_v47, %v7805_v55  ;;  %v2916_v32 = vld [vmem:[#allocation8 + $0xfa0] sm:$0xff]  ;;  %v2919_v26 = vld [vmem:[#allocation8 + $0xfb8] sm:$0xff] }
 0x2c7   : > { %4176 = vmatprep.mubr.f32.mxu1 %v2341_v9  ;;  %3430 = vmatprep.mubr.f32.mxu0 %v2363_v11  ;;  %v2831_v11 = vld [vmem:[#allocation8 + $0xcf8] sm:$0xff]  ;;  %v2840_v8 = vld [vmem:[#allocation8 + $0xd40] sm:$0xff] }
 0x2c8   : > { %5666 = vmatpush1.bf16.msra.mxu0 %v5665_v45  ;;  %5946 = vmatpush3.bf16.msra.mxu1 %v5945_v33  ;;  %v2967_v45 = vld [vmem:[#allocation8 + $0x1138] sm:$0xff]  ;;  %v5673_v33 = vpack.c.bf16 %v2827_v20, %v2824_v18  ;;  %v5675_v38 = vpack.c.bf16 %v2834_v51, %v2831_v11  ;;  %v7899_v18 = vadd.f32 %v7555_v39, %v7805_v55  ;;  %v2925_v39 = vld [vmem:[#allocation8 + $0xfe8] sm:$0xff]  ;;  %v2846_v51 = vld [vmem:[#allocation8 + $0xd70] sm:$0xff] }
 0x2c9   : > { %5668 = vmatprep.subr.bf16.mxu0 %v5667_v16  ;;  %5948 = vmatprep.subr.bf16.mxu1 %v5947_v21  ;;  %v2830_v16 = vld [vmem:[#allocation8 + $0xcf0] sm:$0xff]  ;;  %v7886_v21 = vadd.f32 %v7557_v4, %v7793_v3  ;;  %v5955_v5 = vpack.c.bf16 %v2967_v45, %v2964_v30  ;;  %v2364_v4 = vmax.f32 %v7881_v49, 0.0  ;;  %v7904_v11 = vadd.f32 %v7565_v41, %v7793_v3  ;;  %v2976_v30 = vld [vmem:[#allocation8 + $0x1180] sm:$0xff]  ;;  %v2979_v45 = vld [vmem:[#allocation8 + $0x1198] sm:$0xff] }
 0x2ca   : > { %4177 = vmatmul.mubr.f32.gmra.mrb[130].mxu1 %v2340_v62  ;;  %3431 = vmatmul.mubr.f32.gmra.mrb[38].mxu0 %v2362_v0  ;;  %v5953_v0 = vpack.c.bf16 %v2913_v23, %v2910_v6  ;;  %v5677_v20 = vpack.c.bf16 %v2833_v25, %v2830_v16  ;;  %v2922_v6 = vld [vmem:[#allocation8 + $0xfd0] sm:$0xff]  ;;  %v8354_v23 = vmax.f32 %v7775_v31, 0.0  ;;  %v8355_v41 = vmax.f32 %v7779_v15, 0.0  ;;  %v2845_v31 = vld [vmem:[#allocation8 + $0xd68] sm:$0xff]  ;;  %v2923_v1 = vld [vmem:[#allocation8 + $0xfd8] sm:$0xff] }
 0x2cb   : > { %4181 = vmatprep.mubr.f32.mxu1 %v2353_v7  ;;  %3436 = vmatprep.mubr.f32.mxu0 %v2375_v36  ;;  %v2837_v36 = vld [vmem:[#allocation8 + $0xd28] sm:$0xff]  ;;  %v2376_v47 = vmax.f32 %v7899_v18, 0.0  ;;  %v2935_v18 = vld [vmem:[#allocation8 + $0x1038] sm:$0xff] }
 0x2cc   : > { %5670 = vmatpush1.bf16.msra.mxu0 %v5669_v61  ;;  %5950 = vmatpush3.bf16.msra.mxu1 %v5949_v43  ;;  %v2973_v61 = vld [vmem:[#allocation8 + $0x1168] sm:$0xff]  ;;  %v2836_v43 = vld [vmem:[#allocation8 + $0xd20] sm:$0xff]  ;;  %v5679_v52 = vpack.c.bf16 %v2840_v8, %v2837_v36  ;;  %v2389_v36 = vmax.f32 %v7904_v11, 0.0 }
 0x2cd   : > { %5672 = vmatprep.subr.bf16.mxu0 %v5671_v29  ;;  %5952 = vmatprep.subr.bf16.mxu1 %v5951_v34  ;;  %v2377_v29 = vmax.f32 %v7886_v21, 0.0  ;;  %v5959_v34 = vpack.c.bf16 %v2973_v61, %v2970_v40  ;;  %v5681_v25 = vpack.c.bf16 %v2839_v28, %v2836_v43  ;;  %v2928_v8 = vld [vmem:[#allocation8 + $0x1000] sm:$0xff]  ;;  %v2931_v40 = vld [vmem:[#allocation8 + $0x1018] sm:$0xff]  ;;  %v2985_v43 = vld [vmem:[#allocation8 + $0x11c8] sm:$0xff] }
 0x2ce   : > { %4182 = vmatmul.mubr.f32.gmra.mrb[132].mxu1 %v2352_v13  ;;  %3437 = vmatmul.mubr.f32.gmra.mrb[40].mxu0 %v2374_v53  ;;  %v5957_v53 = vpack.c.bf16 %v2919_v26, %v2916_v32  ;;  %v2849_v32 = vld [vmem:[#allocation8 + $0xd88] sm:$0xff]  ;;  %v5963_v26 = vpack.c.bf16 %v2979_v45, %v2976_v30  ;;  %v2852_v61 = vld [vmem:[#allocation8 + $0xda0] sm:$0xff]  ;;  %v2858_v30 = vld [vmem:[#allocation8 + $0xdd0] sm:$0xff] }
 0x2cf   : > { %4186 = vmatprep.mubr.f32.mxu1 %v2365_v10  ;;  %3442 = vmatprep.mubr.f32.mxu0 %v2387_v12  ;;  %v2843_v12 = vld [vmem:[#allocation8 + $0xd58] sm:$0xff]  ;;  %v8357_v28 = vld [vmem:[#allocation25_spill] sm:$0xff]  ;;  %v5687_v50 = vpack.c.bf16 %v2852_v61, %v2849_v32  ;;  %v2988_v45 = vld [vmem:[#allocation8 + $0x11e0] sm:$0xff] }
 0x2d0   : > { %5674 = vmatpush1.bf16.msra.mxu0 %v5673_v33  ;;  %5954 = vmatpush3.bf16.msra.mxu1 %v5953_v0  ;;  %v8356_v33 = vld [vmem:[#allocation24_spill] sm:$0xff]  ;;  %v2842_v0 = vld [vmem:[#allocation8 + $0xd50] sm:$0xff]  ;;  %v5683_v15 = vpack.c.bf16 %v2846_v51, %v2843_v12  ;;  %v2863_v61 = vld [vmem:[#allocation8 + $0xdf8] sm:$0xff] }
 0x2d1   : > { %5676 = vmatprep.subr.bf16.mxu0 %v5675_v38  ;;  %5956 = vmatprep.subr.bf16.mxu1 %v5955_v5  ;;  %v7917_v16 = vadd.f32 %v8356_v33, %v7805_v55  ;;  %v5961_v38 = vpack.c.bf16 %v2925_v39, %v2922_v6  ;;  %v7922_v5 = vadd.f32 %v7573_v54, %v7793_v3  ;;  %v2848_v12 = vld [vmem:[#allocation8 + $0xd80] sm:$0xff]  ;;  %v2937_v51 = vld [vmem:[#allocation8 + $0x1048] sm:$0xff] }
 0x2d2   : > { %4187 = vmatmul.mubr.f32.gmra.mrb[134].mxu1 %v2364_v4  ;;  %3443 = vmatmul.mubr.f32.gmra.mrb[42].mxu0 %v8354_v23  ;;  %v7940_v6 = vadd.f32 %v7581_v22, %v7793_v3  ;;  %v2934_v23 = vld [vmem:[#allocation8 + $0x1030] sm:$0xff]  ;;  %v7953_v3 = vadd.f32 %v7577_v27, %v7805_v55  ;;  %v5689_v33 = vpack.c.bf16 %v2851_v24, %v2848_v12  ;;  %v2864_v27 = vld [vmem:[#allocation8 + $0xe00] sm:$0xff]  ;;  %v2869_v24 = vld [vmem:[#allocation8 + $0xe28] sm:$0xff] }
 0x2d3   : > { %4191 = vmatprep.mubr.f32.mxu1 %v2377_v29  ;;  %3448 = vmatprep.mubr.f32.mxu0 %v8355_v41  ;;  %v2388_v54 = vmax.f32 %v7917_v16, 0.0  ;;  %v2991_v41 = vld [vmem:[#allocation8 + $0x11f8] sm:$0xff]  ;;  %v5969_v17 = vpack.c.bf16 %v2937_v51, %v2934_v23  ;;  %v2866_v12 = vld [vmem:[#allocation8 + $0xe10] sm:$0xff]  ;;  %v2872_v23 = vld [vmem:[#allocation8 + $0xe40] sm:$0xff] }
 0x2d4   : > { %5678 = vmatpush1.bf16.msra.mxu0 %v5677_v20  ;;  %5958 = vmatpush3.bf16.msra.mxu1 %v5957_v53  ;;  %v2982_v20 = vld [vmem:[#allocation8 + $0x11b0] sm:$0xff]  ;;  %v7935_v53 = vadd.f32 %v8357_v28, %v7805_v55  ;;  %v2412_v55 = vmax.f32 %v7953_v3, 0.0  ;;  %v2875_v51 = vld [vmem:[#allocation8 + $0xe58] sm:$0xff]  ;;  %v2929_v49 = vld [vmem:[#allocation8 + $0x1008] sm:$0xff] }
 0x2d5   : > { %5680 = vmatprep.subr.bf16.mxu0 %v5679_v52  ;;  %5960 = vmatprep.subr.bf16.mxu1 %v5959_v34  ;;  %v5685_v52 = vpack.c.bf16 %v2845_v31, %v2842_v0  ;;  %v2401_v34 = vmax.f32 %v7922_v5, 0.0  ;;  %v5967_v39 = vpack.c.bf16 %v2985_v43, %v2982_v20  ;;  %v2857_v31 = vld [vmem:[#allocation8 + $0xdc8] sm:$0xff]  ;;  %v2867_v20 = vld [vmem:[#allocation8 + $0xe18] sm:$0xff]  ;;  %v2870_v43 = vld [vmem:[#allocation8 + $0xe30] sm:$0xff] }
 0x2d6   : > { %4192 = vmatmul.mubr.f32.gmra.mrb[136].mxu1 %v2376_v47  ;;  %3449 = vmatmul.mubr.f32.gmra.mrb[44].mxu0 %v2398_v44  ;;  %v5965_v44 = vpack.c.bf16 %v2931_v40, %v2928_v8  ;;  %v2400_v22 = vmax.f32 %v7935_v53, 0.0  ;;  %v2860_v40 = vld [vmem:[#allocation8 + $0xde0] sm:$0xff]  ;;  %v2941_v16 = vld [vmem:[#allocation8 + $0x1068] sm:$0xff] }
 0x2d7   : > { %4196 = vmatprep.mubr.f32.mxu1 %v2389_v36  ;;  %3454 = vmatprep.mubr.f32.mxu0 %v2411_v48  ;;  %v2855_v48 = vld [vmem:[#allocation8 + $0xdb8] sm:$0xff]  ;;  %v5697_v28 = vpack.c.bf16 %v2863_v61, %v2860_v40  ;;  %v8359_v61 = vsub.s32 3, %v7199_v60 }
 0x2d8   : > { %5682 = vmatpush1.bf16.msra.mxu0 %v5681_v25  ;;  %5962 = vmatpush3.bf16.msra.mxu1 %v5961_v38  ;;  %v2854_v25 = vld [vmem:[#allocation8 + $0xdb0] sm:$0xff]  ;;  %v5691_v0 = vpack.c.bf16 %v2858_v30, %v2855_v48  ;;  %v5971_v38 = vpack.c.bf16 %v2991_v41, %v2988_v45  ;;  %v5701_v48 = vpack.c.bf16 %v2869_v24, %v2866_v12  ;;  %v2879_v30 = vld [vmem:[#allocation8 + $0xe78] sm:$0xff]  ;;  %v2897_v24 = vld [vmem:[#allocation8 + $0xf08] sm:$0xff] }
 0x2d9   : > { %5684 = vmatprep.subr.bf16.mxu0 %v5683_v15  ;;  %5964 = vmatprep.subr.bf16.mxu1 %v5963_v26  ;;  %v2861_v15 = vld [vmem:[#allocation8 + $0xde8] sm:$0xff]  ;;  %v5693_v32 = vpack.c.bf16 %v2857_v31, %v2854_v25  ;;  %v2882_v45 = vld [vmem:[#allocation8 + $0xe90] sm:$0xff]  ;;  %v5705_v41 = vpack.c.bf16 %v2875_v51, %v2872_v23  ;;  %v2888_v31 = vld [vmem:[#allocation8 + $0xec0] sm:$0xff] }
 0x2da   : > { %4197 = vmatmul.mubr.f32.gmra.mrb[138].mxu1 %v2388_v54  ;;  %3455 = vmatmul.mubr.f32.gmra.mrb[46].mxu0 %v2410_v14  ;;  %v2413_v14 = vmax.f32 %v7940_v6, 0.0  ;;  %v5695_v8 = vpack.c.bf16 %v2864_v27, %v2861_v15  ;;  %v2878_v25 = vld [vmem:[#allocation8 + $0xe70] sm:$0xff]  ;;  %v2887_v15 = vld [vmem:[#allocation8 + $0xeb8] sm:$0xff]  ;;  %v2896_v51 = vld [vmem:[#allocation8 + $0xf00] sm:$0xff] }
 0x2db   : > { %4201 = vmatprep.mubr.f32.mxu1 %v2401_v34  ;;  %3525 = vmatprep.mubr.f32.mxu0 %v2329_v56  ;;  %v2943_v56 = vld [vmem:[#allocation8 + $0x1078] sm:$0xff] }
 0x2dc   : > { %5686 = vmatpush1.bf16.msra.mxu0 %v5685_v52  ;;  %5966 = vmatpush3.bf16.msra.mxu1 %v5965_v44  ;;  %v5973_v26 = vpack.c.bf16 %v2943_v56, %v2940_v46  ;;  %v5699_v52 = vpack.c.bf16 %v2870_v43, %v2867_v20  ;;  %v2873_v44 = vld [vmem:[#allocation8 + $0xe48] sm:$0xff]  ;;  %v2884_v56 = vld [vmem:[#allocation8 + $0xea0] sm:$0xff]  ;;  %v2891_v27 = vld [vmem:[#allocation8 + $0xed8] sm:$0xff]  ;;  %v7970_v20 = vrot.slane %v7781_v35, %v8359_v61 }
 0x2dd   : > { %5688 = vmatprep.subr.bf16.mxu0 %v5687_v50  ;;  %5968 = vmatprep.subr.bf16.mxu1 %v5967_v39  ;;  %v2876_v50 = vld [vmem:[#allocation8 + $0xe60] sm:$0xff]  ;;  %v5713_v40 = vpack.c.bf16 %v2887_v15, %v2884_v56  ;;  %v2902_v56 = vld [vmem:[#allocation8 + $0xf30] sm:$0xff]  ;;  %v2905_v15 = vld [vmem:[#allocation8 + $0xf48] sm:$0xff] }
 0x2de   : > { %4202 = vmatmul.mubr.f32.gmra.mrb[140].mxu1 %v2400_v22  ;;  %v5703_v39 = vpack.c.bf16 %v2876_v50, %v2873_v44  ;;  %v2900_v44 = vld [vmem:[#allocation8 + $0xf20] sm:$0xff]  ;;  %v2909_v61 = vld [vmem:[#allocation8 + $0xf68] sm:$0xff] }
 0x2df   : > { %4206 = vmatprep.mubr.f32.mxu1 %v2413_v14 }
 0x2e0   : > { %5690 = vmatpush1.bf16.msra.mxu0 %v5689_v33  ;;  %5970 = vmatpush3.bf16.msra.mxu1 %v5969_v17  ;;  %v5707_v33 = vpack.c.bf16 %v2882_v45, %v2879_v30  ;;  %v2881_v17 = vld [vmem:[#allocation8 + $0xe88] sm:$0xff]  ;;  %v2899_v30 = vld [vmem:[#allocation8 + $0xf18] sm:$0xff] }
 0x2e1   : > { %5692 = vmatprep.subr.bf16.mxu0 %v5691_v0  ;;  %5972 = vmatprep.subr.bf16.mxu1 %v5971_v38  ;;  %v2885_v0 = vld [vmem:[#allocation8 + $0xea8] sm:$0xff]  ;;  %v5709_v38 = vpack.c.bf16 %v2881_v17, %v2878_v25  ;;  %v2906_v25 = vld [vmem:[#allocation8 + $0xf50] sm:$0xff] }
 0x2e2   : > { %4207 = vmatmul.mubr.f32.gmra.mrb[142].mxu1 %v2412_v55  ;;  %v5711_v46 = vpack.c.bf16 %v2888_v31, %v2885_v0 }
 0x2e4   : > { %5694 = vmatpush1.bf16.msra.mxu0 %v5693_v32  ;;  %5974 = vmatpush3.bf16.msra.mxu1 %v5973_v26  ;;  %v2894_v32 = vld [vmem:[#allocation8 + $0xef0] sm:$0xff]  ;;  %v8358_v26 = vld [vmem:[#allocation19_spill] sm:$0xff] }
 0x2e5   : > { %5696 = vmatprep.subr.bf16.mxu0 %v5695_v8  ;;  %v7965_v8 = vrot.slane %v7781_v35, %v8358_v26  ;;  %v5715_v43 = vpack.c.bf16 %v2894_v32, %v2891_v27  ;;  %v5719_v35 = vpack.c.bf16 %v2900_v44, %v2897_v24  ;;  %v5725_v24 = vpack.c.bf16 %v2905_v15, %v2902_v56 }
 0x2e8   : > { %5698 = vmatpush1.bf16.msra.mxu0 %v5697_v28  ;;  %v2890_v28 = vld [vmem:[#allocation8 + $0xed0] sm:$0xff] }
 0x2e9   : > { %5700 = vmatprep.subr.bf16.mxu0 %v5699_v52  ;;  %v2893_v52 = vld [vmem:[#allocation8 + $0xee8] sm:$0xff] }
 0x2ea   : > { %v5717_v23 = vpack.c.bf16 %v2893_v52, %v2890_v28 }
 0x2ec   : > { %5702 = vmatpush1.bf16.msra.mxu0 %v5701_v48 }
 0x2ed   : > { %5704 = vmatprep.subr.bf16.mxu0 %v5703_v39 }
 0x2f0   : > { %5706 = vmatpush1.bf16.msra.mxu0 %v5705_v41 }
 0x2f1   : > { %5708 = vmatprep.subr.bf16.mxu0 %v5707_v33  ;;  %v2903_v33 = vld [vmem:[#allocation8 + $0xf38] sm:$0xff] }
 0x2f4   : > { %5710 = vmatpush1.bf16.msra.mxu0 %v5709_v38  ;;  %v5721_v38 = vpack.c.bf16 %v2899_v30, %v2896_v51 }
 0x2f5   : > { %5712 = vmatprep.subr.bf16.mxu0 %v5711_v46  ;;  %v5723_v46 = vpack.c.bf16 %v2906_v25, %v2903_v33 }
 0x2f6   : > { %v2273_v12 = vpop.f32.mrb[48].mxu1 }
 0x2f7   : > { %v7973_v50 = vadd.f32 %v2273_v12, %v7965_v8  ;;  %v2275_v48 = vpop.f32.mrb[49].mxu1 }
 0x2f8   : > { %5714 = vmatpush1.bf16.msra.mxu0 %v5713_v40  ;;  %v7976_v39 = vadd.f32 %v2275_v48, %v7970_v20  ;;  %v2908_v48 = vld [vmem:[#allocation8 + $0xf60] sm:$0xff] }
 0x2f9   : > { %v2330_v60 = vmax.f32 %v7973_v50, 0.0  ;;  %5716 = vmatprep.subr.bf16.mxu0 %v5715_v43  ;;  %v2912_v43 = vld [vmem:[#allocation8 + $0xf80] sm:$0xff]  ;;  %v5729_v33 = vpack.c.bf16 %v2911_v42, %v2908_v48 }
 0x2fa   : > { %v2331_v45 = vmax.f32 %v7976_v39, 0.0  ;;  %v2279_v41 = vpop.f32.mrb[50].mxu1  ;;  %v5727_v44 = vpack.c.bf16 %v2912_v43, %v2909_v61  ;;  %v2959_v39 = vld [vmem:[#allocation8 + $0x10f8] sm:$0xff] }
 0x2fb   : > { %v7981_v17 = vadd.f32 %v2279_v41, %v7965_v8  ;;  %v2281_v0 = vpop.f32.mrb[51].mxu1 }
 0x2fc   : > { %5718 = vmatpush1.bf16.msra.mxu0 %v5717_v23  ;;  %v7984_v31 = vadd.f32 %v2281_v0, %v7970_v20  ;;  %4276 = vmatprep.mubr.f32.mxu1 %v2331_v45  ;;  %v2914_v0 = vld [vmem:[#allocation8 + $0xf90] sm:$0xff] }
 0x2fd   : > { %5720 = vmatprep.subr.bf16.mxu0 %v5719_v35  ;;  %4277 = vmatmul.mubr.f32.vlgmr.msra.gmra.mrb[144].mxu1 %v2330_v60  ;;  %v2342_v27 = vmax.f32 %v7981_v17, 0.0  ;;  %v2918_v35 = vld [vmem:[#allocation8 + $0xfb0] sm:$0xff]  ;;  %v5733_v61 = vpack.c.bf16 %v2917_v37, %v2914_v0 }
 0x2fe   : > { %v2343_v32 = vmax.f32 %v7984_v31, 0.0  ;;  %v2285_v40 = vpop.f32.mrb[52].mxu1 }
 0x2ff   : > { %3526 = vmatmul.mubr.f32.vlgmr.msra.gmra.mrb[32].mxu0 %v2328_v19  ;;  %v7995_v28 = vadd.f32 %v2285_v40, %v7965_v8  ;;  %v2287_v52 = vpop.f32.mrb[53].mxu1 }
 0x300   : > { %3531 = vmatprep.mubr.f32.mxu0 %v2341_v9  ;;  %5722 = vmatpush1.bf16.msra.mxu0 %v5721_v38  ;;  %v8000_v12 = vadd.f32 %v2287_v52, %v7970_v20  ;;  %v2915_v9 = vld [vmem:[#allocation8 + $0xf98] sm:$0xff]  ;;  %v2920_v52 = vld [vmem:[#allocation8 + $0xfc0] sm:$0xff] }
 0x301   : > { %5724 = vmatprep.subr.bf16.mxu0 %v5723_v46  ;;  %4281 = vmatprep.mubr.f32.mxu1 %v2343_v32  ;;  %v2354_v19 = vmax.f32 %v7995_v28, 0.0  ;;  %v5731_v25 = vpack.c.bf16 %v2918_v35, %v2915_v9  ;;  %v2924_v46 = vld [vmem:[#allocation8 + $0xfe0] sm:$0xff]  ;;  %v5737_v9 = vpack.c.bf16 %v2923_v1, %v2920_v52 }
 0x302   : > { %v2355_v23 = vmax.f32 %v8000_v12, 0.0  ;;  %4282 = vmatmul.mubr.f32.gmra.mrb[146].mxu1 %v2342_v27  ;;  %v2291_v57 = vpop.f32.mrb[54].mxu1 }
 0x303   : > { %3532 = vmatmul.mubr.f32.gmra.mrb[34].mxu0 %v2340_v62  ;;  %v8011_v51 = vadd.f32 %v2291_v57, %v7965_v8  ;;  %v2293_v30 = vpop.f32.mrb[55].mxu1 }
 0x304   : > { %3537 = vmatprep.mubr.f32.mxu0 %v2353_v7  ;;  %5726 = vmatpush1.bf16.msra.mxu0 %v5725_v24  ;;  %v8016_v41 = vadd.f32 %v2293_v30, %v7970_v20  ;;  %v2921_v7 = vld [vmem:[#allocation8 + $0xfc8] sm:$0xff]  ;;  %v2926_v30 = vld [vmem:[#allocation8 + $0xff0] sm:$0xff] }
 0x305   : > { %5728 = vmatprep.subr.bf16.mxu0 %v5727_v44  ;;  %4286 = vmatprep.mubr.f32.mxu1 %v2355_v23  ;;  %v2366_v62 = vmax.f32 %v8011_v51, 0.0  ;;  %v5735_v43 = vpack.c.bf16 %v2924_v46, %v2921_v7  ;;  %v2930_v44 = vld [vmem:[#allocation8 + $0x1010] sm:$0xff]  ;;  %v5741_v7 = vpack.c.bf16 %v2929_v49, %v2926_v30 }
 0x306   : > { %v2367_v38 = vmax.f32 %v8016_v41, 0.0  ;;  %4287 = vmatmul.mubr.f32.gmra.mrb[148].mxu1 %v2354_v19  ;;  %v2297_v63 = vpop.f32.mrb[56].mxu1 }
 0x307   : > { %3538 = vmatmul.mubr.f32.gmra.mrb[36].mxu0 %v2352_v13  ;;  %v8027_v56 = vadd.f32 %v2297_v63, %v7965_v8  ;;  %v2299_v15 = vpop.f32.mrb[57].mxu1 }
 0x308   : > { %3543 = vmatprep.mubr.f32.mxu0 %v2365_v10  ;;  %5730 = vmatpush1.bf16.msra.mxu0 %v5729_v33  ;;  %v8032_v40 = vadd.f32 %v2299_v15, %v7970_v20  ;;  %v2927_v10 = vld [vmem:[#allocation8 + $0xff8] sm:$0xff]  ;;  %v2932_v15 = vld [vmem:[#allocation8 + $0x1020] sm:$0xff] }
 0x309   : > { %5732 = vmatprep.subr.bf16.mxu0 %v5731_v25  ;;  %4291 = vmatprep.mubr.f32.mxu1 %v2367_v38  ;;  %v2378_v13 = vmax.f32 %v8027_v56, 0.0  ;;  %v5739_v35 = vpack.c.bf16 %v2930_v44, %v2927_v10  ;;  %v2936_v25 = vld [vmem:[#allocation8 + $0x1040] sm:$0xff]  ;;  %v5745_v10 = vpack.c.bf16 %v2935_v18, %v2932_v15  ;;  %v2953_v15 = vld [vmem:[#allocation8 + $0x10c8] sm:$0xff] }
 0x30a   : > { %v2379_v24 = vmax.f32 %v8032_v40, 0.0  ;;  %4292 = vmatmul.mubr.f32.gmra.mrb[150].mxu1 %v2366_v62  ;;  %v2303_v58 = vpop.f32.mrb[58].mxu1 }
 0x30b   : > { %3544 = vmatmul.mubr.f32.gmra.mrb[38].mxu0 %v2364_v4  ;;  %v8043_v48 = vadd.f32 %v2303_v58, %v7965_v8  ;;  %v2305_v42 = vpop.f32.mrb[59].mxu1 }
 0x30c   : > { %3549 = vmatprep.mubr.f32.mxu0 %v2377_v29  ;;  %5734 = vmatpush1.bf16.msra.mxu0 %v5733_v61  ;;  %v8048_v57 = vadd.f32 %v2305_v42, %v7970_v20  ;;  %v2933_v29 = vld [vmem:[#allocation8 + $0x1028] sm:$0xff]  ;;  %v2938_v42 = vld [vmem:[#allocation8 + $0x1050] sm:$0xff] }
 0x30d   : > { %5736 = vmatprep.subr.bf16.mxu0 %v5735_v43  ;;  %4296 = vmatprep.mubr.f32.mxu1 %v2379_v24  ;;  %v2390_v4 = vmax.f32 %v8043_v48, 0.0  ;;  %v5743_v46 = vpack.c.bf16 %v2936_v25, %v2933_v29  ;;  %v2942_v43 = vld [vmem:[#allocation8 + $0x1070] sm:$0xff]  ;;  %v5749_v30 = vpack.c.bf16 %v2941_v16, %v2938_v42  ;;  %v2947_v29 = vld [vmem:[#allocation8 + $0x1098] sm:$0xff] }
 0x30e   : > { %v2391_v33 = vmax.f32 %v8048_v57, 0.0  ;;  %4297 = vmatmul.mubr.f32.gmra.mrb[152].mxu1 %v2378_v13  ;;  %v2309_v21 = vpop.f32.mrb[60].mxu1  ;;  %v2954_v25 = vld [vmem:[#allocation8 + $0x10d0] sm:$0xff] }
 0x30f   : > { %3550 = vmatmul.mubr.f32.gmra.mrb[40].mxu0 %v2376_v47  ;;  %v8059_v0 = vadd.f32 %v2309_v21, %v7965_v8  ;;  %v2311_v37 = vpop.f32.mrb[61].mxu1  ;;  %v2944_v21 = vld [vmem:[#allocation8 + $0x1080] sm:$0xff]  ;;  %v2966_v42 = vld [vmem:[#allocation8 + $0x1130] sm:$0xff] }
 0x310   : > { %3555 = vmatprep.mubr.f32.mxu0 %v2389_v36  ;;  %5738 = vmatpush1.bf16.msra.mxu0 %v5737_v9  ;;  %v8064_v63 = vadd.f32 %v2311_v37, %v7970_v20  ;;  %v2939_v36 = vld [vmem:[#allocation8 + $0x1058] sm:$0xff]  ;;  %v2948_v9 = vld [vmem:[#allocation8 + $0x10a0] sm:$0xff]  ;;  %v5753_v37 = vpack.c.bf16 %v2947_v29, %v2944_v21  ;;  %v2969_v21 = vld [vmem:[#allocation8 + $0x1148] sm:$0xff] }
 0x311   : > { %5740 = vmatprep.subr.bf16.mxu0 %v5739_v35  ;;  %4301 = vmatprep.mubr.f32.mxu1 %v2391_v33  ;;  %v2402_v47 = vmax.f32 %v8059_v0, 0.0  ;;  %v5747_v44 = vpack.c.bf16 %v2942_v43, %v2939_v36  ;;  %v2960_v36 = vld [vmem:[#allocation8 + $0x1100] sm:$0xff] }
 0x312   : > { %v2403_v61 = vmax.f32 %v8064_v63, 0.0  ;;  %4302 = vmatmul.mubr.f32.gmra.mrb[154].mxu1 %v2390_v4  ;;  %v2315_v11 = vpop.f32.mrb[62].mxu1  ;;  %v2972_v29 = vld [vmem:[#allocation8 + $0x1160] sm:$0xff] }
 0x313   : > { %3556 = vmatmul.mubr.f32.gmra.mrb[42].mxu0 %v2388_v54  ;;  %v8075_v52 = vadd.f32 %v2315_v11, %v7965_v8  ;;  %v2317_v1 = vpop.f32.mrb[63].mxu1  ;;  %v2957_v11 = vld [vmem:[#allocation8 + $0x10e8] sm:$0xff] }
 0x314   : > { %3561 = vmatprep.mubr.f32.mxu0 %v2401_v34  ;;  %5742 = vmatpush1.bf16.msra.mxu0 %v5741_v7  ;;  %v8080_v58 = vadd.f32 %v2317_v1, %v7970_v20  ;;  %v2945_v34 = vld [vmem:[#allocation8 + $0x1088] sm:$0xff] }
 0x315   : > { %5744 = vmatprep.subr.bf16.mxu0 %v5743_v46  ;;  %4306 = vmatprep.mubr.f32.mxu1 %v2403_v61  ;;  %v2414_v54 = vmax.f32 %v8075_v52, 0.0  ;;  %v5751_v49 = vpack.c.bf16 %v2948_v9, %v2945_v34  ;;  %v2950_v46 = vld [vmem:[#allocation8 + $0x10b0] sm:$0xff] }
 0x316   : > { %v2415_v8 = vmax.f32 %v8080_v58, 0.0  ;;  %4307 = vmatmul.mubr.f32.gmra.mrb[156].mxu1 %v2402_v47  ;;  %v4519_v5 = vpop.f32.mrb[64].mxu1  ;;  %v5757_v3 = vpack.c.bf16 %v2953_v15, %v2950_v46  ;;  %v2975_v15 = vld [vmem:[#allocation8 + $0x1178] sm:$0xff] }
 0x317   : > { %3562 = vmatmul.mubr.f32.gmra.mrb[44].mxu0 %v2400_v22  ;;  %v4520_v20 = vpop.f32.mrb[65].mxu1  ;;  %v2951_v22 = vld [vmem:[#allocation8 + $0x10b8] sm:$0xff] }
 0x318   : > { %3567 = vmatprep.mubr.f32.mxu0 %v2413_v14  ;;  %5746 = vmatpush1.bf16.msra.mxu0 %v5745_v10  ;;  %v8092_v35 = vadd.f32 %v4520_v20, %v4519_v5  ;;  %v5755_v7 = vpack.c.bf16 %v2954_v25, %v2951_v22  ;;  %v2956_v10 = vld [vmem:[#allocation8 + $0x10e0] sm:$0xff]  ;;  %v2962_v20 = vld [vmem:[#allocation8 + $0x1110] sm:$0xff] }
 0x319   : > { %5748 = vmatprep.subr.bf16.mxu0 %v5747_v44  ;;  %4311 = vmatprep.mubr.f32.mxu1 %v2415_v8  ;;  %v2963_v44 = vld [vmem:[#allocation8 + $0x1118] sm:$0xff]  ;;  %v5761_v34 = vpack.c.bf16 %v2959_v39, %v2956_v10  ;;  %v2977_v10 = vld [vmem:[#allocation8 + $0x1188] sm:$0xff] }
 0x31a   : > { %4312 = vmatmul.mubr.f32.gmra.mrb[158].mxu1 %v2414_v54  ;;  %v4522_v53 = vpop.f32.mrb[66].mxu1  ;;  %v5763_v9 = vpack.c.bf16 %v2966_v42, %v2963_v44  ;;  %v2984_v44 = vld [vmem:[#allocation8 + $0x11c0] sm:$0xff] }
 0x31b   : > { %3568 = vmatmul.mubr.f32.gmra.mrb[46].mxu0 %v2412_v55  ;;  %v4523_v6 = vpop.f32.mrb[67].mxu1  ;;  %v5759_v55 = vpack.c.bf16 %v2960_v36, %v2957_v11 }
 0x31c   : > { %5750 = vmatpush1.bf16.msra.mxu0 %v5749_v30  ;;  %3638 = vmatprep.mubr.f32.mxu0 %v2331_v45  ;;  %v8102_v14 = vadd.f32 %v4523_v6, %v4522_v53  ;;  %v2965_v30 = vld [vmem:[#allocation8 + $0x1128] sm:$0xff]  ;;  %v5767_v6 = vpack.c.bf16 %v2972_v29, %v2969_v21  ;;  %v2987_v29 = vld [vmem:[#allocation8 + $0x11d8] sm:$0xff] }
 0x31d   : > { %5752 = vmatprep.subr.bf16.mxu0 %v5751_v49  ;;  %v5765_v25 = vpack.c.bf16 %v2965_v30, %v2962_v20  ;;  %v2980_v20 = vld [vmem:[#allocation8 + $0x11a0] sm:$0xff]  ;;  %v2983_v30 = vld [vmem:[#allocation8 + $0x11b8] sm:$0xff] }
 0x31e   : > { %v4525_v18 = vpop.f32.mrb[68].mxu1 }
 0x31f   : > { %v4526_v43 = vpop.f32.mrb[69].mxu1 }
 0x320   : > { %5754 = vmatpush1.bf16.msra.mxu0 %v5753_v37  ;;  %v8104_v1 = vadd.f32 %v4526_v43, %v4525_v18  ;;  %v2968_v37 = vld [vmem:[#allocation8 + $0x1140] sm:$0xff]  ;;  %v2978_v18 = vld [vmem:[#allocation8 + $0x1190] sm:$0xff] }
 0x321   : > { %5756 = vmatprep.subr.bf16.mxu0 %v5755_v7  ;;  %v2971_v7 = vld [vmem:[#allocation8 + $0x1158] sm:$0xff] }
 0x322   : > { %v4528_v45 = vpop.f32.mrb[70].mxu1  ;;  %v5769_v43 = vpack.c.bf16 %v2971_v7, %v2968_v37  ;;  %v5777_v37 = vpack.c.bf16 %v2983_v30, %v2980_v20 }
 0x323   : > { %v4529_v16 = vpop.f32.mrb[71].mxu1 }
 0x324   : > { %5758 = vmatpush1.bf16.msra.mxu0 %v5757_v3  ;;  %v8106_v5 = vadd.f32 %v4529_v16, %v4528_v45  ;;  %v5771_v3 = vpack.c.bf16 %v2978_v18, %v2975_v15  ;;  %v2981_v45 = vld [vmem:[#allocation8 + $0x11a8] sm:$0xff]  ;;  %v2986_v15 = vld [vmem:[#allocation8 + $0x11d0] sm:$0xff] }
 0x325   : > { %5760 = vmatprep.subr.bf16.mxu0 %v5759_v55  ;;  %v2974_v55 = vld [vmem:[#allocation8 + $0x1170] sm:$0xff]  ;;  %v2989_v18 = vld [vmem:[#allocation8 + $0x11e8] sm:$0xff] }
 0x326   : > { %v4531_v49 = vpop.f32.mrb[72].mxu1 }
 0x327   : > { %v4532_v53 = vpop.f32.mrb[73].mxu1 }
 0x328   : > { %5762 = vmatpush1.bf16.msra.mxu0 %v5761_v34  ;;  %v8108_v22 = vadd.f32 %v4532_v53, %v4531_v49  ;;  %v5773_v34 = vpack.c.bf16 %v2977_v10, %v2974_v55  ;;  %v8114_v49 = vld [vmem:[#allocation10] sm:$0x7]  ;;  %v2990_v53 = vld [vmem:[#allocation8 + $0x11f0] sm:$0xff] }
 0x329   : > { %5764 = vmatprep.subr.bf16.mxu0 %v5763_v9  ;;  %v5775_v9 = vpack.c.bf16 %v2984_v44, %v2981_v45  ;;  %v3005_v7 = vrot.slane %v8114_v49, %v8358_v26 }
 0x32a   : > { %v4534_v46 = vpop.f32.mrb[74].mxu1 }
 0x32b   : > { %v4535_v11 = vpop.f32.mrb[75].mxu1  ;;  %v3754_v55 = vadd.f32 %v8092_v35, %v3005_v7  ;;  %v3764_v35 = vadd.f32 %v8104_v1, %v3005_v7  ;;  %v3769_v50 = vadd.f32 %v8106_v5, %v3005_v7  ;;  %v3774_v17 = vadd.f32 %v8108_v22, %v3005_v7 }
 0x32c   : > { %5766 = vmatpush1.bf16.msra.mxu0 %v5765_v25  ;;  %v8110_v36 = vadd.f32 %v4535_v11, %v4534_v46  ;;  %v5779_v46 = vpack.c.bf16 %v2990_v53, %v2987_v29 }
 0x32d   : > { %5768 = vmatprep.subr.bf16.mxu0 %v5767_v6 }
 0x32e   : > { %v3779_v28 = vadd.f32 %v8110_v36, %v3005_v7 }
 0x32f   : > { %v4537_v39 = vpop.f32.mrb[76].mxu1 }
 0x330   : > { %v4538_v42 = vpop.f32.mrb[77].mxu1  ;;  %5770 = vmatpush1.bf16.msra.mxu0 %v5769_v43 }
 0x331   : > { %v8112_v16 = vadd.f32 %v4538_v42, %v4537_v39  ;;  %5772 = vmatprep.subr.bf16.mxu0 %v5771_v3  ;;  %v5781_v3 = vpack.c.bf16 %v2989_v18, %v2986_v15  ;;  %v3759_v42 = vadd.f32 %v8102_v14, %v3005_v7 }
 0x333   : > { %v4540_v21 = vpop.f32.mrb[78].mxu1  ;;  %v3784_v51 = vadd.f32 %v8112_v16, %v3005_v7 }
 0x334   : > { %v4541_v25 = vpop.f32.mrb[79].mxu1  ;;  %5774 = vmatpush1.bf16.msra.mxu0 %v5773_v34 }
 0x335   : > { %v4542_v6 = vadd.f32 %v4541_v25, %v4540_v21  ;;  %5776 = vmatprep.subr.bf16.mxu0 %v5775_v9 }
 0x337   : > { %v4575_v11 = vpop.f32.mrb[80].mxu1  ;;  %v3789_v36 = vadd.f32 %v4542_v6, %v3005_v7 }
 0x338   : > { %5778 = vmatpush1.bf16.msra.mxu0 %v5777_v37  ;;  %v4576_v43 = vpop.f32.mrb[81].mxu1 }
 0x339   : > { %v4577_v10 = vadd.f32 %v4576_v43, %v4575_v11  ;;  %5780 = vmatprep.subr.bf16.mxu0 %v5779_v46 }
 0x33b   : > { %v3859_v39 = vadd.f32 %v4577_v10, %v3754_v55  ;;  %v4578_v45 = vpop.f32.mrb[82].mxu1 }
 0x33c   : > { %5782 = vmatpush1.bf16.msra.mxu0 %v5781_v3  ;;  %v4579_v44 = vpop.f32.mrb[83].mxu1 }
 0x33d   : > { %v4580_v34 = vadd.f32 %v4579_v44, %v4578_v45 }
 0x33f   : > { %v3864_v26 = vadd.f32 %v4580_v34, %v3759_v42  ;;  %3639 = vmatmul.mubr.f32.vlgmr.msra.gmra.mrb[32].mxu0 %v2330_v60  ;;  %v4581_v9 = vpop.f32.mrb[84].mxu1 }
 0x340   : > { %3644 = vmatprep.mubr.f32.mxu0 %v2343_v32  ;;  %v4582_v20 = vpop.f32.mrb[85].mxu1 }
 0x341   : > { %v4583_v30 = vadd.f32 %v4582_v20, %v4581_v9 }
 0x343   : > { %v3869_v21 = vadd.f32 %v4583_v30, %v3764_v35  ;;  %3645 = vmatmul.mubr.f32.gmra.mrb[34].mxu0 %v2342_v27  ;;  %v4584_v29 = vpop.f32.mrb[86].mxu1 }
 0x344   : > { %3650 = vmatprep.mubr.f32.mxu0 %v2355_v23  ;;  %v4585_v14 = vpop.f32.mrb[87].mxu1 }
 0x345   : > { %v4586_v60 = vadd.f32 %v4585_v14, %v4584_v29 }
 0x347   : > { %v3874_v53 = vadd.f32 %v4586_v60, %v3769_v50  ;;  %3651 = vmatmul.mubr.f32.gmra.mrb[36].mxu0 %v2354_v19  ;;  %v4587_v31 = vpop.f32.mrb[88].mxu1 }
 0x348   : > { %3656 = vmatprep.mubr.f32.mxu0 %v2367_v38  ;;  %v4588_v32 = vpop.f32.mrb[89].mxu1 }
 0x349   : > { %v4589_v27 = vadd.f32 %v4588_v32, %v4587_v31 }
 0x34b   : > { %v3879_v1 = vadd.f32 %v4589_v27, %v3774_v17  ;;  %3657 = vmatmul.mubr.f32.gmra.mrb[38].mxu0 %v2366_v62  ;;  %v4590_v12 = vpop.f32.mrb[90].mxu1 }
 0x34c   : > { %3662 = vmatprep.mubr.f32.mxu0 %v2379_v24  ;;  %v4591_v23 = vpop.f32.mrb[91].mxu1 }
 0x34d   : > { %v4592_v19 = vadd.f32 %v4591_v23, %v4590_v12 }
 0x34f   : > { %v3884_v5 = vadd.f32 %v4592_v19, %v3779_v28  ;;  %3663 = vmatmul.mubr.f32.gmra.mrb[40].mxu0 %v2378_v13  ;;  %v4593_v41 = vpop.f32.mrb[92].mxu1 }
 0x350   : > { %3668 = vmatprep.mubr.f32.mxu0 %v2391_v33  ;;  %v4594_v38 = vpop.f32.mrb[93].mxu1 }
 0x351   : > { %v4595_v62 = vadd.f32 %v4594_v38, %v4593_v41 }
 0x353   : > { %v3889_v22 = vadd.f32 %v4595_v62, %v3784_v51  ;;  %3669 = vmatmul.mubr.f32.gmra.mrb[42].mxu0 %v2390_v4  ;;  %v4596_v40 = vpop.f32.mrb[94].mxu1 }
 0x354   : > { %3674 = vmatprep.mubr.f32.mxu0 %v2403_v61  ;;  %v4597_v24 = vpop.f32.mrb[95].mxu1 }
 0x355   : > { %v4598_v56 = vadd.f32 %v4597_v24, %v4596_v40 }
 0x357   : > { %v3894_v13 = vadd.f32 %v4598_v56, %v3789_v36  ;;  %3675 = vmatmul.mubr.f32.gmra.mrb[44].mxu0 %v2402_v47  ;;  %v4631_v57 = vpop.f32.mrb[96].mxu1 }
 0x358   : > { %3680 = vmatprep.mubr.f32.mxu0 %v2415_v8  ;;  %v4632_v33 = vpop.f32.mrb[97].mxu1 }
 0x359   : > { %v4633_v16 = vadd.f32 %v4632_v33, %v4631_v57 }
 0x35b   : > { %3681 = vmatmul.mubr.f32.gmra.mrb[46].mxu0 %v2414_v54  ;;  %v3964_v48 = vadd.f32 %v4633_v16, %v3859_v39  ;;  %v4634_v4 = vpop.f32.mrb[98].mxu1 }
 0x35c   : > { %v4635_v63 = vpop.f32.mrb[99].mxu1 }
 0x35d   : > { %v4636_v61 = vadd.f32 %v4635_v63, %v4634_v4 }
 0x35f   : > { %v3969_v25 = vadd.f32 %v4636_v61, %v3864_v26  ;;  %v4637_v6 = vpop.f32.mrb[100].mxu1 }
 0x360   : > { %v4638_v37 = vpop.f32.mrb[101].mxu1 }
 0x361   : > { %v4639_v7 = vadd.f32 %v4638_v37, %v4637_v6 }
 0x363   : > { %v3974_v46 = vadd.f32 %v4639_v7, %v3869_v21  ;;  %v4640_v0 = vpop.f32.mrb[102].mxu1 }
 0x364   : > { %v4641_v47 = vpop.f32.mrb[103].mxu1 }
 0x365   : > { %v4642_v15 = vadd.f32 %v4641_v47, %v4640_v0 }
 0x367   : > { %v3979_v58 = vadd.f32 %v4642_v15, %v3874_v53  ;;  %v4643_v8 = vpop.f32.mrb[104].mxu1 }
 0x368   : > { %v4644_v18 = vpop.f32.mrb[105].mxu1 }
 0x369   : > { %v4645_v11 = vadd.f32 %v4644_v18, %v4643_v8 }
 0x36b   : > { %v3984_v43 = vadd.f32 %v4645_v11, %v3879_v1  ;;  %v4646_v3 = vpop.f32.mrb[106].mxu1 }
 0x36c   : > { %v4647_v52 = vpop.f32.mrb[107].mxu1 }
 0x36d   : > { %v4648_v54 = vadd.f32 %v4647_v52, %v4646_v3 }
 0x36f   : > { %v3989_v55 = vadd.f32 %v4648_v54, %v3884_v5 }
 0x370   : > { %v4649_v10 = vpop.f32.mrb[108].mxu1 }
 0x371   : > { %v4650_v39 = vpop.f32.mrb[109].mxu1 }
 0x372   : > { %v4651_v45 = vadd.f32 %v4650_v39, %v4649_v10 }
 0x374   : > { %v3994_v44 = vadd.f32 %v4651_v45, %v3889_v22  ;;  %v4652_v42 = vpop.f32.mrb[110].mxu1 }
 0x375   : > { %v4653_v34 = vpop.f32.mrb[111].mxu1 }
 0x376   : > { %v4654_v26 = vadd.f32 %v4653_v34, %v4652_v42 }
 0x378   : > { %v3999_v9 = vadd.f32 %v4654_v26, %v3894_v13  ;;  %v4687_v20 = vpop.f32.mrb[112].mxu1 }
 0x379   : > { %v4688_v35 = vpop.f32.mrb[113].mxu1 }
 0x37a   : > { %v4689_v30 = vadd.f32 %v4688_v35, %v4687_v20 }
 0x37c   : > { %v4069_v21 = vadd.f32 %v4689_v30, %v3964_v48  ;;  %v4690_v29 = vpop.f32.mrb[114].mxu1 }
 0x37d   : > { %v4691_v14 = vpop.f32.mrb[115].mxu1 }
 0x37e   : > { %v4692_v50 = vadd.f32 %v4691_v14, %v4690_v29 }
 0x380   : > { %v4074_v60 = vadd.f32 %v4692_v50, %v3969_v25  ;;  %v4693_v53 = vpop.f32.mrb[116].mxu1 }
 0x381   : > { %v4694_v31 = vpop.f32.mrb[117].mxu1 }
 0x382   : > { %v4695_v32 = vadd.f32 %v4694_v31, %v4693_v53 }
 0x384   : > { %v4079_v17 = vadd.f32 %v4695_v32, %v3974_v46  ;;  %v4696_v27 = vpop.f32.mrb[118].mxu1 }
 0x385   : > { %v4697_v1 = vpop.f32.mrb[119].mxu1 }
 0x386   : > { %v4698_v12 = vadd.f32 %v4697_v1, %v4696_v27 }
 0x388   : > { %v4084_v23 = vadd.f32 %v4698_v12, %v3979_v58  ;;  %v4699_v28 = vpop.f32.mrb[120].mxu1 }
 0x389   : > { %v4700_v19 = vpop.f32.mrb[121].mxu1 }
 0x38a   : > { %v4701_v5 = vadd.f32 %v4700_v19, %v4699_v28 }
 0x38c   : > { %v4089_v41 = vadd.f32 %v4701_v5, %v3984_v43  ;;  %v4702_v38 = vpop.f32.mrb[122].mxu1 }
 0x38d   : > { %v4703_v51 = vpop.f32.mrb[123].mxu1 }
 0x38e   : > { %v4704_v62 = vadd.f32 %v4703_v51, %v4702_v38 }
 0x390   : > { %v4094_v22 = vadd.f32 %v4704_v62, %v3989_v55  ;;  %v4705_v40 = vpop.f32.mrb[124].mxu1 }
 0x391   : > { %v4706_v24 = vpop.f32.mrb[125].mxu1 }
 0x392   : > { %v4707_v36 = vadd.f32 %v4706_v24, %v4705_v40 }
 0x394   : > { %v4099_v56 = vadd.f32 %v4707_v36, %v3994_v44  ;;  %v4708_v13 = vpop.f32.mrb[126].mxu1 }
 0x395   : > { %v4709_v57 = vpop.f32.mrb[127].mxu1 }
 0x396   : > { %v4710_v33 = vadd.f32 %v4709_v57, %v4708_v13 }
 0x398   : > { %v4104_v16 = vadd.f32 %v4710_v33, %v3999_v9 }
 0x399   : > { %v4743_v48 = vpop.f32.mrb[128].mxu1 }
 0x39a   : > { %v4744_v4 = vpop.f32.mrb[129].mxu1 }
 0x39b   : > { %v4745_v63 = vadd.f32 %v4744_v4, %v4743_v48 }
 0x39d   : > { %v4174_v61 = vadd.f32 %v4745_v63, %v4069_v21  ;;  %v4746_v25 = vpop.f32.mrb[130].mxu1 }
 0x39e   : > { %v4747_v6 = vpop.f32.mrb[131].mxu1 }
 0x39f   : > { %v4748_v37 = vadd.f32 %v4747_v6, %v4746_v25  ;;  %v3001_v25 = vrot.slane %v8114_v49, %v8348_v2 }
 0x3a1   : > { %v4179_v7 = vadd.f32 %v4748_v37, %v4074_v60  ;;  %v4749_v46 = vpop.f32.mrb[132].mxu1 }
 0x3a2   : > { %v4750_v0 = vpop.f32.mrb[133].mxu1 }
 0x3a3   : > { %v4751_v47 = vadd.f32 %v4750_v0, %v4749_v46 }
 0x3a5   : > { %v4184_v15 = vadd.f32 %v4751_v47, %v4079_v17  ;;  %v4752_v58 = vpop.f32.mrb[134].mxu1 }
 0x3a6   : > { %v4753_v8 = vpop.f32.mrb[135].mxu1 }
 0x3a7   : > { %v4754_v18 = vadd.f32 %v4753_v8, %v4752_v58 }
 0x3a9   : > { %v4189_v11 = vadd.f32 %v4754_v18, %v4084_v23  ;;  %v4755_v43 = vpop.f32.mrb[136].mxu1 }
 0x3aa   : > { %v4756_v3 = vpop.f32.mrb[137].mxu1 }
 0x3ab   : > { %v4757_v52 = vadd.f32 %v4756_v3, %v4755_v43 }
 0x3ad   : > { %v4194_v54 = vadd.f32 %v4757_v52, %v4089_v41  ;;  %v4758_v55 = vpop.f32.mrb[138].mxu1 }
 0x3ae   : > { %v4759_v10 = vpop.f32.mrb[139].mxu1 }
 0x3af   : > { %v4760_v39 = vadd.f32 %v4759_v10, %v4758_v55 }
 0x3b1   : > { %v4199_v45 = vadd.f32 %v4760_v39, %v4094_v22  ;;  %v4761_v44 = vpop.f32.mrb[140].mxu1 }
 0x3b2   : > { %v4762_v42 = vpop.f32.mrb[141].mxu1 }
 0x3b3   : > { %v4763_v34 = vadd.f32 %v4762_v42, %v4761_v44 }
 0x3b5   : > { %v4204_v26 = vadd.f32 %v4763_v34, %v4099_v56  ;;  %v4764_v9 = vpop.f32.mrb[142].mxu1 }
 0x3b6   : > { %v4765_v20 = vpop.f32.mrb[143].mxu1 }
 0x3b7   : > { %v4766_v35 = vadd.f32 %v4765_v20, %v4764_v9 }
 0x3b9   : > { %v4209_v30 = vadd.f32 %v4766_v35, %v4104_v16 }
 0x3d0   : > { %v4799_v21 = vpop.f32.mrb[144].mxu1 }
 0x3d1   : > { %v4800_v29 = vpop.f32.mrb[145].mxu1 }
 0x3d2   : > { %v4801_v14 = vadd.f32 %v4800_v29, %v4799_v21 }
 0x3d4   : > { %v4279_v50 = vadd.f32 %v4801_v14, %v4174_v61  ;;  %v2997_v61 = vrot.slane %v8114_v49, %v8349_v59 }
 0x3d5   : > { %v4802_v60 = vpop.f32.mrb[146].mxu1 }
 0x3d6   : > { %4319 = vst [vmem:[%s8157_s24 + $0x10] sm:$0xff] %v4279_v50  ;;  %v4803_v53 = vpop.f32.mrb[147].mxu1 }
 0x3d7   : > { %v4804_v31 = vadd.f32 %v4803_v53, %v4802_v60 }
 0x3d9   : > { %v4284_v32 = vadd.f32 %v4804_v31, %v4179_v7  ;;  %v4805_v17 = vpop.f32.mrb[148].mxu1 }
 0x3da   : > { %v4806_v27 = vpop.f32.mrb[149].mxu1 }
 0x3db   : > { %4322 = vst [vmem:[%s8157_s24 + $0x28] sm:$0xff] %v4284_v32  ;;  %v4807_v1 = vadd.f32 %v4806_v27, %v4805_v17 }
 0x3dd   : > { %v4289_v12 = vadd.f32 %v4807_v1, %v4184_v15  ;;  %v4808_v23 = vpop.f32.mrb[150].mxu1 }
 0x3de   : > { %v4809_v28 = vpop.f32.mrb[151].mxu1 }
 0x3df   : > { %4325 = vst [vmem:[%s8157_s24 + $0x40] sm:$0xff] %v4289_v12  ;;  %v4810_v19 = vadd.f32 %v4809_v28, %v4808_v23 }
 0x3e1   : > { %v4294_v5 = vadd.f32 %v4810_v19, %v4189_v11  ;;  %v4811_v41 = vpop.f32.mrb[152].mxu1 }
 0x3e2   : > { %v4812_v38 = vpop.f32.mrb[153].mxu1 }
 0x3e3   : > { %4328 = vst [vmem:[%s8157_s24 + $0x58] sm:$0xff] %v4294_v5  ;;  %v4813_v51 = vadd.f32 %v4812_v38, %v4811_v41 }
 0x3e5   : > { %v4299_v62 = vadd.f32 %v4813_v51, %v4194_v54  ;;  %v4814_v22 = vpop.f32.mrb[154].mxu1 }
 0x3e6   : > { %v4815_v40 = vpop.f32.mrb[155].mxu1 }
 0x3e7   : > { %4331 = vst [vmem:[%s8157_s24 + $0x70] sm:$0xff] %v4299_v62  ;;  %v4816_v24 = vadd.f32 %v4815_v40, %v4814_v22 }
 0x3e9   : > { %v4304_v36 = vadd.f32 %v4816_v24, %v4199_v45  ;;  %v4817_v56 = vpop.f32.mrb[156].mxu1 }
 0x3ea   : > { %v4818_v13 = vpop.f32.mrb[157].mxu1 }
 0x3eb   : > { %4334 = vst [vmem:[%s8157_s24 + $0x88] sm:$0xff] %v4304_v36  ;;  %v4819_v57 = vadd.f32 %v4818_v13, %v4817_v56 }
 0x3ed   : > { %v4309_v33 = vadd.f32 %v4819_v57, %v4204_v26  ;;  %v4820_v16 = vpop.f32.mrb[158].mxu1 }
 0x3ee   : > { %v4821_v48 = vpop.f32.mrb[159].mxu1 }
 0x3ef   : > { %4337 = vst [vmem:[%s8157_s24 + $0xa0] sm:$0xff] %v4309_v33  ;;  %v4822_v4 = vadd.f32 %v4821_v48, %v4820_v16 }
 0x3f1   : > { %v4314_v63 = vadd.f32 %v4822_v4, %v4209_v30 }
 0x3f3   : > { %4340 = vst [vmem:[%s8157_s24 + $0xb8] sm:$0xff] %v4314_v63 }
 0x412   : > { %v3640_v6 = vpop.f32.mrb[32].mxu0 }
 0x413   : > { %v6071_v37 = vadd.f32 %v3640_v6, %v2997_v61  ;;  %v3642_v7 = vpop.f32.mrb[33].mxu0 }
 0x414   : > { %v6072_v46 = vadd.f32 %v3642_v7, %v3001_v25 }
 0x415   : > { %4317 = vst [vmem:[%s8157_s24] sm:$0xff] %v6071_v37 }
 0x416   : > { %4318 = vst [vmem:[%s8157_s24 + $0x8] sm:$0xff] %v6072_v46  ;;  %v3646_v0 = vpop.f32.mrb[34].mxu0 }
 0x417   : > { %v6073_v47 = vadd.f32 %v3646_v0, %v2997_v61  ;;  %v3648_v15 = vpop.f32.mrb[35].mxu0 }
 0x418   : > { %v6074_v58 = vadd.f32 %v3648_v15, %v3001_v25 }
 0x419   : > { %4320 = vst [vmem:[%s8157_s24 + $0x18] sm:$0xff] %v6073_v47 }
 0x41a   : > { %4321 = vst [vmem:[%s8157_s24 + $0x20] sm:$0xff] %v6074_v58  ;;  %v3652_v59 = vpop.f32.mrb[36].mxu0 }
 0x41b   : > { %v6075_v8 = vadd.f32 %v3652_v59, %v2997_v61  ;;  %v3654_v2 = vpop.f32.mrb[37].mxu0 }
 0x41c   : > { %v6076_v49 = vadd.f32 %v3654_v2, %v3001_v25 }
 0x41d   : > { %4323 = vst [vmem:[%s8157_s24 + $0x30] sm:$0xff] %v6075_v8 }
 0x41e   : > { %4324 = vst [vmem:[%s8157_s24 + $0x38] sm:$0xff] %v6076_v49  ;;  %v3658_v18 = vpop.f32.mrb[38].mxu0 }
 0x41f   : > { %v6077_v11 = vadd.f32 %v3658_v18, %v2997_v61  ;;  %v3660_v43 = vpop.f32.mrb[39].mxu0 }
 0x420   : > { %v6078_v3 = vadd.f32 %v3660_v43, %v3001_v25 }
 0x421   : > { %4326 = vst [vmem:[%s8157_s24 + $0x48] sm:$0xff] %v6077_v11 }
 0x422   : > { %4327 = vst [vmem:[%s8157_s24 + $0x50] sm:$0xff] %v6078_v3  ;;  %v3664_v52 = vpop.f32.mrb[40].mxu0 }
 0x423   : > { %v6079_v54 = vadd.f32 %v3664_v52, %v2997_v61  ;;  %v3666_v55 = vpop.f32.mrb[41].mxu0 }
 0x424   : > { %v6080_v10 = vadd.f32 %v3666_v55, %v3001_v25 }
 0x425   : > { %4329 = vst [vmem:[%s8157_s24 + $0x60] sm:$0xff] %v6079_v54 }
 0x426   : > { %4330 = vst [vmem:[%s8157_s24 + $0x68] sm:$0xff] %v6080_v10  ;;  %v3670_v39 = vpop.f32.mrb[42].mxu0 }
 0x427   : > { %v6081_v45 = vadd.f32 %v3670_v39, %v2997_v61  ;;  %v3672_v44 = vpop.f32.mrb[43].mxu0 }
 0x428   : > { %v6082_v42 = vadd.f32 %v3672_v44, %v3001_v25 }
 0x429   : > { %4332 = vst [vmem:[%s8157_s24 + $0x78] sm:$0xff] %v6081_v45 }
 0x42a   : > { %4333 = vst [vmem:[%s8157_s24 + $0x80] sm:$0xff] %v6082_v42  ;;  %v3676_v34 = vpop.f32.mrb[44].mxu0 }
 0x42b   : > { %v6083_v26 = vadd.f32 %v3676_v34, %v2997_v61  ;;  %v3678_v9 = vpop.f32.mrb[45].mxu0 }
 0x42c   : > { %v6084_v20 = vadd.f32 %v3678_v9, %v3001_v25 }
 0x42d   : > { %4335 = vst [vmem:[%s8157_s24 + $0x90] sm:$0xff] %v6083_v26 }
 0x42e   : > { %4336 = vst [vmem:[%s8157_s24 + $0x98] sm:$0xff] %v6084_v20  ;;  %v3682_v35 = vpop.f32.mrb[46].mxu0 }
 0x42f   : > { %v6085_v30 = vadd.f32 %v3682_v35, %v2997_v61  ;;  %v3684_v21 = vpop.f32.mrb[47].mxu0 }
 0x430   : > { %v6086_v29 = vadd.f32 %v3684_v21, %v3001_v25 }
 0x431   : > { %4338 = vst [vmem:[%s8157_s24 + $0xa8] sm:$0xff] %v6085_v30 }
 0x432   : > { %4339 = vst [vmem:[%s8157_s24 + $0xb0] sm:$0xff] %v6086_v29 }
 0x433   : > { %6565 = shalt.err (!%p6562_p12)
}
 0x434   : > { %s6566_s14 = scalar_lea.hbm %s8190_s17, 3072  ;;  %s6570_s13 = scalar_lea.hbm %s8242_s5, 12288 }
 0x435   : > { %p6567_p0 = scmp.ne.s32.totalorder %s8190_s17, %s6566_s14  ;;  %p6571_p11 = scmp.lt.u32.totalorder %s8190_s17, %s8242_s5 }
 0x436   : > { %p6572_p1 = scmp.lt.u32.totalorder %s6570_s13, %s6566_s14  ;;  %p6574_p4 = scmp.lt.u32.totalorder %s6566_s14, %s8190_s17 }
 0x437   : > { %p6568_p5 = pnand %p6567_p0, %p6833_p6 }
 0x438   : > { %p6573_p2 = por %p6572_p1, %p6571_p11 }
 0x439   : > { %p6569_p10 = pneg %p6568_p5 }
 0x43a   : > { %p6575_p8 = por %p6574_p4, %p6573_p2 }
 0x43c   : > { %p6576_p13 = pnand %p6575_p8, %p6569_p10 }
 0x43e   : > { %6579 = shalt.err (!%p6576_p13)
}
 0x43f   : > { %s6639_s26 = smov 384   ;;  %s6640_s27 = smov 24  }
 0x440   : > { %6285 = dma.vmem_to_hbm [thread:$0]  (%p6833_p6), %s8192_s15, 3072, %s8190_s17, %s4342_s22, %s6639_s26, %s6639_s26, %s6640_s27  }
 0x441 PF: > { %p6317_p3 = scmp.ge.s32.totalorder %s6626_s21, 2  ;;  %s4371_s16 = sand.u32 1, %s6614_s18  }
 0x442   : > { %p8360_p7 = scmp.ne.s32.totalorder %s8286_s25, 0  ;;  %s4372_s28 = scalar_lea.sflag [#allocation4], %s4371_s16 }
 0x444   : > { %p6305_p9 = pnand %p6317_p3, %p8360_p7 }
 0x446   : > { %6609 = dma.done.wait (!%p6305_p9), %s4372_s28, 3072  }
 0x447   : > { %6611 = vsyncadd (!%p6305_p9), %s4372_s28, 4294964224  ;;  %p20_p12 = scmp.ge.s32.totalorder %s6820_s12, 6   ;;  %s8361_s18 = smov %s6618_s19 }
 0x448   : > { %s8362_s19 = smov %s6622_s20  ;;  %s8363_s20 = smov %s6829_s30 }
 0x449   : > { %s8364_s21 = smov %s6820_s12  ;;  %22 = sbr.rel (!%p20_p12) target bundleno = 7 (0x7), region = 101 }
 0x450   :  { %4377 = vsyncpa [#allocation3], 1 }
 0x451   :  { %4379 = vsyncpa [#allocation3 + $0x1], 1 }
 0x452   :  { %4380 = vsyncpa [#allocation6], 1 }
 0x453   :  { %4381 = vsyncpa [#allocation9], 1 }
 0x454   :  { %4382 = vsyncpa [#allocation4], 1 }
 0x455   :  { %4384 = vsyncpa [#allocation4 + $0x1], 1 }

</bundles_post_ra>
